<compile_context>
chip_gen: v5e
topology: v5e:2x2
jax: 0.10.0
libtpu: 0.0.40
codegen_flags: <defaults>
</compile_context>

<pallas_src>
import functools
import math

import jax
import jax.numpy as jnp
from jax.experimental import pallas as pl
from jax.experimental.pallas import tpu as pltpu


def _layernorm(v, g, b, eps=1e-5):
    mu = jnp.mean(v, axis=-1, keepdims=True)
    var = jnp.mean((v - mu) ** 2, axis=-1, keepdims=True)
    return (v - mu) * jax.lax.rsqrt(var + eps) * g + b


def st_block_kernel(x_ref, dt_ref, dtv_ref,
                    wqkv_ref, wo_ref, bo_ref,
                    g1_ref, b1_ref, g2_ref, b2_ref,
                    wf1_ref, bf1_ref, wf2_ref, bf2_ref,
                    gn_ref, bn_ref,
                    o_ref, *, heads, head_dim, embed, seq):
    C, T = embed, seq
    x = x_ref[...]                                   # (M, C) f32, M = row_block*T
    M = x.shape[0]
    rb = M // T

    # Fused Q|K|V projection (Q half pre-scaled by 1/sqrt(dk)); bf16 in, f32 acc.
    qkv = jnp.dot(x.astype(jnp.bfloat16), wqkv_ref[...],
                  preferred_element_type=jnp.float32)              # (M, 3C)
    qkv3 = qkv.reshape(rb, T, 3 * C)                               # per-sequence view
    qk = qkv3[:, :, :2 * C].astype(jnp.bfloat16)                   # (rb, T, 2C)
    # V = x@Wv + dt@Wv, the second term precomputed in the wrapper as (T, C).
    v = (qkv3[:, :, 2 * C:] + dtv_ref[...]).astype(jnp.bfloat16)   # (rb, T, C)

    # Per-head batched attention over the T axis of every sequence in the slab.
    ctx_heads = []
    for h in range(heads):                                         # static unroll
        qs = slice(h * head_dim, (h + 1) * head_dim)
        ks = slice(C + h * head_dim, C + (h + 1) * head_dim)
        s = jnp.einsum('bqd,bkd->bqk', qk[:, :, qs], qk[:, :, ks],
                       preferred_element_type=jnp.float32)         # (rb, T, T)
        s = s - jnp.max(s, axis=-1, keepdims=True)
        e = jnp.exp(s)
        p = e * pl.reciprocal(jnp.sum(e, axis=-1, keepdims=True), approx=True)
        ctx_heads.append(
            jnp.einsum('bqk,bkd->bqd', p.astype(jnp.bfloat16), v[:, :, qs],
                       preferred_element_type=jnp.float32))        # (rb, T, dk)
    # One fc_out matmul over all heads (contraction K = C, not head_dim).
    ctx = jnp.concatenate(ctx_heads, axis=-1).reshape(M, C)        # (M, C) f32
    attn_out = jnp.dot(ctx.astype(jnp.bfloat16), wo_ref[...],
                       preferred_element_type=jnp.float32) + bo_ref[...]

    # TTransformer residuals + norms + feed-forward (elementwise math in f32).
    q_in = (x.reshape(rb, T, C) + dt_ref[...]).reshape(M, C)       # x + D_T
    x1 = _layernorm(attn_out + q_in, g1_ref[...], b1_ref[...])
    h1 = jnp.maximum(
        jnp.dot(x1.astype(jnp.bfloat16), wf1_ref[...],
                preferred_element_type=jnp.float32) + bf1_ref[...], 0.0)
    ff = jnp.dot(h1.astype(jnp.bfloat16), wf2_ref[...],
                 preferred_element_type=jnp.float32) + bf2_ref[...]
    tt = _layernorm(ff + x1, g2_ref[...], b2_ref[...])

    # Outer STTransformerBlock residual uses the *original* (un-embedded) query.
    out = _layernorm(tt + x, gn_ref[...], bn_ref[...])
    o_ref[...] = out.astype(o_ref.dtype)


def _tpu_vmem_capacity():
    try:
        return int(pltpu.get_tpu_info().vmem_capacity_bytes)
    except Exception:
        return 64 * 1024 * 1024      # conservative (v7x per-TensorCore VMEM)


def _pick_row_block(R, T, C, F):
    """Sequences per grid step, generation-aware.

    v7x (64 MiB VMEM, 2 TCs): keep grid length >= 2 and even so the "parallel"
    axis shards across both TensorCores, under a ~75% VMEM budget.
    v5e/v6e (128 MiB VMEM, 1 TC): the grid is a serial loop, so take the largest
    slab that fits the budget.
    """
    if R <= 1:
        return max(R, 1)
    vmem_cap = _tpu_vmem_capacity()
    budget = int(vmem_cap * 0.75)
    multi_core = vmem_cap <= 80 * 1024 * 1024     # v7x-class chips

    # Per-sequence working set, f32-equivalent and deliberately conservative:
    #   x slab + out slab (double-buffered), qkv (f32), bf16 qk/v copies,
    #   ctx / residual temporaries, ReLU intermediate, per-head score buffers.
    per_row = 4 * T * (2 * C + 2 * C + 3 * C + 2 * C + 2 * C + F + 3 * T)
    # Resident constants (bf16 weights single-buffered + f32 vectors).
    const_bytes = (2 * (3 * C * C + C * C + 2 * C * F)
                   + 4 * (2 * T * C + 7 * C + F))
    cap = max(1, (budget - const_bytes) // per_row)

    # Candidates: divisors of R whose (rb*T) slab is 8-row aligned (or the full slab).
    cands = [d for d in range(1, R + 1)
             if R % d == 0 and ((d * T) % 8 == 0 or d == R)]
    fitting = [d for d in cands if d <= cap] or [min(cands)]
    if multi_core and R >= 2:
        even = [d for d in fitting if (R // d) >= 2 and (R // d) % 2 == 0]
        two = [d for d in fitting if (R // d) >= 2]
        pool = even or two or fitting
    else:
        pool = fitting
    return max(pool)


def prepare_params(params, seq_len, heads):
    """One-time (hoisted out of the per-call path): fold the attention scale into
    Wq, fuse [Wq|Wk|Wv], precompute dt@Wv, cast matmul weights to bf16."""
    C = params["wq"].shape[0]
    head_dim = C // heads
    scale = 1.0 / math.sqrt(head_dim)
    dt = params["emb"][:seq_len].astype(jnp.float32)               # (T, C)
    wqkv = jnp.concatenate(
        [params["wq"] * scale, params["wk"], params["wv"]], axis=1)  # (C, 3C)
    return {
        "dt": dt,
        "dtv": dt @ params["wv"],                                   # (T, C), f32
        "wqkv": wqkv.astype(jnp.bfloat16),
        "wo": params["wo"].astype(jnp.bfloat16), "bo": params["bo"],
        "g1": params["g1"], "b1": params["b1"],
        "g2": params["g2"], "b2": params["b2"],
        "wf1": params["wf1"].astype(jnp.bfloat16), "bf1": params["bf1"],
        "wf2": params["wf2"].astype(jnp.bfloat16), "bf2": params["bf2"],
        "gn": params["gn"], "bn": params["bn"],
    }


def st_block_pallas(x_rows, prep, *, heads, head_dim, row_block=None):
    """x_rows: (R, T, C) with R = B*N. Returns (R, T, C)."""
    R, T, C = x_rows.shape
    F = prep["wf1"].shape[1]
    if row_block is None:
        row_block = _pick_row_block(R, T, C, F)
    assert R % row_block == 0
    M = row_block * T
    grid = (R // row_block,)
    x2 = x_rows.reshape(R * T, C)

    kernel = functools.partial(st_block_kernel, heads=heads, head_dim=head_dim,
                               embed=C, seq=T)

    flops = int(2 * R * T * (3 * C * C + 2 * T * C + C * C + 2 * C * F))
    transcendentals = int(R * heads * T * T + 4 * R * T)
    bytes_accessed = int(2 * R * T * C * 4
                         + sum(int(a.size) * a.dtype.itemsize for a in prep.values()))
    cost = pl.CostEstimate(flops=flops, transcendentals=transcendentals,
                           bytes_accessed=bytes_accessed)
    vmem_limit = int(_tpu_vmem_capacity() * 0.75)

    def build(single_buffer_consts):
        def const_spec(shape):
            if single_buffer_consts:
                return pl.BlockSpec(shape, lambda i: (0,) * len(shape),
                                    pipeline_mode=pl.Buffered(1))
            return pl.BlockSpec(shape, lambda i: (0,) * len(shape))

        in_specs = [
            pl.BlockSpec((M, C), lambda i: (i, 0)),    # x slab (pipelined)
            const_spec((T, C)),                        # D_T
            const_spec((T, C)),                        # D_T @ Wv
            const_spec((C, 3 * C)),                    # [Wq/sqrt(dk) | Wk | Wv] (bf16)
            const_spec((C, C)), const_spec((1, C)),    # fc_out W (bf16), b
            const_spec((1, C)), const_spec((1, C)),    # norm1 g, b
            const_spec((1, C)), const_spec((1, C)),    # norm2 g, b
            const_spec((C, F)), const_spec((1, F)),    # ff W1 (bf16), b1
            const_spec((F, C)), const_spec((1, C)),    # ff W2 (bf16), b2
            const_spec((1, C)), const_spec((1, C)),    # outer block norm g, b
        ]
        # Note: with C < 128 the output stores are lane-masked (vst.msk); a
        # lane-dense (row, T*C) output layout is possible but not worth the
        # in-kernel relayout at these channel widths.
        return pl.pallas_call(
            kernel,
            out_shape=jax.ShapeDtypeStruct((R * T, C), x_rows.dtype),
            grid_spec=pltpu.PrefetchScalarGridSpec(
                num_scalar_prefetch=0, grid=grid,
                in_specs=in_specs,
                out_specs=pl.BlockSpec((M, C), lambda i: (i, 0))),
            compiler_params=pltpu.CompilerParams(
                dimension_semantics=("parallel",),
                vmem_limit_bytes=vmem_limit),
            cost_estimate=cost)

    args = (x2, prep["dt"], prep["dtv"], prep["wqkv"],
            prep["wo"], prep["bo"], prep["g1"], prep["b1"], prep["g2"], prep["b2"],
            prep["wf1"], prep["bf1"], prep["wf2"], prep["bf2"],
            prep["gn"], prep["bn"])
    try:
        out2 = build(True)(*args)
    except Exception:
        # pipeline_mode=pl.Buffered(1) not supported -> default double buffering.
        out2 = build(False)(*args)
    return out2.reshape(R, T, C)


def st_transformer_block(x, prep, *, heads):
    """STTransformerBlock forward with value = key = query = x (self-attention
    use, as in the ST-Transformer encoder). Dropout is identity (eval mode);
    the PyTorch module's 't' argument is unused by its forward."""
    B, N, T, C = x.shape
    out = st_block_pallas(x.reshape(B * N, T, C), prep,
                          heads=heads, head_dim=C // heads)
    return out.reshape(B, N, T, C)


# ----------------------------- reference (pure JAX, f32) --------------------
def st_block_reference(x, params, *, heads):
    B, N, T, C = x.shape
    dk = C // heads
    dt = params["emb"][:T]
    q_in = x + dt                                          # broadcast (T, C)
    Q = x @ params["wq"]
    K = x @ params["wk"]
    V = q_in @ params["wv"]

    def split(a):                                          # (B,N,T,C)->(B,H,N,T,dk)
        return a.reshape(B, N, T, heads, dk).transpose(0, 3, 1, 2, 4)
    Qh, Kh, Vh = split(Q), split(K), split(V)
    s = jnp.einsum("bhntd,bhnsd->bhnts", Qh, Kh) / math.sqrt(dk)
    a = jax.nn.softmax(s, axis=-1)
    ctx = jnp.einsum("bhnts,bhnsd->bhntd", a, Vh)
    ctx = ctx.transpose(0, 2, 3, 1, 4).reshape(B, N, T, C)
    attn_out = ctx @ params["wo"] + params["bo"][0]

    def ln(v, g, b):
        mu = jnp.mean(v, -1, keepdims=True)
        var = jnp.mean((v - mu) ** 2, -1, keepdims=True)
        return (v - mu) * jax.lax.rsqrt(var + 1e-5) * g[0] + b[0]

    x1 = ln(attn_out + q_in, params["g1"], params["b1"])
    ff = (jnp.maximum(x1 @ params["wf1"] + params["bf1"][0], 0.0)
          @ params["wf2"] + params["bf2"][0])
    tt = ln(ff + x1, params["g2"], params["b2"])
    return ln(tt + x, params["gn"], params["bn"])


def init_params(key, embed_size, time_num, forward_expansion):
    C, F = embed_size, forward_expansion * embed_size
    keys = jax.random.split(key, 7)
    return {
        "emb": jax.random.normal(keys[0], (time_num, C), jnp.float32) * 0.1,
        "wq": jax.random.normal(keys[1], (C, C), jnp.float32) * 0.1,
        "wk": jax.random.normal(keys[2], (C, C), jnp.float32) * 0.1,
        "wv": jax.random.normal(keys[3], (C, C), jnp.float32) * 0.1,
        "wo": jax.random.normal(keys[4], (C, C), jnp.float32) * 0.1,
        "bo": jnp.zeros((1, C), jnp.float32),
        "g1": jnp.ones((1, C), jnp.float32), "b1": jnp.zeros((1, C), jnp.float32),
        "g2": jnp.ones((1, C), jnp.float32), "b2": jnp.zeros((1, C), jnp.float32),
        "wf1": jax.random.normal(keys[5], (C, F), jnp.float32) * 0.1,
        "bf1": jnp.zeros((1, F), jnp.float32),
        "wf2": jax.random.normal(keys[6], (F, C), jnp.float32) * 0.1,
        "bf2": jnp.zeros((1, C), jnp.float32),
        "gn": jnp.ones((1, C), jnp.float32), "bn": jnp.zeros((1, C), jnp.float32),
    }


if __name__ == "__main__":
    B, N, T, C = 2, 4, 8, 32
    heads, time_num, forward_expansion = 4, 16, 4

    key = jax.random.PRNGKey(0)
    kx, kp = jax.random.split(key)
    x = jax.random.normal(kx, (B, N, T, C), jnp.float32)
    params = init_params(kp, C, time_num, forward_expansion)
    prep = prepare_params(params, T, heads)        # hoisted one-time preparation

    out = st_transformer_block(x, prep, heads=heads)
    out = jax.block_until_ready(out)

    ref = st_block_reference(x, params, heads=heads)
    assert out.shape == (B, N, T, C)
    # bf16 MXU operands + approx-reciprocal softmax -> mixed-precision tolerance.
    assert jnp.allclose(out, ref, atol=2e-2, rtol=2e-2), "mismatch vs reference"
    print("KERNEL_OK")
</pallas_src>

<mosaic_0001>
module attributes {stable_mosaic.version = 11 : i64} {
  func.func @st_block_kernel(%arg0: i32, %arg1: memref<32x32xf32, #tpu.memory_space<vmem>>, %arg2: memref<8x32xf32, #tpu.memory_space<vmem>>, %arg3: memref<8x32xf32, #tpu.memory_space<vmem>>, %arg4: memref<32x96xbf16, #tpu.memory_space<vmem>>, %arg5: memref<32x32xbf16, #tpu.memory_space<vmem>>, %arg6: memref<1x32xf32, #tpu.memory_space<vmem>>, %arg7: memref<1x32xf32, #tpu.memory_space<vmem>>, %arg8: memref<1x32xf32, #tpu.memory_space<vmem>>, %arg9: memref<1x32xf32, #tpu.memory_space<vmem>>, %arg10: memref<1x32xf32, #tpu.memory_space<vmem>>, %arg11: memref<32x128xbf16, #tpu.memory_space<vmem>>, %arg12: memref<1x128xf32, #tpu.memory_space<vmem>>, %arg13: memref<128x32xbf16, #tpu.memory_space<vmem>>, %arg14: memref<1x32xf32, #tpu.memory_space<vmem>>, %arg15: memref<1x32xf32, #tpu.memory_space<vmem>>, %arg16: memref<1x32xf32, #tpu.memory_space<vmem>>, %arg17: memref<32x32xf32, #tpu.memory_space<vmem>>) attributes {dimension_semantics = [#tpu.dimension_semantics<parallel>], iteration_bounds = array<i64: 2>, scalar_prefetch = 0 : i64, scratch_operands = 0 : i64, tpu.core_type = #tpu.core_type<tc>, window_params = [{transform_indices = @transform_0, window_bounds = array<i64: 32, 32>}, {pipeline_mode = #tpu.pipeline_mode<synchronous>, transform_indices = @transform_1, window_bounds = array<i64: 8, 32>}, {pipeline_mode = #tpu.pipeline_mode<synchronous>, transform_indices = @transform_2, window_bounds = array<i64: 8, 32>}, {pipeline_mode = #tpu.pipeline_mode<synchronous>, transform_indices = @transform_3, window_bounds = array<i64: 32, 96>}, {pipeline_mode = #tpu.pipeline_mode<synchronous>, transform_indices = @transform_4, window_bounds = array<i64: 32, 32>}, {pipeline_mode = #tpu.pipeline_mode<synchronous>, transform_indices = @transform_5, window_bounds = array<i64: 1, 32>}, {pipeline_mode = #tpu.pipeline_mode<synchronous>, transform_indices = @transform_6, window_bounds = array<i64: 1, 32>}, {pipeline_mode = #tpu.pipeline_mode<synchronous>, transform_indices = @transform_7, window_bounds = array<i64: 1, 32>}, {pipeline_mode = #tpu.pipeline_mode<synchronous>, transform_indices = @transform_8, window_bounds = array<i64: 1, 32>}, {pipeline_mode = #tpu.pipeline_mode<synchronous>, transform_indices = @transform_9, window_bounds = array<i64: 1, 32>}, {pipeline_mode = #tpu.pipeline_mode<synchronous>, transform_indices = @transform_10, window_bounds = array<i64: 32, 128>}, {pipeline_mode = #tpu.pipeline_mode<synchronous>, transform_indices = @transform_11, window_bounds = array<i64: 1, 128>}, {pipeline_mode = #tpu.pipeline_mode<synchronous>, transform_indices = @transform_12, window_bounds = array<i64: 128, 32>}, {pipeline_mode = #tpu.pipeline_mode<synchronous>, transform_indices = @transform_13, window_bounds = array<i64: 1, 32>}, {pipeline_mode = #tpu.pipeline_mode<synchronous>, transform_indices = @transform_14, window_bounds = array<i64: 1, 32>}, {pipeline_mode = #tpu.pipeline_mode<synchronous>, transform_indices = @transform_15, window_bounds = array<i64: 1, 32>}, {transform_indices = @transform_16, window_bounds = array<i64: 32, 32>}]} {
    %c0 = arith.constant 0 : index
    %c0_0 = arith.constant 0 : index
    %0 = vector.load %arg1[%c0, %c0_0] : memref<32x32xf32, #tpu.memory_space<vmem>>, vector<32x32xf32>
    %1 = arith.truncf %0 : vector<32x32xf32> to vector<32x32xbf16>
    %c0_1 = arith.constant 0 : index
    %c0_2 = arith.constant 0 : index
    %2 = vector.load %arg4[%c0_1, %c0_2] : memref<32x96xbf16, #tpu.memory_space<vmem>>, vector<32x96xbf16>
    %cst = arith.constant dense<0.000000e+00> : vector<32x96xf32>
    %3 = tpu.matmul %1, %2, %cst {dimension_numbers = #tpu.dot_dimension_numbers<[1], [0], [0], [1], [0, 0, 1, 1], [], []>} : vector<32x32xbf16>, vector<32x96xbf16>, vector<32x96xf32> -> vector<32x96xf32>
    %4 = vector.shape_cast %3 : vector<32x96xf32> to vector<4x8x96xf32>
    %5 = vector.extract_strided_slice %4 {offsets = [0, 0, 0], sizes = [4, 8, 64], strides = [1, 1, 1]} : vector<4x8x96xf32> to vector<4x8x64xf32>
    %6 = arith.truncf %5 : vector<4x8x64xf32> to vector<4x8x64xbf16>
    %7 = vector.extract_strided_slice %4 {offsets = [0, 0, 64], sizes = [4, 8, 32], strides = [1, 1, 1]} : vector<4x8x96xf32> to vector<4x8x32xf32>
    %c0_3 = arith.constant 0 : index
    %c0_4 = arith.constant 0 : index
    %8 = vector.load %arg3[%c0_3, %c0_4] : memref<8x32xf32, #tpu.memory_space<vmem>>, vector<8x32xf32>
    %9 = vector.shape_cast %8 : vector<8x32xf32> to vector<1x8x32xf32>
    %10 = vector.broadcast %9 : vector<1x8x32xf32> to vector<4x8x32xf32>
    %11 = arith.addf %7, %10 : vector<4x8x32xf32>
    %12 = arith.truncf %11 : vector<4x8x32xf32> to vector<4x8x32xbf16>
    %13 = vector.extract_strided_slice %6 {offsets = [0, 0, 0], sizes = [4, 8, 8], strides = [1, 1, 1]} : vector<4x8x64xbf16> to vector<4x8x8xbf16>
    %14 = vector.extract_strided_slice %6 {offsets = [0, 0, 32], sizes = [4, 8, 8], strides = [1, 1, 1]} : vector<4x8x64xbf16> to vector<4x8x8xbf16>
    "tpu.trace_start"() <{level = 10 : i32, message = "bqd,bkd->bqk"}> : () -> ()
    %cst_5 = arith.constant dense<0.000000e+00> : vector<4x8x8xf32>
    %15 = tpu.matmul %13, %14, %cst_5 {dimension_numbers = #tpu.dot_dimension_numbers<[2], [2], [1], [1], [0, 0, 0, 1, 1, 1], [0], [0]>} : vector<4x8x8xbf16>, vector<4x8x8xbf16>, vector<4x8x8xf32> -> vector<4x8x8xf32>
    "tpu.trace_stop"() : () -> ()
    %cst_6 = arith.constant dense<0xFF800000> : vector<4x8xf32>
    %16 = vector.multi_reduction <maximumf>, %15, %cst_6 [2] : vector<4x8x8xf32> to vector<4x8xf32>
    %17 = vector.shape_cast %16 : vector<4x8xf32> to vector<4x8x1xf32>
    %18 = vector.broadcast %17 : vector<4x8x1xf32> to vector<4x8x8xf32>
    %19 = arith.subf %15, %18 : vector<4x8x8xf32>
    %20 = math.exp %19 : vector<4x8x8xf32>
    %cst_7 = arith.constant dense<0.000000e+00> : vector<4x8xf32>
    %21 = vector.multi_reduction <add>, %20, %cst_7 [2] : vector<4x8x8xf32> to vector<4x8xf32>
    %22 = vector.shape_cast %21 : vector<4x8xf32> to vector<4x8x1xf32>
    %23 = tpu.reciprocal %22 {approx = true} : vector<4x8x1xf32> -> vector<4x8x1xf32>
    %24 = vector.broadcast %23 : vector<4x8x1xf32> to vector<4x8x8xf32>
    %25 = arith.mulf %20, %24 : vector<4x8x8xf32>
    %26 = arith.truncf %25 : vector<4x8x8xf32> to vector<4x8x8xbf16>
    %27 = vector.extract_strided_slice %12 {offsets = [0, 0, 0], sizes = [4, 8, 8], strides = [1, 1, 1]} : vector<4x8x32xbf16> to vector<4x8x8xbf16>
    "tpu.trace_start"() <{level = 10 : i32, message = "bqk,bkd->bqd"}> : () -> ()
    %cst_8 = arith.constant dense<0.000000e+00> : vector<4x8x8xf32>
    %28 = tpu.matmul %26, %27, %cst_8 {dimension_numbers = #tpu.dot_dimension_numbers<[2], [1], [1], [2], [0, 0, 0, 1, 1, 2], [0], [0]>} : vector<4x8x8xbf16>, vector<4x8x8xbf16>, vector<4x8x8xf32> -> vector<4x8x8xf32>
    "tpu.trace_stop"() : () -> ()
    %29 = vector.extract_strided_slice %6 {offsets = [0, 0, 8], sizes = [4, 8, 8], strides = [1, 1, 1]} : vector<4x8x64xbf16> to vector<4x8x8xbf16>
    %30 = vector.extract_strided_slice %6 {offsets = [0, 0, 40], sizes = [4, 8, 8], strides = [1, 1, 1]} : vector<4x8x64xbf16> to vector<4x8x8xbf16>
    "tpu.trace_start"() <{level = 10 : i32, message = "bqd,bkd->bqk"}> : () -> ()
    %cst_9 = arith.constant dense<0.000000e+00> : vector<4x8x8xf32>
    %31 = tpu.matmul %29, %30, %cst_9 {dimension_numbers = #tpu.dot_dimension_numbers<[2], [2], [1], [1], [0, 0, 0, 1, 1, 1], [0], [0]>} : vector<4x8x8xbf16>, vector<4x8x8xbf16>, vector<4x8x8xf32> -> vector<4x8x8xf32>
    "tpu.trace_stop"() : () -> ()
    %cst_10 = arith.constant dense<0xFF800000> : vector<4x8xf32>
    %32 = vector.multi_reduction <maximumf>, %31, %cst_10 [2] : vector<4x8x8xf32> to vector<4x8xf32>
    %33 = vector.shape_cast %32 : vector<4x8xf32> to vector<4x8x1xf32>
    %34 = vector.broadcast %33 : vector<4x8x1xf32> to vector<4x8x8xf32>
    %35 = arith.subf %31, %34 : vector<4x8x8xf32>
    %36 = math.exp %35 : vector<4x8x8xf32>
    %cst_11 = arith.constant dense<0.000000e+00> : vector<4x8xf32>
    %37 = vector.multi_reduction <add>, %36, %cst_11 [2] : vector<4x8x8xf32> to vector<4x8xf32>
    %38 = vector.shape_cast %37 : vector<4x8xf32> to vector<4x8x1xf32>
    %39 = tpu.reciprocal %38 {approx = true} : vector<4x8x1xf32> -> vector<4x8x1xf32>
    %40 = vector.broadcast %39 : vector<4x8x1xf32> to vector<4x8x8xf32>
    %41 = arith.mulf %36, %40 : vector<4x8x8xf32>
    %42 = arith.truncf %41 : vector<4x8x8xf32> to vector<4x8x8xbf16>
    %43 = vector.extract_strided_slice %12 {offsets = [0, 0, 8], sizes = [4, 8, 8], strides = [1, 1, 1]} : vector<4x8x32xbf16> to vector<4x8x8xbf16>
    "tpu.trace_start"() <{level = 10 : i32, message = "bqk,bkd->bqd"}> : () -> ()
    %cst_12 = arith.constant dense<0.000000e+00> : vector<4x8x8xf32>
    %44 = tpu.matmul %42, %43, %cst_12 {dimension_numbers = #tpu.dot_dimension_numbers<[2], [1], [1], [2], [0, 0, 0, 1, 1, 2], [0], [0]>} : vector<4x8x8xbf16>, vector<4x8x8xbf16>, vector<4x8x8xf32> -> vector<4x8x8xf32>
    "tpu.trace_stop"() : () -> ()
    %45 = vector.extract_strided_slice %6 {offsets = [0, 0, 16], sizes = [4, 8, 8], strides = [1, 1, 1]} : vector<4x8x64xbf16> to vector<4x8x8xbf16>
    %46 = vector.extract_strided_slice %6 {offsets = [0, 0, 48], sizes = [4, 8, 8], strides = [1, 1, 1]} : vector<4x8x64xbf16> to vector<4x8x8xbf16>
    "tpu.trace_start"() <{level = 10 : i32, message = "bqd,bkd->bqk"}> : () -> ()
    %cst_13 = arith.constant dense<0.000000e+00> : vector<4x8x8xf32>
    %47 = tpu.matmul %45, %46, %cst_13 {dimension_numbers = #tpu.dot_dimension_numbers<[2], [2], [1], [1], [0, 0, 0, 1, 1, 1], [0], [0]>} : vector<4x8x8xbf16>, vector<4x8x8xbf16>, vector<4x8x8xf32> -> vector<4x8x8xf32>
    "tpu.trace_stop"() : () -> ()
    %cst_14 = arith.constant dense<0xFF800000> : vector<4x8xf32>
    %48 = vector.multi_reduction <maximumf>, %47, %cst_14 [2] : vector<4x8x8xf32> to vector<4x8xf32>
    %49 = vector.shape_cast %48 : vector<4x8xf32> to vector<4x8x1xf32>
    %50 = vector.broadcast %49 : vector<4x8x1xf32> to vector<4x8x8xf32>
    %51 = arith.subf %47, %50 : vector<4x8x8xf32>
    %52 = math.exp %51 : vector<4x8x8xf32>
    %cst_15 = arith.constant dense<0.000000e+00> : vector<4x8xf32>
    %53 = vector.multi_reduction <add>, %52, %cst_15 [2] : vector<4x8x8xf32> to vector<4x8xf32>
    %54 = vector.shape_cast %53 : vector<4x8xf32> to vector<4x8x1xf32>
    %55 = tpu.reciprocal %54 {approx = true} : vector<4x8x1xf32> -> vector<4x8x1xf32>
    %56 = vector.broadcast %55 : vector<4x8x1xf32> to vector<4x8x8xf32>
    %57 = arith.mulf %52, %56 : vector<4x8x8xf32>
    %58 = arith.truncf %57 : vector<4x8x8xf32> to vector<4x8x8xbf16>
    %59 = vector.extract_strided_slice %12 {offsets = [0, 0, 16], sizes = [4, 8, 8], strides = [1, 1, 1]} : vector<4x8x32xbf16> to vector<4x8x8xbf16>
    "tpu.trace_start"() <{level = 10 : i32, message = "bqk,bkd->bqd"}> : () -> ()
    %cst_16 = arith.constant dense<0.000000e+00> : vector<4x8x8xf32>
    %60 = tpu.matmul %58, %59, %cst_16 {dimension_numbers = #tpu.dot_dimension_numbers<[2], [1], [1], [2], [0, 0, 0, 1, 1, 2], [0], [0]>} : vector<4x8x8xbf16>, vector<4x8x8xbf16>, vector<4x8x8xf32> -> vector<4x8x8xf32>
    "tpu.trace_stop"() : () -> ()
    %61 = vector.extract_strided_slice %6 {offsets = [0, 0, 24], sizes = [4, 8, 8], strides = [1, 1, 1]} : vector<4x8x64xbf16> to vector<4x8x8xbf16>
    %62 = vector.extract_strided_slice %6 {offsets = [0, 0, 56], sizes = [4, 8, 8], strides = [1, 1, 1]} : vector<4x8x64xbf16> to vector<4x8x8xbf16>
    "tpu.trace_start"() <{level = 10 : i32, message = "bqd,bkd->bqk"}> : () -> ()
    %cst_17 = arith.constant dense<0.000000e+00> : vector<4x8x8xf32>
    %63 = tpu.matmul %61, %62, %cst_17 {dimension_numbers = #tpu.dot_dimension_numbers<[2], [2], [1], [1], [0, 0, 0, 1, 1, 1], [0], [0]>} : vector<4x8x8xbf16>, vector<4x8x8xbf16>, vector<4x8x8xf32> -> vector<4x8x8xf32>
    "tpu.trace_stop"() : () -> ()
    %cst_18 = arith.constant dense<0xFF800000> : vector<4x8xf32>
    %64 = vector.multi_reduction <maximumf>, %63, %cst_18 [2] : vector<4x8x8xf32> to vector<4x8xf32>
    %65 = vector.shape_cast %64 : vector<4x8xf32> to vector<4x8x1xf32>
    %66 = vector.broadcast %65 : vector<4x8x1xf32> to vector<4x8x8xf32>
    %67 = arith.subf %63, %66 : vector<4x8x8xf32>
    %68 = math.exp %67 : vector<4x8x8xf32>
    %cst_19 = arith.constant dense<0.000000e+00> : vector<4x8xf32>
    %69 = vector.multi_reduction <add>, %68, %cst_19 [2] : vector<4x8x8xf32> to vector<4x8xf32>
    %70 = vector.shape_cast %69 : vector<4x8xf32> to vector<4x8x1xf32>
    %71 = tpu.reciprocal %70 {approx = true} : vector<4x8x1xf32> -> vector<4x8x1xf32>
    %72 = vector.broadcast %71 : vector<4x8x1xf32> to vector<4x8x8xf32>
    %73 = arith.mulf %68, %72 : vector<4x8x8xf32>
    %74 = arith.truncf %73 : vector<4x8x8xf32> to vector<4x8x8xbf16>
    %75 = vector.extract_strided_slice %12 {offsets = [0, 0, 24], sizes = [4, 8, 8], strides = [1, 1, 1]} : vector<4x8x32xbf16> to vector<4x8x8xbf16>
    "tpu.trace_start"() <{level = 10 : i32, message = "bqk,bkd->bqd"}> : () -> ()
    %cst_20 = arith.constant dense<0.000000e+00> : vector<4x8x8xf32>
    %76 = tpu.matmul %74, %75, %cst_20 {dimension_numbers = #tpu.dot_dimension_numbers<[2], [1], [1], [2], [0, 0, 0, 1, 1, 2], [0], [0]>} : vector<4x8x8xbf16>, vector<4x8x8xbf16>, vector<4x8x8xf32> -> vector<4x8x8xf32>
    "tpu.trace_stop"() : () -> ()
    %77 = tpu.concatenate %28, %44, %60, %76 in 2 : vector<4x8x8xf32>, vector<4x8x8xf32>, vector<4x8x8xf32>, vector<4x8x8xf32> -> vector<4x8x32xf32>
    %78 = vector.shape_cast %77 : vector<4x8x32xf32> to vector<32x32xf32>
    %79 = arith.truncf %78 : vector<32x32xf32> to vector<32x32xbf16>
    %c0_21 = arith.constant 0 : index
    %c0_22 = arith.constant 0 : index
    %80 = vector.load %arg5[%c0_21, %c0_22] : memref<32x32xbf16, #tpu.memory_space<vmem>>, vector<32x32xbf16>
    %cst_23 = arith.constant dense<0.000000e+00> : vector<32x32xf32>
    %81 = tpu.matmul %79, %80, %cst_23 {dimension_numbers = #tpu.dot_dimension_numbers<[1], [0], [0], [1], [0, 0, 1, 1], [], []>} : vector<32x32xbf16>, vector<32x32xbf16>, vector<32x32xf32> -> vector<32x32xf32>
    %c0_24 = arith.constant 0 : index
    %c0_25 = arith.constant 0 : index
    %82 = vector.load %arg6[%c0_24, %c0_25] : memref<1x32xf32, #tpu.memory_space<vmem>>, vector<1x32xf32>
    %83 = vector.broadcast %82 : vector<1x32xf32> to vector<32x32xf32>
    %84 = arith.addf %81, %83 : vector<32x32xf32>
    %85 = vector.shape_cast %0 : vector<32x32xf32> to vector<4x8x32xf32>
    %c0_26 = arith.constant 0 : index
    %c0_27 = arith.constant 0 : index
    %86 = vector.load %arg2[%c0_26, %c0_27] : memref<8x32xf32, #tpu.memory_space<vmem>>, vector<8x32xf32>
    %87 = vector.shape_cast %86 : vector<8x32xf32> to vector<1x8x32xf32>
    %88 = vector.broadcast %87 : vector<1x8x32xf32> to vector<4x8x32xf32>
    %89 = arith.addf %85, %88 : vector<4x8x32xf32>
    %90 = vector.shape_cast %89 : vector<4x8x32xf32> to vector<32x32xf32>
    %91 = arith.addf %84, %90 : vector<32x32xf32>
    %c0_28 = arith.constant 0 : index
    %c0_29 = arith.constant 0 : index
    %92 = vector.load %arg7[%c0_28, %c0_29] : memref<1x32xf32, #tpu.memory_space<vmem>>, vector<1x32xf32>
    %c0_30 = arith.constant 0 : index
    %c0_31 = arith.constant 0 : index
    %93 = vector.load %arg8[%c0_30, %c0_31] : memref<1x32xf32, #tpu.memory_space<vmem>>, vector<1x32xf32>
    %cst_32 = arith.constant dense<0.000000e+00> : vector<32xf32>
    %94 = vector.multi_reduction <add>, %91, %cst_32 [1] : vector<32x32xf32> to vector<32xf32>
    %95 = vector.shape_cast %94 : vector<32xf32> to vector<32x1xf32>
    %cst_33 = arith.constant 3.200000e+01 : f32
    %96 = vector.broadcast %cst_33 : f32 to vector<32x1xf32>
    %97 = arith.divf %95, %96 : vector<32x1xf32>
    %98 = vector.broadcast %97 : vector<32x1xf32> to vector<32x32xf32>
    %99 = arith.subf %91, %98 : vector<32x32xf32>
    %100 = arith.mulf %99, %99 : vector<32x32xf32>
    %cst_34 = arith.constant dense<0.000000e+00> : vector<32xf32>
    %101 = vector.multi_reduction <add>, %100, %cst_34 [1] : vector<32x32xf32> to vector<32xf32>
    %102 = vector.shape_cast %101 : vector<32xf32> to vector<32x1xf32>
    %cst_35 = arith.constant 3.200000e+01 : f32
    %103 = vector.broadcast %cst_35 : f32 to vector<32x1xf32>
    %104 = arith.divf %102, %103 : vector<32x1xf32>
    %105 = vector.broadcast %97 : vector<32x1xf32> to vector<32x32xf32>
    %106 = arith.subf %91, %105 : vector<32x32xf32>
    %cst_36 = arith.constant 9.99999974E-6 : f32
    %107 = vector.broadcast %cst_36 : f32 to vector<32x1xf32>
    %108 = arith.addf %104, %107 : vector<32x1xf32>
    %109 = math.rsqrt %108 : vector<32x1xf32>
    %110 = vector.broadcast %109 : vector<32x1xf32> to vector<32x32xf32>
    %111 = arith.mulf %106, %110 : vector<32x32xf32>
    %112 = vector.broadcast %92 : vector<1x32xf32> to vector<32x32xf32>
    %113 = arith.mulf %111, %112 : vector<32x32xf32>
    %114 = vector.broadcast %93 : vector<1x32xf32> to vector<32x32xf32>
    %115 = arith.addf %113, %114 : vector<32x32xf32>
    %116 = arith.truncf %115 : vector<32x32xf32> to vector<32x32xbf16>
    %c0_37 = arith.constant 0 : index
    %c0_38 = arith.constant 0 : index
    %117 = vector.load %arg11[%c0_37, %c0_38] : memref<32x128xbf16, #tpu.memory_space<vmem>>, vector<32x128xbf16>
    %cst_39 = arith.constant dense<0.000000e+00> : vector<32x128xf32>
    %118 = tpu.matmul %116, %117, %cst_39 {dimension_numbers = #tpu.dot_dimension_numbers<[1], [0], [0], [1], [0, 0, 1, 1], [], []>} : vector<32x32xbf16>, vector<32x128xbf16>, vector<32x128xf32> -> vector<32x128xf32>
    %c0_40 = arith.constant 0 : index
    %c0_41 = arith.constant 0 : index
    %119 = vector.load %arg12[%c0_40, %c0_41] : memref<1x128xf32, #tpu.memory_space<vmem>>, vector<1x128xf32>
    %120 = vector.broadcast %119 : vector<1x128xf32> to vector<32x128xf32>
    %121 = arith.addf %118, %120 : vector<32x128xf32>
    %cst_42 = arith.constant 0.000000e+00 : f32
    %122 = vector.broadcast %cst_42 : f32 to vector<32x128xf32>
    %123 = arith.maximumf %121, %122 : vector<32x128xf32>
    %124 = arith.truncf %123 : vector<32x128xf32> to vector<32x128xbf16>
    %c0_43 = arith.constant 0 : index
    %c0_44 = arith.constant 0 : index
    %125 = vector.load %arg13[%c0_43, %c0_44] : memref<128x32xbf16, #tpu.memory_space<vmem>>, vector<128x32xbf16>
    %cst_45 = arith.constant dense<0.000000e+00> : vector<32x32xf32>
    %126 = tpu.matmul %124, %125, %cst_45 {dimension_numbers = #tpu.dot_dimension_numbers<[1], [0], [0], [1], [0, 0, 1, 1], [], []>} : vector<32x128xbf16>, vector<128x32xbf16>, vector<32x32xf32> -> vector<32x32xf32>
    %c0_46 = arith.constant 0 : index
    %c0_47 = arith.constant 0 : index
    %127 = vector.load %arg14[%c0_46, %c0_47] : memref<1x32xf32, #tpu.memory_space<vmem>>, vector<1x32xf32>
    %128 = vector.broadcast %127 : vector<1x32xf32> to vector<32x32xf32>
    %129 = arith.addf %126, %128 : vector<32x32xf32>
    %130 = arith.addf %129, %115 : vector<32x32xf32>
    %c0_48 = arith.constant 0 : index
    %c0_49 = arith.constant 0 : index
    %131 = vector.load %arg9[%c0_48, %c0_49] : memref<1x32xf32, #tpu.memory_space<vmem>>, vector<1x32xf32>
    %c0_50 = arith.constant 0 : index
    %c0_51 = arith.constant 0 : index
    %132 = vector.load %arg10[%c0_50, %c0_51] : memref<1x32xf32, #tpu.memory_space<vmem>>, vector<1x32xf32>
    %cst_52 = arith.constant dense<0.000000e+00> : vector<32xf32>
    %133 = vector.multi_reduction <add>, %130, %cst_52 [1] : vector<32x32xf32> to vector<32xf32>
    %134 = vector.shape_cast %133 : vector<32xf32> to vector<32x1xf32>
    %cst_53 = arith.constant 3.200000e+01 : f32
    %135 = vector.broadcast %cst_53 : f32 to vector<32x1xf32>
    %136 = arith.divf %134, %135 : vector<32x1xf32>
    %137 = vector.broadcast %136 : vector<32x1xf32> to vector<32x32xf32>
    %138 = arith.subf %130, %137 : vector<32x32xf32>
    %139 = arith.mulf %138, %138 : vector<32x32xf32>
    %cst_54 = arith.constant dense<0.000000e+00> : vector<32xf32>
    %140 = vector.multi_reduction <add>, %139, %cst_54 [1] : vector<32x32xf32> to vector<32xf32>
    %141 = vector.shape_cast %140 : vector<32xf32> to vector<32x1xf32>
    %cst_55 = arith.constant 3.200000e+01 : f32
    %142 = vector.broadcast %cst_55 : f32 to vector<32x1xf32>
    %143 = arith.divf %141, %142 : vector<32x1xf32>
    %144 = vector.broadcast %136 : vector<32x1xf32> to vector<32x32xf32>
    %145 = arith.subf %130, %144 : vector<32x32xf32>
    %cst_56 = arith.constant 9.99999974E-6 : f32
    %146 = vector.broadcast %cst_56 : f32 to vector<32x1xf32>
    %147 = arith.addf %143, %146 : vector<32x1xf32>
    %148 = math.rsqrt %147 : vector<32x1xf32>
    %149 = vector.broadcast %148 : vector<32x1xf32> to vector<32x32xf32>
    %150 = arith.mulf %145, %149 : vector<32x32xf32>
    %151 = vector.broadcast %131 : vector<1x32xf32> to vector<32x32xf32>
    %152 = arith.mulf %150, %151 : vector<32x32xf32>
    %153 = vector.broadcast %132 : vector<1x32xf32> to vector<32x32xf32>
    %154 = arith.addf %152, %153 : vector<32x32xf32>
    %155 = arith.addf %154, %0 : vector<32x32xf32>
    %c0_57 = arith.constant 0 : index
    %c0_58 = arith.constant 0 : index
    %156 = vector.load %arg15[%c0_57, %c0_58] : memref<1x32xf32, #tpu.memory_space<vmem>>, vector<1x32xf32>
    %c0_59 = arith.constant 0 : index
    %c0_60 = arith.constant 0 : index
    %157 = vector.load %arg16[%c0_59, %c0_60] : memref<1x32xf32, #tpu.memory_space<vmem>>, vector<1x32xf32>
    %cst_61 = arith.constant dense<0.000000e+00> : vector<32xf32>
    %158 = vector.multi_reduction <add>, %155, %cst_61 [1] : vector<32x32xf32> to vector<32xf32>
    %159 = vector.shape_cast %158 : vector<32xf32> to vector<32x1xf32>
    %cst_62 = arith.constant 3.200000e+01 : f32
    %160 = vector.broadcast %cst_62 : f32 to vector<32x1xf32>
    %161 = arith.divf %159, %160 : vector<32x1xf32>
    %162 = vector.broadcast %161 : vector<32x1xf32> to vector<32x32xf32>
    %163 = arith.subf %155, %162 : vector<32x32xf32>
    %164 = arith.mulf %163, %163 : vector<32x32xf32>
    %cst_63 = arith.constant dense<0.000000e+00> : vector<32xf32>
    %165 = vector.multi_reduction <add>, %164, %cst_63 [1] : vector<32x32xf32> to vector<32xf32>
    %166 = vector.shape_cast %165 : vector<32xf32> to vector<32x1xf32>
    %cst_64 = arith.constant 3.200000e+01 : f32
    %167 = vector.broadcast %cst_64 : f32 to vector<32x1xf32>
    %168 = arith.divf %166, %167 : vector<32x1xf32>
    %169 = vector.broadcast %161 : vector<32x1xf32> to vector<32x32xf32>
    %170 = arith.subf %155, %169 : vector<32x32xf32>
    %cst_65 = arith.constant 9.99999974E-6 : f32
    %171 = vector.broadcast %cst_65 : f32 to vector<32x1xf32>
    %172 = arith.addf %168, %171 : vector<32x1xf32>
    %173 = math.rsqrt %172 : vector<32x1xf32>
    %174 = vector.broadcast %173 : vector<32x1xf32> to vector<32x32xf32>
    %175 = arith.mulf %170, %174 : vector<32x32xf32>
    %176 = vector.broadcast %156 : vector<1x32xf32> to vector<32x32xf32>
    %177 = arith.mulf %175, %176 : vector<32x32xf32>
    %178 = vector.broadcast %157 : vector<1x32xf32> to vector<32x32xf32>
    %179 = arith.addf %177, %178 : vector<32x32xf32>
    %c0_66 = arith.constant 0 : index
    %c0_67 = arith.constant 0 : index
    %180 = vector.load %arg17[%c0_66, %c0_67] : memref<32x32xf32, #tpu.memory_space<vmem>>, vector<32x32xf32>
    tpu.vector_store %arg17[%c0_66, %c0_67], %179 {strides = array<i32>} : memref<32x32xf32, #tpu.memory_space<vmem>>, vector<32x32xf32>,
    return
  }
  func.func @transform_0(%arg0: i32) -> (i32, i32) {
    %c0_i32 = arith.constant 0 : i32
    %c0_i32_0 = arith.constant 0 : i32
    return %arg0, %c0_i32 : i32, i32
  }
  func.func @transform_1(%arg0: i32) -> (i32, i32) {
    %c0_i32 = arith.constant 0 : i32
    %c0_i32_0 = arith.constant 0 : i32
    %c0_i32_1 = arith.constant 0 : i32
    return %c0_i32, %c0_i32_0 : i32, i32
  }
  func.func @transform_2(%arg0: i32) -> (i32, i32) {
    %c0_i32 = arith.constant 0 : i32
    %c0_i32_0 = arith.constant 0 : i32
    %c0_i32_1 = arith.constant 0 : i32
    return %c0_i32, %c0_i32_0 : i32, i32
  }
  func.func @transform_3(%arg0: i32) -> (i32, i32) {
    %c0_i32 = arith.constant 0 : i32
    %c0_i32_0 = arith.constant 0 : i32
    %c0_i32_1 = arith.constant 0 : i32
    return %c0_i32, %c0_i32_0 : i32, i32
  }
  func.func @transform_4(%arg0: i32) -> (i32, i32) {
    %c0_i32 = arith.constant 0 : i32
    %c0_i32_0 = arith.constant 0 : i32
    %c0_i32_1 = arith.constant 0 : i32
    return %c0_i32, %c0_i32_0 : i32, i32
  }
  func.func @transform_5(%arg0: i32) -> (i32, i32) {
    %c0_i32 = arith.constant 0 : i32
    %c0_i32_0 = arith.constant 0 : i32
    %c0_i32_1 = arith.constant 0 : i32
    return %c0_i32, %c0_i32_0 : i32, i32
  }
  func.func @transform_6(%arg0: i32) -> (i32, i32) {
    %c0_i32 = arith.constant 0 : i32
    %c0_i32_0 = arith.constant 0 : i32
    %c0_i32_1 = arith.constant 0 : i32
    return %c0_i32, %c0_i32_0 : i32, i32
  }
  func.func @transform_7(%arg0: i32) -> (i32, i32) {
    %c0_i32 = arith.constant 0 : i32
    %c0_i32_0 = arith.constant 0 : i32
    %c0_i32_1 = arith.constant 0 : i32
    return %c0_i32, %c0_i32_0 : i32, i32
  }
  func.func @transform_8(%arg0: i32) -> (i32, i32) {
    %c0_i32 = arith.constant 0 : i32
    %c0_i32_0 = arith.constant 0 : i32
    %c0_i32_1 = arith.constant 0 : i32
    return %c0_i32, %c0_i32_0 : i32, i32
  }
  func.func @transform_9(%arg0: i32) -> (i32, i32) {
    %c0_i32 = arith.constant 0 : i32
    %c0_i32_0 = arith.constant 0 : i32
    %c0_i32_1 = arith.constant 0 : i32
    return %c0_i32, %c0_i32_0 : i32, i32
  }
  func.func @transform_10(%arg0: i32) -> (i32, i32) {
    %c0_i32 = arith.constant 0 : i32
    %c0_i32_0 = arith.constant 0 : i32
    %c0_i32_1 = arith.constant 0 : i32
    return %c0_i32, %c0_i32_0 : i32, i32
  }
  func.func @transform_11(%arg0: i32) -> (i32, i32) {
    %c0_i32 = arith.constant 0 : i32
    %c0_i32_0 = arith.constant 0 : i32
    %c0_i32_1 = arith.constant 0 : i32
    return %c0_i32, %c0_i32_0 : i32, i32
  }
  func.func @transform_12(%arg0: i32) -> (i32, i32) {
    %c0_i32 = arith.constant 0 : i32
    %c0_i32_0 = arith.constant 0 : i32
    %c0_i32_1 = arith.constant 0 : i32
    return %c0_i32, %c0_i32_0 : i32, i32
  }
  func.func @transform_13(%arg0: i32) -> (i32, i32) {
    %c0_i32 = arith.constant 0 : i32
    %c0_i32_0 = arith.constant 0 : i32
    %c0_i32_1 = arith.constant 0 : i32
    return %c0_i32, %c0_i32_0 : i32, i32
  }
  func.func @transform_14(%arg0: i32) -> (i32, i32) {
    %c0_i32 = arith.constant 0 : i32
    %c0_i32_0 = arith.constant 0 : i32
    %c0_i32_1 = arith.constant 0 : i32
    return %c0_i32, %c0_i32_0 : i32, i32
  }
  func.func @transform_15(%arg0: i32) -> (i32, i32) {
    %c0_i32 = arith.constant 0 : i32
    %c0_i32_0 = arith.constant 0 : i32
    %c0_i32_1 = arith.constant 0 : i32
    return %c0_i32, %c0_i32_0 : i32, i32
  }
  func.func @transform_16(%arg0: i32) -> (i32, i32) {
    %c0_i32 = arith.constant 0 : i32
    %c0_i32_0 = arith.constant 0 : i32
    return %arg0, %c0_i32 : i32, i32
  }
}

module attributes {stable_mosaic.version = 11 : i64} {
  func.func @st_block_kernel(%arg0: i32, %arg1: memref<32x32xf32, #tpu.memory_space<vmem>>, %arg2: memref<8x32xf32, #tpu.memory_space<vmem>>, %arg3: memref<8x32xf32, #tpu.memory_space<vmem>>, %arg4: memref<32x96xbf16, #tpu.memory_space<vmem>>, %arg5: memref<32x32xbf16, #tpu.memory_space<vmem>>, %arg6: memref<1x32xf32, #tpu.memory_space<vmem>>, %arg7: memref<1x32xf32, #tpu.memory_space<vmem>>, %arg8: memref<1x32xf32, #tpu.memory_space<vmem>>, %arg9: memref<1x32xf32, #tpu.memory_space<vmem>>, %arg10: memref<1x32xf32, #tpu.memory_space<vmem>>, %arg11: memref<32x128xbf16, #tpu.memory_space<vmem>>, %arg12: memref<1x128xf32, #tpu.memory_space<vmem>>, %arg13: memref<128x32xbf16, #tpu.memory_space<vmem>>, %arg14: memref<1x32xf32, #tpu.memory_space<vmem>>, %arg15: memref<1x32xf32, #tpu.memory_space<vmem>>, %arg16: memref<1x32xf32, #tpu.memory_space<vmem>>, %arg17: memref<32x32xf32, #tpu.memory_space<vmem>>) attributes {dimension_semantics = [#tpu.dimension_semantics<parallel>], iteration_bounds = array<i64: 2>, scalar_prefetch = 0 : i64, scratch_operands = 0 : i64, tpu.core_type = #tpu.core_type<tc>, window_params = [{transform_indices = @transform_0, window_bounds = array<i64: 32, 32>}, {pipeline_mode = #tpu.pipeline_mode<synchronous>, transform_indices = @transform_1, window_bounds = array<i64: 8, 32>}, {pipeline_mode = #tpu.pipeline_mode<synchronous>, transform_indices = @transform_2, window_bounds = array<i64: 8, 32>}, {pipeline_mode = #tpu.pipeline_mode<synchronous>, transform_indices = @transform_3, window_bounds = array<i64: 32, 96>}, {pipeline_mode = #tpu.pipeline_mode<synchronous>, transform_indices = @transform_4, window_bounds = array<i64: 32, 32>}, {pipeline_mode = #tpu.pipeline_mode<synchronous>, transform_indices = @transform_5, window_bounds = array<i64: 1, 32>}, {pipeline_mode = #tpu.pipeline_mode<synchronous>, transform_indices = @transform_6, window_bounds = array<i64: 1, 32>}, {pipeline_mode = #tpu.pipeline_mode<synchronous>, transform_indices = @transform_7, window_bounds = array<i64: 1, 32>}, {pipeline_mode = #tpu.pipeline_mode<synchronous>, transform_indices = @transform_8, window_bounds = array<i64: 1, 32>}, {pipeline_mode = #tpu.pipeline_mode<synchronous>, transform_indices = @transform_9, window_bounds = array<i64: 1, 32>}, {pipeline_mode = #tpu.pipeline_mode<synchronous>, transform_indices = @transform_10, window_bounds = array<i64: 32, 128>}, {pipeline_mode = #tpu.pipeline_mode<synchronous>, transform_indices = @transform_11, window_bounds = array<i64: 1, 128>}, {pipeline_mode = #tpu.pipeline_mode<synchronous>, transform_indices = @transform_12, window_bounds = array<i64: 128, 32>}, {pipeline_mode = #tpu.pipeline_mode<synchronous>, transform_indices = @transform_13, window_bounds = array<i64: 1, 32>}, {pipeline_mode = #tpu.pipeline_mode<synchronous>, transform_indices = @transform_14, window_bounds = array<i64: 1, 32>}, {pipeline_mode = #tpu.pipeline_mode<synchronous>, transform_indices = @transform_15, window_bounds = array<i64: 1, 32>}, {transform_indices = @transform_16, window_bounds = array<i64: 32, 32>}]} {
    %c0 = arith.constant 0 : index
    %c0_0 = arith.constant 0 : index
    %0 = vector.load %arg1[%c0, %c0_0] : memref<32x32xf32, #tpu.memory_space<vmem>>, vector<32x32xf32>
    %1 = arith.truncf %0 : vector<32x32xf32> to vector<32x32xbf16>
    %c0_1 = arith.constant 0 : index
    %c0_2 = arith.constant 0 : index
    %2 = vector.load %arg4[%c0_1, %c0_2] : memref<32x96xbf16, #tpu.memory_space<vmem>>, vector<32x96xbf16>
    %cst = arith.constant dense<0.000000e+00> : vector<32x96xf32>
    %3 = tpu.matmul %1, %2, %cst {dimension_numbers = #tpu.dot_dimension_numbers<[1], [0], [0], [1], [0, 0, 1, 1], [], []>} : vector<32x32xbf16>, vector<32x96xbf16>, vector<32x96xf32> -> vector<32x96xf32>
    %4 = vector.shape_cast %3 : vector<32x96xf32> to vector<4x8x96xf32>
    %5 = vector.extract_strided_slice %4 {offsets = [0, 0, 0], sizes = [4, 8, 64], strides = [1, 1, 1]} : vector<4x8x96xf32> to vector<4x8x64xf32>
    %6 = arith.truncf %5 : vector<4x8x64xf32> to vector<4x8x64xbf16>
    %7 = vector.extract_strided_slice %4 {offsets = [0, 0, 64], sizes = [4, 8, 32], strides = [1, 1, 1]} : vector<4x8x96xf32> to vector<4x8x32xf32>
    %c0_3 = arith.constant 0 : index
    %c0_4 = arith.constant 0 : index
    %8 = vector.load %arg3[%c0_3, %c0_4] : memref<8x32xf32, #tpu.memory_space<vmem>>, vector<8x32xf32>
    %9 = vector.shape_cast %8 : vector<8x32xf32> to vector<1x8x32xf32>
    %10 = vector.broadcast %9 : vector<1x8x32xf32> to vector<4x8x32xf32>
    %11 = arith.addf %7, %10 : vector<4x8x32xf32>
    %12 = arith.truncf %11 : vector<4x8x32xf32> to vector<4x8x32xbf16>
    %13 = vector.extract_strided_slice %6 {offsets = [0, 0, 0], sizes = [4, 8, 8], strides = [1, 1, 1]} : vector<4x8x64xbf16> to vector<4x8x8xbf16>
    %14 = vector.extract_strided_slice %6 {offsets = [0, 0, 32], sizes = [4, 8, 8], strides = [1, 1, 1]} : vector<4x8x64xbf16> to vector<4x8x8xbf16>
    "tpu.trace_start"() <{level = 10 : i32, message = "bqd,bkd->bqk"}> : () -> ()
    %cst_5 = arith.constant dense<0.000000e+00> : vector<4x8x8xf32>
    %15 = tpu.matmul %13, %14, %cst_5 {dimension_numbers = #tpu.dot_dimension_numbers<[2], [2], [1], [1], [0, 0, 0, 1, 1, 1], [0], [0]>} : vector<4x8x8xbf16>, vector<4x8x8xbf16>, vector<4x8x8xf32> -> vector<4x8x8xf32>
    "tpu.trace_stop"() : () -> ()
    %cst_6 = arith.constant dense<0xFF800000> : vector<4x8xf32>
    %16 = vector.multi_reduction <maximumf>, %15, %cst_6 [2] : vector<4x8x8xf32> to vector<4x8xf32>
    %17 = vector.shape_cast %16 : vector<4x8xf32> to vector<4x8x1xf32>
    %18 = vector.broadcast %17 : vector<4x8x1xf32> to vector<4x8x8xf32>
    %19 = arith.subf %15, %18 : vector<4x8x8xf32>
    %20 = math.exp %19 : vector<4x8x8xf32>
    %cst_7 = arith.constant dense<0.000000e+00> : vector<4x8xf32>
    %21 = vector.multi_reduction <add>, %20, %cst_7 [2] : vector<4x8x8xf32> to vector<4x8xf32>
    %22 = vector.shape_cast %21 : vector<4x8xf32> to vector<4x8x1xf32>
    %23 = tpu.reciprocal %22 {approx = true} : vector<4x8x1xf32> -> vector<4x8x1xf32>
    %24 = vector.broadcast %23 : vector<4x8x1xf32> to vector<4x8x8xf32>
    %25 = arith.mulf %20, %24 : vector<4x8x8xf32>
    %26 = arith.truncf %25 : vector<4x8x8xf32> to vector<4x8x8xbf16>
    %27 = vector.extract_strided_slice %12 {offsets = [0, 0, 0], sizes = [4, 8, 8], strides = [1, 1, 1]} : vector<4x8x32xbf16> to vector<4x8x8xbf16>
    "tpu.trace_start"() <{level = 10 : i32, message = "bqk,bkd->bqd"}> : () -> ()
    %cst_8 = arith.constant dense<0.000000e+00> : vector<4x8x8xf32>
    %28 = tpu.matmul %26, %27, %cst_8 {dimension_numbers = #tpu.dot_dimension_numbers<[2], [1], [1], [2], [0, 0, 0, 1, 1, 2], [0], [0]>} : vector<4x8x8xbf16>, vector<4x8x8xbf16>, vector<4x8x8xf32> -> vector<4x8x8xf32>
    "tpu.trace_stop"() : () -> ()
    %29 = vector.extract_strided_slice %6 {offsets = [0, 0, 8], sizes = [4, 8, 8], strides = [1, 1, 1]} : vector<4x8x64xbf16> to vector<4x8x8xbf16>
    %30 = vector.extract_strided_slice %6 {offsets = [0, 0, 40], sizes = [4, 8, 8], strides = [1, 1, 1]} : vector<4x8x64xbf16> to vector<4x8x8xbf16>
    "tpu.trace_start"() <{level = 10 : i32, message = "bqd,bkd->bqk"}> : () -> ()
    %cst_9 = arith.constant dense<0.000000e+00> : vector<4x8x8xf32>
    %31 = tpu.matmul %29, %30, %cst_9 {dimension_numbers = #tpu.dot_dimension_numbers<[2], [2], [1], [1], [0, 0, 0, 1, 1, 1], [0], [0]>} : vector<4x8x8xbf16>, vector<4x8x8xbf16>, vector<4x8x8xf32> -> vector<4x8x8xf32>
    "tpu.trace_stop"() : () -> ()
    %cst_10 = arith.constant dense<0xFF800000> : vector<4x8xf32>
    %32 = vector.multi_reduction <maximumf>, %31, %cst_10 [2] : vector<4x8x8xf32> to vector<4x8xf32>
    %33 = vector.shape_cast %32 : vector<4x8xf32> to vector<4x8x1xf32>
    %34 = vector.broadcast %33 : vector<4x8x1xf32> to vector<4x8x8xf32>
    %35 = arith.subf %31, %34 : vector<4x8x8xf32>
    %36 = math.exp %35 : vector<4x8x8xf32>
    %cst_11 = arith.constant dense<0.000000e+00> : vector<4x8xf32>
    %37 = vector.multi_reduction <add>, %36, %cst_11 [2] : vector<4x8x8xf32> to vector<4x8xf32>
    %38 = vector.shape_cast %37 : vector<4x8xf32> to vector<4x8x1xf32>
    %39 = tpu.reciprocal %38 {approx = true} : vector<4x8x1xf32> -> vector<4x8x1xf32>
    %40 = vector.broadcast %39 : vector<4x8x1xf32> to vector<4x8x8xf32>
    %41 = arith.mulf %36, %40 : vector<4x8x8xf32>
    %42 = arith.truncf %41 : vector<4x8x8xf32> to vector<4x8x8xbf16>
    %43 = vector.extract_strided_slice %12 {offsets = [0, 0, 8], sizes = [4, 8, 8], strides = [1, 1, 1]} : vector<4x8x32xbf16> to vector<4x8x8xbf16>
    "tpu.trace_start"() <{level = 10 : i32, message = "bqk,bkd->bqd"}> : () -> ()
    %cst_12 = arith.constant dense<0.000000e+00> : vector<4x8x8xf32>
    %44 = tpu.matmul %42, %43, %cst_12 {dimension_numbers = #tpu.dot_dimension_numbers<[2], [1], [1], [2], [0, 0, 0, 1, 1, 2], [0], [0]>} : vector<4x8x8xbf16>, vector<4x8x8xbf16>, vector<4x8x8xf32> -> vector<4x8x8xf32>
    "tpu.trace_stop"() : () -> ()
    %45 = vector.extract_strided_slice %6 {offsets = [0, 0, 16], sizes = [4, 8, 8], strides = [1, 1, 1]} : vector<4x8x64xbf16> to vector<4x8x8xbf16>
    %46 = vector.extract_strided_slice %6 {offsets = [0, 0, 48], sizes = [4, 8, 8], strides = [1, 1, 1]} : vector<4x8x64xbf16> to vector<4x8x8xbf16>
    "tpu.trace_start"() <{level = 10 : i32, message = "bqd,bkd->bqk"}> : () -> ()
    %cst_13 = arith.constant dense<0.000000e+00> : vector<4x8x8xf32>
    %47 = tpu.matmul %45, %46, %cst_13 {dimension_numbers = #tpu.dot_dimension_numbers<[2], [2], [1], [1], [0, 0, 0, 1, 1, 1], [0], [0]>} : vector<4x8x8xbf16>, vector<4x8x8xbf16>, vector<4x8x8xf32> -> vector<4x8x8xf32>
    "tpu.trace_stop"() : () -> ()
    %cst_14 = arith.constant dense<0xFF800000> : vector<4x8xf32>
    %48 = vector.multi_reduction <maximumf>, %47, %cst_14 [2] : vector<4x8x8xf32> to vector<4x8xf32>
    %49 = vector.shape_cast %48 : vector<4x8xf32> to vector<4x8x1xf32>
    %50 = vector.broadcast %49 : vector<4x8x1xf32> to vector<4x8x8xf32>
    %51 = arith.subf %47, %50 : vector<4x8x8xf32>
    %52 = math.exp %51 : vector<4x8x8xf32>
    %cst_15 = arith.constant dense<0.000000e+00> : vector<4x8xf32>
    %53 = vector.multi_reduction <add>, %52, %cst_15 [2] : vector<4x8x8xf32> to vector<4x8xf32>
    %54 = vector.shape_cast %53 : vector<4x8xf32> to vector<4x8x1xf32>
    %55 = tpu.reciprocal %54 {approx = true} : vector<4x8x1xf32> -> vector<4x8x1xf32>
    %56 = vector.broadcast %55 : vector<4x8x1xf32> to vector<4x8x8xf32>
    %57 = arith.mulf %52, %56 : vector<4x8x8xf32>
    %58 = arith.truncf %57 : vector<4x8x8xf32> to vector<4x8x8xbf16>
    %59 = vector.extract_strided_slice %12 {offsets = [0, 0, 16], sizes = [4, 8, 8], strides = [1, 1, 1]} : vector<4x8x32xbf16> to vector<4x8x8xbf16>
    "tpu.trace_start"() <{level = 10 : i32, message = "bqk,bkd->bqd"}> : () -> ()
    %cst_16 = arith.constant dense<0.000000e+00> : vector<4x8x8xf32>
    %60 = tpu.matmul %58, %59, %cst_16 {dimension_numbers = #tpu.dot_dimension_numbers<[2], [1], [1], [2], [0, 0, 0, 1, 1, 2], [0], [0]>} : vector<4x8x8xbf16>, vector<4x8x8xbf16>, vector<4x8x8xf32> -> vector<4x8x8xf32>
    "tpu.trace_stop"() : () -> ()
    %61 = vector.extract_strided_slice %6 {offsets = [0, 0, 24], sizes = [4, 8, 8], strides = [1, 1, 1]} : vector<4x8x64xbf16> to vector<4x8x8xbf16>
    %62 = vector.extract_strided_slice %6 {offsets = [0, 0, 56], sizes = [4, 8, 8], strides = [1, 1, 1]} : vector<4x8x64xbf16> to vector<4x8x8xbf16>
    "tpu.trace_start"() <{level = 10 : i32, message = "bqd,bkd->bqk"}> : () -> ()
    %cst_17 = arith.constant dense<0.000000e+00> : vector<4x8x8xf32>
    %63 = tpu.matmul %61, %62, %cst_17 {dimension_numbers = #tpu.dot_dimension_numbers<[2], [2], [1], [1], [0, 0, 0, 1, 1, 1], [0], [0]>} : vector<4x8x8xbf16>, vector<4x8x8xbf16>, vector<4x8x8xf32> -> vector<4x8x8xf32>
    "tpu.trace_stop"() : () -> ()
    %cst_18 = arith.constant dense<0xFF800000> : vector<4x8xf32>
    %64 = vector.multi_reduction <maximumf>, %63, %cst_18 [2] : vector<4x8x8xf32> to vector<4x8xf32>
    %65 = vector.shape_cast %64 : vector<4x8xf32> to vector<4x8x1xf32>
    %66 = vector.broadcast %65 : vector<4x8x1xf32> to vector<4x8x8xf32>
    %67 = arith.subf %63, %66 : vector<4x8x8xf32>
    %68 = math.exp %67 : vector<4x8x8xf32>
    %cst_19 = arith.constant dense<0.000000e+00> : vector<4x8xf32>
    %69 = vector.multi_reduction <add>, %68, %cst_19 [2] : vector<4x8x8xf32> to vector<4x8xf32>
    %70 = vector.shape_cast %69 : vector<4x8xf32> to vector<4x8x1xf32>
    %71 = tpu.reciprocal %70 {approx = true} : vector<4x8x1xf32> -> vector<4x8x1xf32>
    %72 = vector.broadcast %71 : vector<4x8x1xf32> to vector<4x8x8xf32>
    %73 = arith.mulf %68, %72 : vector<4x8x8xf32>
    %74 = arith.truncf %73 : vector<4x8x8xf32> to vector<4x8x8xbf16>
    %75 = vector.extract_strided_slice %12 {offsets = [0, 0, 24], sizes = [4, 8, 8], strides = [1, 1, 1]} : vector<4x8x32xbf16> to vector<4x8x8xbf16>
    "tpu.trace_start"() <{level = 10 : i32, message = "bqk,bkd->bqd"}> : () -> ()
    %cst_20 = arith.constant dense<0.000000e+00> : vector<4x8x8xf32>
    %76 = tpu.matmul %74, %75, %cst_20 {dimension_numbers = #tpu.dot_dimension_numbers<[2], [1], [1], [2], [0, 0, 0, 1, 1, 2], [0], [0]>} : vector<4x8x8xbf16>, vector<4x8x8xbf16>, vector<4x8x8xf32> -> vector<4x8x8xf32>
    "tpu.trace_stop"() : () -> ()
    %77 = tpu.concatenate %28, %44, %60, %76 in 2 : vector<4x8x8xf32>, vector<4x8x8xf32>, vector<4x8x8xf32>, vector<4x8x8xf32> -> vector<4x8x32xf32>
    %78 = vector.shape_cast %77 : vector<4x8x32xf32> to vector<32x32xf32>
    %79 = arith.truncf %78 : vector<32x32xf32> to vector<32x32xbf16>
    %c0_21 = arith.constant 0 : index
    %c0_22 = arith.constant 0 : index
    %80 = vector.load %arg5[%c0_21, %c0_22] : memref<32x32xbf16, #tpu.memory_space<vmem>>, vector<32x32xbf16>
    %cst_23 = arith.constant dense<0.000000e+00> : vector<32x32xf32>
    %81 = tpu.matmul %79, %80, %cst_23 {dimension_numbers = #tpu.dot_dimension_numbers<[1], [0], [0], [1], [0, 0, 1, 1], [], []>} : vector<32x32xbf16>, vector<32x32xbf16>, vector<32x32xf32> -> vector<32x32xf32>
    %c0_24 = arith.constant 0 : index
    %c0_25 = arith.constant 0 : index
    %82 = vector.load %arg6[%c0_24, %c0_25] : memref<1x32xf32, #tpu.memory_space<vmem>>, vector<1x32xf32>
    %83 = vector.broadcast %82 : vector<1x32xf32> to vector<32x32xf32>
    %84 = arith.addf %81, %83 : vector<32x32xf32>
    %85 = vector.shape_cast %0 : vector<32x32xf32> to vector<4x8x32xf32>
    %c0_26 = arith.constant 0 : index
    %c0_27 = arith.constant 0 : index
    %86 = vector.load %arg2[%c0_26, %c0_27] : memref<8x32xf32, #tpu.memory_space<vmem>>, vector<8x32xf32>
    %87 = vector.shape_cast %86 : vector<8x32xf32> to vector<1x8x32xf32>
    %88 = vector.broadcast %87 : vector<1x8x32xf32> to vector<4x8x32xf32>
    %89 = arith.addf %85, %88 : vector<4x8x32xf32>
    %90 = vector.shape_cast %89 : vector<4x8x32xf32> to vector<32x32xf32>
    %91 = arith.addf %84, %90 : vector<32x32xf32>
    %c0_28 = arith.constant 0 : index
    %c0_29 = arith.constant 0 : index
    %92 = vector.load %arg7[%c0_28, %c0_29] : memref<1x32xf32, #tpu.memory_space<vmem>>, vector<1x32xf32>
    %c0_30 = arith.constant 0 : index
    %c0_31 = arith.constant 0 : index
    %93 = vector.load %arg8[%c0_30, %c0_31] : memref<1x32xf32, #tpu.memory_space<vmem>>, vector<1x32xf32>
    %cst_32 = arith.constant dense<0.000000e+00> : vector<32xf32>
    %94 = vector.multi_reduction <add>, %91, %cst_32 [1] : vector<32x32xf32> to vector<32xf32>
    %95 = vector.shape_cast %94 : vector<32xf32> to vector<32x1xf32>
    %cst_33 = arith.constant 3.200000e+01 : f32
    %96 = vector.broadcast %cst_33 : f32 to vector<32x1xf32>
    %97 = arith.divf %95, %96 : vector<32x1xf32>
    %98 = vector.broadcast %97 : vector<32x1xf32> to vector<32x32xf32>
    %99 = arith.subf %91, %98 : vector<32x32xf32>
    %100 = arith.mulf %99, %99 : vector<32x32xf32>
    %cst_34 = arith.constant dense<0.000000e+00> : vector<32xf32>
    %101 = vector.multi_reduction <add>, %100, %cst_34 [1] : vector<32x32xf32> to vector<32xf32>
    %102 = vector.shape_cast %101 : vector<32xf32> to vector<32x1xf32>
    %cst_35 = arith.constant 3.200000e+01 : f32
    %103 = vector.broadcast %cst_35 : f32 to vector<32x1xf32>
    %104 = arith.divf %102, %103 : vector<32x1xf32>
    %105 = vector.broadcast %97 : vector<32x1xf32> to vector<32x32xf32>
    %106 = arith.subf %91, %105 : vector<32x32xf32>
    %cst_36 = arith.constant 9.99999974E-6 : f32
    %107 = vector.broadcast %cst_36 : f32 to vector<32x1xf32>
    %108 = arith.addf %104, %107 : vector<32x1xf32>
    %109 = math.rsqrt %108 : vector<32x1xf32>
    %110 = vector.broadcast %109 : vector<32x1xf32> to vector<32x32xf32>
    %111 = arith.mulf %106, %110 : vector<32x32xf32>
    %112 = vector.broadcast %92 : vector<1x32xf32> to vector<32x32xf32>
    %113 = arith.mulf %111, %112 : vector<32x32xf32>
    %114 = vector.broadcast %93 : vector<1x32xf32> to vector<32x32xf32>
    %115 = arith.addf %113, %114 : vector<32x32xf32>
    %116 = arith.truncf %115 : vector<32x32xf32> to vector<32x32xbf16>
    %c0_37 = arith.constant 0 : index
    %c0_38 = arith.constant 0 : index
    %117 = vector.load %arg11[%c0_37, %c0_38] : memref<32x128xbf16, #tpu.memory_space<vmem>>, vector<32x128xbf16>
    %cst_39 = arith.constant dense<0.000000e+00> : vector<32x128xf32>
    %118 = tpu.matmul %116, %117, %cst_39 {dimension_numbers = #tpu.dot_dimension_numbers<[1], [0], [0], [1], [0, 0, 1, 1], [], []>} : vector<32x32xbf16>, vector<32x128xbf16>, vector<32x128xf32> -> vector<32x128xf32>
    %c0_40 = arith.constant 0 : index
    %c0_41 = arith.constant 0 : index
    %119 = vector.load %arg12[%c0_40, %c0_41] : memref<1x128xf32, #tpu.memory_space<vmem>>, vector<1x128xf32>
    %120 = vector.broadcast %119 : vector<1x128xf32> to vector<32x128xf32>
    %121 = arith.addf %118, %120 : vector<32x128xf32>
    %cst_42 = arith.constant 0.000000e+00 : f32
    %122 = vector.broadcast %cst_42 : f32 to vector<32x128xf32>
    %123 = arith.maximumf %121, %122 : vector<32x128xf32>
    %124 = arith.truncf %123 : vector<32x128xf32> to vector<32x128xbf16>
    %c0_43 = arith.constant 0 : index
    %c0_44 = arith.constant 0 : index
    %125 = vector.load %arg13[%c0_43, %c0_44] : memref<128x32xbf16, #tpu.memory_space<vmem>>, vector<128x32xbf16>
    %cst_45 = arith.constant dense<0.000000e+00> : vector<32x32xf32>
    %126 = tpu.matmul %124, %125, %cst_45 {dimension_numbers = #tpu.dot_dimension_numbers<[1], [0], [0], [1], [0, 0, 1, 1], [], []>} : vector<32x128xbf16>, vector<128x32xbf16>, vector<32x32xf32> -> vector<32x32xf32>
    %c0_46 = arith.constant 0 : index
    %c0_47 = arith.constant 0 : index
    %127 = vector.load %arg14[%c0_46, %c0_47] : memref<1x32xf32, #tpu.memory_space<vmem>>, vector<1x32xf32>
    %128 = vector.broadcast %127 : vector<1x32xf32> to vector<32x32xf32>
    %129 = arith.addf %126, %128 : vector<32x32xf32>
    %130 = arith.addf %129, %115 : vector<32x32xf32>
    %c0_48 = arith.constant 0 : index
    %c0_49 = arith.constant 0 : index
    %131 = vector.load %arg9[%c0_48, %c0_49] : memref<1x32xf32, #tpu.memory_space<vmem>>, vector<1x32xf32>
    %c0_50 = arith.constant 0 : index
    %c0_51 = arith.constant 0 : index
    %132 = vector.load %arg10[%c0_50, %c0_51] : memref<1x32xf32, #tpu.memory_space<vmem>>, vector<1x32xf32>
    %cst_52 = arith.constant dense<0.000000e+00> : vector<32xf32>
    %133 = vector.multi_reduction <add>, %130, %cst_52 [1] : vector<32x32xf32> to vector<32xf32>
    %134 = vector.shape_cast %133 : vector<32xf32> to vector<32x1xf32>
    %cst_53 = arith.constant 3.200000e+01 : f32
    %135 = vector.broadcast %cst_53 : f32 to vector<32x1xf32>
    %136 = arith.divf %134, %135 : vector<32x1xf32>
    %137 = vector.broadcast %136 : vector<32x1xf32> to vector<32x32xf32>
    %138 = arith.subf %130, %137 : vector<32x32xf32>
    %139 = arith.mulf %138, %138 : vector<32x32xf32>
    %cst_54 = arith.constant dense<0.000000e+00> : vector<32xf32>
    %140 = vector.multi_reduction <add>, %139, %cst_54 [1] : vector<32x32xf32> to vector<32xf32>
    %141 = vector.shape_cast %140 : vector<32xf32> to vector<32x1xf32>
    %cst_55 = arith.constant 3.200000e+01 : f32
    %142 = vector.broadcast %cst_55 : f32 to vector<32x1xf32>
    %143 = arith.divf %141, %142 : vector<32x1xf32>
    %144 = vector.broadcast %136 : vector<32x1xf32> to vector<32x32xf32>
    %145 = arith.subf %130, %144 : vector<32x32xf32>
    %cst_56 = arith.constant 9.99999974E-6 : f32
    %146 = vector.broadcast %cst_56 : f32 to vector<32x1xf32>
    %147 = arith.addf %143, %146 : vector<32x1xf32>
    %148 = math.rsqrt %147 : vector<32x1xf32>
    %149 = vector.broadcast %148 : vector<32x1xf32> to vector<32x32xf32>
    %150 = arith.mulf %145, %149 : vector<32x32xf32>
    %151 = vector.broadcast %131 : vector<1x32xf32> to vector<32x32xf32>
    %152 = arith.mulf %150, %151 : vector<32x32xf32>
    %153 = vector.broadcast %132 : vector<1x32xf32> to vector<32x32xf32>
    %154 = arith.addf %152, %153 : vector<32x32xf32>
    %155 = arith.addf %154, %0 : vector<32x32xf32>
    %c0_57 = arith.constant 0 : index
    %c0_58 = arith.constant 0 : index
    %156 = vector.load %arg15[%c0_57, %c0_58] : memref<1x32xf32, #tpu.memory_space<vmem>>, vector<1x32xf32>
    %c0_59 = arith.constant 0 : index
    %c0_60 = arith.constant 0 : index
    %157 = vector.load %arg16[%c0_59, %c0_60] : memref<1x32xf32, #tpu.memory_space<vmem>>, vector<1x32xf32>
    %cst_61 = arith.constant dense<0.000000e+00> : vector<32xf32>
    %158 = vector.multi_reduction <add>, %155, %cst_61 [1] : vector<32x32xf32> to vector<32xf32>
    %159 = vector.shape_cast %158 : vector<32xf32> to vector<32x1xf32>
    %cst_62 = arith.constant 3.200000e+01 : f32
    %160 = vector.broadcast %cst_62 : f32 to vector<32x1xf32>
    %161 = arith.divf %159, %160 : vector<32x1xf32>
    %162 = vector.broadcast %161 : vector<32x1xf32> to vector<32x32xf32>
    %163 = arith.subf %155, %162 : vector<32x32xf32>
    %164 = arith.mulf %163, %163 : vector<32x32xf32>
    %cst_63 = arith.constant dense<0.000000e+00> : vector<32xf32>
    %165 = vector.multi_reduction <add>, %164, %cst_63 [1] : vector<32x32xf32> to vector<32xf32>
    %166 = vector.shape_cast %165 : vector<32xf32> to vector<32x1xf32>
    %cst_64 = arith.constant 3.200000e+01 : f32
    %167 = vector.broadcast %cst_64 : f32 to vector<32x1xf32>
    %168 = arith.divf %166, %167 : vector<32x1xf32>
    %169 = vector.broadcast %161 : vector<32x1xf32> to vector<32x32xf32>
    %170 = arith.subf %155, %169 : vector<32x32xf32>
    %cst_65 = arith.constant 9.99999974E-6 : f32
    %171 = vector.broadcast %cst_65 : f32 to vector<32x1xf32>
    %172 = arith.addf %168, %171 : vector<32x1xf32>
    %173 = math.rsqrt %172 : vector<32x1xf32>
    %174 = vector.broadcast %173 : vector<32x1xf32> to vector<32x32xf32>
    %175 = arith.mulf %170, %174 : vector<32x32xf32>
    %176 = vector.broadcast %156 : vector<1x32xf32> to vector<32x32xf32>
    %177 = arith.mulf %175, %176 : vector<32x32xf32>
    %178 = vector.broadcast %157 : vector<1x32xf32> to vector<32x32xf32>
    %179 = arith.addf %177, %178 : vector<32x32xf32>
    %c0_66 = arith.constant 0 : index
    %c0_67 = arith.constant 0 : index
    %180 = vector.load %arg17[%c0_66, %c0_67] : memref<32x32xf32, #tpu.memory_space<vmem>>, vector<32x32xf32>
    tpu.vector_store %arg17[%c0_66, %c0_67], %179 {strides = array<i32>} : memref<32x32xf32, #tpu.memory_space<vmem>>, vector<32x32xf32>,
    return
  }
  func.func @transform_0(%arg0: i32) -> (i32, i32) {
    %c0_i32 = arith.constant 0 : i32
    %c0_i32_0 = arith.constant 0 : i32
    return %arg0, %c0_i32 : i32, i32
  }
  func.func @transform_1(%arg0: i32) -> (i32, i32) {
    %c0_i32 = arith.constant 0 : i32
    %c0_i32_0 = arith.constant 0 : i32
    %c0_i32_1 = arith.constant 0 : i32
    return %c0_i32, %c0_i32_0 : i32, i32
  }
  func.func @transform_2(%arg0: i32) -> (i32, i32) {
    %c0_i32 = arith.constant 0 : i32
    %c0_i32_0 = arith.constant 0 : i32
    %c0_i32_1 = arith.constant 0 : i32
    return %c0_i32, %c0_i32_0 : i32, i32
  }
  func.func @transform_3(%arg0: i32) -> (i32, i32) {
    %c0_i32 = arith.constant 0 : i32
    %c0_i32_0 = arith.constant 0 : i32
    %c0_i32_1 = arith.constant 0 : i32
    return %c0_i32, %c0_i32_0 : i32, i32
  }
  func.func @transform_4(%arg0: i32) -> (i32, i32) {
    %c0_i32 = arith.constant 0 : i32
    %c0_i32_0 = arith.constant 0 : i32
    %c0_i32_1 = arith.constant 0 : i32
    return %c0_i32, %c0_i32_0 : i32, i32
  }
  func.func @transform_5(%arg0: i32) -> (i32, i32) {
    %c0_i32 = arith.constant 0 : i32
    %c0_i32_0 = arith.constant 0 : i32
    %c0_i32_1 = arith.constant 0 : i32
    return %c0_i32, %c0_i32_0 : i32, i32
  }
  func.func @transform_6(%arg0: i32) -> (i32, i32) {
    %c0_i32 = arith.constant 0 : i32
    %c0_i32_0 = arith.constant 0 : i32
    %c0_i32_1 = arith.constant 0 : i32
    return %c0_i32, %c0_i32_0 : i32, i32
  }
  func.func @transform_7(%arg0: i32) -> (i32, i32) {
    %c0_i32 = arith.constant 0 : i32
    %c0_i32_0 = arith.constant 0 : i32
    %c0_i32_1 = arith.constant 0 : i32
    return %c0_i32, %c0_i32_0 : i32, i32
  }
  func.func @transform_8(%arg0: i32) -> (i32, i32) {
    %c0_i32 = arith.constant 0 : i32
    %c0_i32_0 = arith.constant 0 : i32
    %c0_i32_1 = arith.constant 0 : i32
    return %c0_i32, %c0_i32_0 : i32, i32
  }
  func.func @transform_9(%arg0: i32) -> (i32, i32) {
    %c0_i32 = arith.constant 0 : i32
    %c0_i32_0 = arith.constant 0 : i32
    %c0_i32_1 = arith.constant 0 : i32
    return %c0_i32, %c0_i32_0 : i32, i32
  }
  func.func @transform_10(%arg0: i32) -> (i32, i32) {
    %c0_i32 = arith.constant 0 : i32
    %c0_i32_0 = arith.constant 0 : i32
    %c0_i32_1 = arith.constant 0 : i32
    return %c0_i32, %c0_i32_0 : i32, i32
  }
  func.func @transform_11(%arg0: i32) -> (i32, i32) {
    %c0_i32 = arith.constant 0 : i32
    %c0_i32_0 = arith.constant 0 : i32
    %c0_i32_1 = arith.constant 0 : i32
    return %c0_i32, %c0_i32_0 : i32, i32
  }
  func.func @transform_12(%arg0: i32) -> (i32, i32) {
    %c0_i32 = arith.constant 0 : i32
    %c0_i32_0 = arith.constant 0 : i32
    %c0_i32_1 = arith.constant 0 : i32
    return %c0_i32, %c0_i32_0 : i32, i32
  }
  func.func @transform_13(%arg0: i32) -> (i32, i32) {
    %c0_i32 = arith.constant 0 : i32
    %c0_i32_0 = arith.constant 0 : i32
    %c0_i32_1 = arith.constant 0 : i32
    return %c0_i32, %c0_i32_0 : i32, i32
  }
  func.func @transform_14(%arg0: i32) -> (i32, i32) {
    %c0_i32 = arith.constant 0 : i32
    %c0_i32_0 = arith.constant 0 : i32
    %c0_i32_1 = arith.constant 0 : i32
    return %c0_i32, %c0_i32_0 : i32, i32
  }
  func.func @transform_15(%arg0: i32) -> (i32, i32) {
    %c0_i32 = arith.constant 0 : i32
    %c0_i32_0 = arith.constant 0 : i32
    %c0_i32_1 = arith.constant 0 : i32
    return %c0_i32, %c0_i32_0 : i32, i32
  }
  func.func @transform_16(%arg0: i32) -> (i32, i32) {
    %c0_i32 = arith.constant 0 : i32
    %c0_i32_0 = arith.constant 0 : i32
    return %arg0, %c0_i32 : i32, i32
  }
}

</mosaic_0001>

<bundles_post_ra>
// kernel: tpu_custom_call.1
= control target key start
LH: loop header
LB: loop body
LE: loop exit
PB: predicated region body
PF: predicated region fallthrough
CT: control target
= control target key end

     0   :  { %s2533_s21 = smov 0   ;;  %s3019_s0 = inlined_call_operand.vmem [shape: f32[64,32], index: 0, kind: input, shape index: {}]   ;;  %s3020_s1 = inlined_call_operand.vmem [shape: f32[8,32], index: 1, kind: input, shape index: {}]   ;;  %s3021_s2 = inlined_call_operand.vmem [shape: f32[8,32], index: 2, kind: input, shape index: {}]   ;;  %s3022_s3 = inlined_call_operand.vmem [shape: bf16[32,96], index: 3, kind: input, shape index: {}]   ;;  %s3023_s4 = inlined_call_operand.vmem [shape: bf16[32,32], index: 4, kind: input, shape index: {}]   ;;  %s3024_s5 = inlined_call_operand.vmem [shape: f32[1,32], index: 5, kind: input, shape index: {}]   ;;  %s3025_s6 = inlined_call_operand.vmem [shape: f32[1,32], index: 6, kind: input, shape index: {}]   ;;  %s3026_s7 = inlined_call_operand.vmem [shape: f32[1,32], index: 7, kind: input, shape index: {}]   ;;  %s3027_s8 = inlined_call_operand.vmem [shape: f32[1,32], index: 8, kind: input, shape index: {}]   ;;  %s3028_s9 = inlined_call_operand.vmem [shape: f32[1,32], index: 9, kind: input, shape index: {}]   ;;  %s3029_s10 = inlined_call_operand.vmem [shape: bf16[32,128], index: 10, kind: input, shape index: {}]   ;;  %s3030_s11 = inlined_call_operand.vmem [shape: f32[1,128], index: 11, kind: input, shape index: {}]   ;;  %s3031_s12 = inlined_call_operand.vmem [shape: bf16[128,32], index: 12, kind: input, shape index: {}]   ;;  %s3032_s13 = inlined_call_operand.vmem [shape: f32[1,32], index: 13, kind: input, shape index: {}]   ;;  %s3033_s14 = inlined_call_operand.vmem [shape: f32[1,32], index: 14, kind: input, shape index: {}]   ;;  %s3034_s15 = inlined_call_operand.vmem [shape: f32[1,32], index: 15, kind: input, shape index: {}]   ;;  %s3035_s16 = inlined_call_operand.vmem [shape: f32[64,32], index: 16, kind: output, shape index: {}]  }
   0x1   :  { %3036 = sst [smem:[#allocation2_spill]] %s3019_s0 }
   0x2 LB: > { %s2150_s22 = sadd.s32 4294967295, %s2431_s21   ;;  %p2154_p0 = scmp.ge.s32.totalorder %s2431_s21, 1  ;;  %s2431_s21 = sphi %s2533_s21, %s26_s21  }
   0x3   : > { %p463_p1 = scmp.lt.s32.totalorder %s2431_s21, 3 }
   0x5   : > { %p464_p2 = pnand %p2154_p0, %p463_p1 }
   0x6   : > { %s2155_s25 = sshll.u32 (!%p464_p2), %s2150_s22, 2  ;;  %s3037_s0 = sld [smem:[#allocation2_spill]] (!%p464_p2) }
   0x7   : > { %467 = sbr.rel (%p464_p2) target bundleno = 3512 (0xdb8), region = 84  ;;  %p514_p3 = scmp.lt.s32.totalorder (!%p464_p2), %s2155_s25, 7 }
   0x8   : > { %s2433_s18 = smov (!%p464_p2), 96   ;;  %s2434_s22 = smov (!%p464_p2), 64  }
   0x9   : > { %s2435_s23 = smov (!%p464_p2), 88   ;;  %s2436_s24 = smov (!%p464_p2), 120  }
   0xa   : > { %s2437_s26 = smov (!%p464_p2), 56   ;;  %s2438_s27 = smov (!%p464_p2), 80  }
   0xb   : > { %s2439_s29 = smov (!%p464_p2), 112   ;;  %s2440_s30 = smov (!%p464_p2), 48  }
   0xc   : > { %v2256_v0 = vld [vmem:[%s3022_s3 + $0x8] sm:$0xff]  ;;  %v2255_v1 = vld [vmem:[%s3022_s3] sm:$0xff]  ;;  %s3039_s25 = smov (!%p514_p3, %s2155_s25), 7  ;;  %vm548_vm0 = vcmask 261120   ;;  %vm596_vm1 = vcmask 64512   ;;  %vm744_vm2 = vcmask 1043456  }
   0xd   : > { %561 = vmatpush.bf16.msra.mxu1 %v2256_v0  ;;  %s2156_s28 = sshll.u32 %s3039_s25, 3  ;;  %v578_v23 = vld [vmem:[%s3021_s2] sm:$0xff]  ;;  %s2443_s19 = smov 40   ;;  %vm1557_vm3 = vcmask 130048   ;;  %vm1562_vm4 = vcmask 195584  }
   0xe   : > { %s2555_s17 = scalar_lea.vmem %s3037_s0, %s2156_s28  ;;  %s2441_s0 = smov 72  }
   0xf   : > { %v526_v2 = vld [vmem:[%s2555_s17] sm:$0xff]  ;;  %v527_v3 = vld [vmem:[%s2555_s17 + $0x8] sm:$0xff]  ;;  %v528_v5 = vld [vmem:[%s2555_s17 + $0x10] sm:$0xff]  ;;  %s2444_s20 = smov 16  }
  0x10   : > { %v530_v4 = vpack.c.bf16 %v527_v3, %v526_v2  ;;  %v529_v6 = vld [vmem:[%s2555_s17 + $0x18] sm:$0xff] }
  0x11   : > { %562 = vmatpush.bf16.msra.mxu1 %v2255_v1  ;;  %v531_v7 = vpack.c.bf16 %v529_v6, %v528_v5 }
  0x14   : > { %2167 = vmatmul.msk.bf16.vlgmr.msra.gmra.mxu1 %vm548_vm0, %v530_v4 }
  0x24   : > { %2168 = vmatmul.msk.bf16.gmra.mxu1 %vm548_vm0, %v531_v7 }
  0x91   : > { %v564_v8 = vpop.f32.mrf.mxu1 }
  0x92   : > { %v574_v12 = vpack.c.bf16 %v564_v8, %v564_v8 }
  0x94   : > { %v592_v15 = vunpack.c.l.b16 %v574_v12 }
  0x96   : > { %v2570_v18 = vpack.c.b16 %v592_v15, %v592_v15 }
  0x99   : > { %v566_v9 = vpop.f32.mrf.mxu1 }
  0x9a   : > { %v575_v10 = vpack.c.bf16 %v566_v9, %v566_v9 }
  0x9c   : > { %v617_v11 = vunpack.c.l.b16 %v575_v10 }
  0x9e   : > { %v2563_v13 = vpack.c.b16 %v617_v11, %v617_v11 }
  0xa0   : > { %619 = vrot.lane.b32.xlu0 %v2563_v13, %s2433_s18 }
  0xa1   : > { %v2566_v14 = vpop.f32.mrf.mxu1 }
  0xa2   : > { %v576_v16 = vpack.c.bf16 %v2566_v14, %v2566_v14 }
  0xa4   : > { %v641_v17 = vunpack.c.l.b16 %v576_v16 }
  0xa6   : > { %v2572_v19 = vpack.c.b16 %v641_v17, %v641_v17 }
  0xa8   : > { %594 = vrot.lane.b32.xlu0 %v2570_v18, %s2433_s18  ;;  %643 = vrot.lane.b32.xlu1 %v2572_v19, %s2433_s18 }
  0xa9   : > { %v2576_v20 = vpop.f32.mrf.mxu1 }
  0xaa   : > { %v577_v21 = vpack.c.bf16 %v2576_v20, %v2576_v20 }
  0xac   : > { %v665_v22 = vunpack.c.l.b16 %v577_v21 }
  0xae   : > { %v2583_v24 = vpack.c.b16 %v665_v22, %v665_v22 }
  0xb0   : > { %580 = vrot.lane.b32.xlu0 %v578_v23, %s2434_s22  ;;  %667 = vrot.lane.b32.xlu1 %v2583_v24, %s2433_s18  ;;  %s2442_s18 = smov 104  }
 0x112   : > { %v620_v25 = vpop.permute.xlu0 %619 }
 0x113   : > { %v625_v26 = vsel %vm596_vm1, %v620_v25, 0 }
 0x114   : > { %634 = vmatpush.bf16.xpose.msra.mxu2 %v625_v26 }
 0x11a   : > { %v595_v27 = vpop.permute.xlu0 %594  ;;  %v644_v28 = vpop.permute.xlu1 %643 }
 0x11b   : > { %2170 = vmatmul.msk.bf16.vlgmr.msra.gmra.mxu2 %vm596_vm1, %v575_v10  ;;  %v601_v29 = vsel %vm596_vm1, %v595_v27, 0  ;;  %v649_v30 = vsel %vm596_vm1, %v644_v28, 0 }
 0x11c   : > { %610 = vmatpush.bf16.xpose.msrb.mxu1 %v601_v29  ;;  %658 = vmatpush.bf16.xpose.msra.mxu3 %v649_v30 }
 0x122   : > { %v668_v31 = vpop.permute.xlu1 %667  ;;  %v581_v43 = vpop.permute.xlu0 %580 }
 0x123   : > { %2169 = vmatmul.msk.bf16.vlgmr.msrb.gmra.mxu1 %vm596_vm1, %v574_v12  ;;  %2171 = vmatmul.msk.bf16.vlgmr.msra.gmra.mxu3 %vm596_vm1, %v576_v16  ;;  %v673_v32 = vsel %vm596_vm1, %v668_v31, 0  ;;  %v583_v44 = vadd.f32 %v581_v43, %v564_v8  ;;  %v584_v47 = vadd.f32 %v581_v43, %v566_v9  ;;  %v585_v5 = vadd.f32 %v581_v43, %v2566_v14 }
 0x124   : > { %682 = vmatpush.bf16.xpose.msra.mxu1 %v673_v32  ;;  %v586_v11 = vadd.f32 %v581_v43, %v2576_v20 }
 0x125   : > { %v587_v45 = vpack.c.bf16 %v583_v44, %v583_v44  ;;  %v588_v49 = vpack.c.bf16 %v584_v47, %v584_v47  ;;  %v589_v10 = vpack.c.bf16 %v585_v5, %v585_v5 }
 0x126   : > { %v590_v15 = vpack.c.bf16 %v586_v11, %v586_v11 }
 0x127   : > { %v737_v48 = vunpack.c.l.b16 %v587_v45  ;;  %v762_v51 = vunpack.c.l.b16 %v588_v49  ;;  %v786_v12 = vunpack.c.l.b16 %v589_v10 }
 0x128   : > { %v810_v14 = vunpack.c.l.b16 %v590_v15 }
 0x129   : > { %v2603_v50 = vpack.c.b16 %v737_v48, %v737_v48  ;;  %v2609_v52 = vpack.c.b16 %v762_v51, %v762_v51  ;;  %v2629_v16 = vpack.c.b16 %v786_v12, %v786_v12 }
 0x12a   : > { %v2633_v17 = vpack.c.b16 %v810_v14, %v810_v14 }
 0x133   : > { %2172 = vmatmul.msk.bf16.vlgmr.msra.gmra.mxu1 %vm596_vm1, %v577_v21 }
 0x19e   : > { %v636_v33 = vpop.f32.mrf.mxu2 }
 0x19f   : > { %v691_v40 = vsel %vm596_vm1, %v636_v33, -inf }
 0x1a0   : > { %v612_v34 = vpop.f32.mrf.mxu1 }
 0x1a1   : > { %v688_v35 = vsel %vm596_vm1, %v612_v34, -inf }
 0x1a2   : > { %689 = vmax.xlane.f32.xlu2 %v688_v35 }
 0x1a6   : > { %v638_v36 = vpop.f32.mrf.mxu2  ;;  %v2596_v37 = vpop.f32.mrf.mxu3 }
 0x1a7   : > { %v694_v39 = vsel %vm596_vm1, %v2596_v37, -inf }
 0x1a8   : > { %v614_v38 = vpop.f32.mrf.mxu1  ;;  %695 = vmax.xlane.f32.xlu1 %v694_v39 }
 0x1aa   : > { %692 = vmax.xlane.f32.xlu2 %v691_v40 }
 0x1ae   : > { %v662_v41 = vpop.f32.mrf.mxu3 }
 0x1b0   : > { %v2601_v42 = vpop.f32.mrf.mxu1 }
 0x1b1   : > { %v697_v53 = vsel %vm596_vm1, %v2601_v42, -inf }
 0x1b8   : > { %v686_v46 = vpop.f32.mrf.mxu1 }
 0x1c1   : > { %835 = vrot.lane.b32.xlu1 %v2570_v18, %s2435_s23 }
 0x1c2   : > { %739 = vrot.lane.b32.xlu2 %v2603_v50, %s2434_s22 }
 0x1ca   : > { %764 = vrot.lane.b32.xlu2 %v2609_v52, %s2434_s22 }
 0x1d2   : > { %858 = vrot.lane.b32.xlu2 %v2563_v13, %s2435_s23 }
 0x1da   : > { %833 = vrot.lane.b32.xlu2 %v2570_v18, %s2436_s24 }
 0x203   : > { %698 = vmax.xlane.f32.xlu2 %v697_v53 }
 0x215   : > { %v690_v54 = vpop.xlane.xlu2 %689 }
 0x216   : > { %v700_v55 = vsub.f32 %v612_v34, %v690_v54 }
 0x218   : > { %v704_v56 = vmul.f32 1.442695, %v700_v55 }
 0x21a   : > { %2331 = vpow2.f32 %v704_v56 }
 0x21b   : > { %v696_v2 = vpop.xlane.xlu1 %695 }
 0x21c   : > { %v702_v21 = vsub.f32 %v2596_v37, %v696_v2 }
 0x21d   : > { %v693_v57 = vpop.xlane.xlu2 %692 }
 0x21e   : > { %v701_v58 = vsub.f32 %v636_v33, %v693_v57  ;;  %v708_v22 = vmul.f32 1.442695, %v702_v21 }
 0x220   : > { %v2332_v59 = vpop.eup %2331  ;;  %v706_v60 = vmul.f32 1.442695, %v701_v58 }
 0x221   : > { %v712_v61 = vsel %vm596_vm1, %v2332_v59, 0.0 }
 0x222   : > { %2333 = vpow2.f32 %v706_v60  ;;  %713 = vadd.xlane.f32.xlu0 %v712_v61 }
 0x223   : > { %2335 = vpow2.f32 %v708_v22 }
 0x225   : > { %v740_v62 = vpop.permute.xlu2 %739 }
 0x226   : > { %v746_v63 = vsel %vm744_vm2, %v740_v62, 0 }
 0x227   : > { %755 = vmatpush.bf16.msrb.mxu2 %v746_v63 }
 0x228   : > { %v2334_v0 = vpop.eup %2333 }
 0x229   : > { %v715_v1 = vsel %vm596_vm1, %v2334_v0, 0.0  ;;  %v2336_v20 = vpop.eup %2335 }
 0x22a   : > { %716 = vadd.xlane.f32.xlu2 %v715_v1  ;;  %v718_v23 = vsel %vm596_vm1, %v2336_v20, 0.0 }
 0x22d   : > { %v765_v3 = vpop.permute.xlu2 %764 }
 0x22e   : > { %v770_v4 = vsel %vm744_vm2, %v765_v3, 0 }
 0x22f   : > { %779 = vmatpush.bf16.msrb.mxu3 %v770_v4 }
 0x233   : > { %v836_v6 = vpop.permute.xlu1 %835 }
 0x234   : > { %v841_v7 = vsel %vm596_vm1, %v836_v6, 0 }
 0x235   : > { %v859_v8 = vpop.permute.xlu2 %858  ;;  %850 = vmatpush.bf16.xpose.msra.mxu2 %v841_v7 }
 0x236   : > { %v864_v9 = vsel %vm596_vm1, %v859_v8, 0  ;;  %856 = vrot.lane.b32.xlu0 %v2563_v13, %s2436_s24 }
 0x237   : > { %873 = vmatpush.bf16.xpose.msra.mxu3 %v864_v9 }
 0x23d   : > { %v834_v25 = vpop.permute.xlu2 %833 }
 0x242   : > { %788 = vrot.lane.b32.xlu2 %v2629_v16, %s2434_s22 }
 0x24a   : > { %812 = vrot.lane.b32.xlu2 %v2633_v17, %s2434_s22  ;;  %s2445_s22 = smov 8  }
 0x252   : > { %904 = vrot.lane.b32.xlu2 %v2583_v24, %s2435_s23 }
 0x25a   : > { %902 = vrot.lane.b32.xlu2 %v2583_v24, %s2436_s24 }
 0x260   : > { %719 = vadd.xlane.f32.xlu0 %v718_v23 }
 0x274   : > { %881 = vrot.lane.b32.xlu0 %v2572_v19, %s2435_s23  ;;  %s2446_s23 = smov 24  }
 0x276   : > { %v699_v26 = vpop.xlane.xlu2 %698 }
 0x277   : > { %v703_v27 = vsub.f32 %v2601_v42, %v699_v26 }
 0x279   : > { %v710_v28 = vmul.f32 1.442695, %v703_v27 }
 0x27b   : > { %2337 = vpow2.f32 %v710_v28 }
 0x27c   : > { %879 = vrot.lane.b32.xlu0 %v2572_v19, %s2436_s24 }
 0x281   : > { %v2338_v29 = vpop.eup %2337 }
 0x282   : > { %v721_v30 = vsel %vm596_vm1, %v2338_v29, 0.0 }
 0x283   : > { %722 = vadd.xlane.f32.xlu1 %v721_v30 }
 0x295   : > { %v714_v31 = vpop.xlane.xlu0 %713 }
 0x296   : > { %2339 = vrcp.f32 %v714_v31 }
 0x29c   : > { %v2340_v32 = vpop.eup %2339 }
 0x29d   : > { %v728_v33 = vmul.f32 %v2340_v32, %v2332_v59  ;;  %v717_v34 = vpop.xlane.xlu2 %716 }
 0x29e   : > { %2341 = vrcp.f32 %v717_v34 }
 0x29f   : > { %v732_v35 = vpack.c.bf16 %v728_v33, %v728_v33 }
 0x2a1   : > { %2173 = vmatmul.msk.bf16.vlgmr.msrb.gmra.mxu2 %vm596_vm1, %v732_v35 }
 0x2a4   : > { %v2342_v36 = vpop.eup %2341 }
 0x2a5   : > { %v729_v37 = vmul.f32 %v2342_v36, %v2334_v0  ;;  %v789_v38 = vpop.permute.xlu2 %788 }
 0x2a6   : > { %v794_v39 = vsel %vm744_vm2, %v789_v38, 0 }
 0x2a7   : > { %803 = vmatpush.bf16.msra.mxu0 %v794_v39  ;;  %v733_v40 = vpack.c.bf16 %v729_v37, %v729_v37 }
 0x2a8   : > { %v857_v45 = vpop.permute.xlu0 %856 }
 0x2a9   : > { %2174 = vmatmul.msk.bf16.vlgmr.msrb.gmra.mxu3 %vm596_vm1, %v733_v40 }
 0x2ad   : > { %v813_v41 = vpop.permute.xlu2 %812 }
 0x2ae   : > { %v818_v42 = vsel %vm744_vm2, %v813_v41, 0 }
 0x2af   : > { %827 = vmatpush.bf16.msrb.mxu0 %v818_v42 }
 0x2b1   : > { %2177 = vmatmul.msk.bf16.vlgmr.msra.gmra.mxu2 %vm596_vm1, %v834_v25 }
 0x2b5   : > { %v905_v43 = vpop.permute.xlu2 %904 }
 0x2b6   : > { %v910_v44 = vsel %vm596_vm1, %v905_v43, 0 }
 0x2b7   : > { %919 = vmatpush.bf16.xpose.msrb.mxu1 %v910_v44 }
 0x2b9   : > { %2178 = vmatmul.msk.bf16.vlgmr.msra.gmra.mxu3 %vm596_vm1, %v857_v45 }
 0x2bd   : > { %v903_v46 = vpop.permute.xlu2 %902 }
 0x2be   : > { %2180 = vmatmul.msk.bf16.vlgmr.msrb.gmra.mxu1 %vm596_vm1, %v903_v46 }
 0x2d3   : > { %v720_v47 = vpop.xlane.xlu0 %719 }
 0x2d4   : > { %2343 = vrcp.f32 %v720_v47 }
 0x2da   : > { %v2344_v48 = vpop.eup %2343 }
 0x2db   : > { %v730_v49 = vmul.f32 %v2344_v48, %v2336_v20 }
 0x2dd   : > { %v734_v51 = vpack.c.bf16 %v730_v49, %v730_v49 }
 0x2df   : > { %2175 = vmatmul.msk.bf16.vlgmr.msra.gmra.mxu0 %vm596_vm1, %v734_v51 }
 0x2e6   : > { %v882_v53 = vpop.permute.xlu0 %881 }
 0x2e7   : > { %v887_v54 = vsel %vm596_vm1, %v882_v53, 0 }
 0x2e8   : > { %896 = vmatpush.bf16.xpose.msra.mxu0 %v887_v54 }
 0x2ee   : > { %v880_v59 = vpop.permute.xlu0 %879 }
 0x2f6   : > { %v723_v55 = vpop.xlane.xlu1 %722 }
 0x2f7   : > { %2345 = vrcp.f32 %v723_v55 }
 0x2fd   : > { %v2346_v56 = vpop.eup %2345 }
 0x2fe   : > { %v731_v57 = vmul.f32 %v2346_v56, %v2338_v29 }
 0x300   : > { %v735_v58 = vpack.c.bf16 %v731_v57, %v731_v57 }
 0x302   : > { %2176 = vmatmul.msk.bf16.vlgmr.msrb.gmra.mxu0 %vm596_vm1, %v735_v58 }
 0x312   : > { %2179 = vmatmul.msk.bf16.vlgmr.msra.gmra.mxu0 %vm596_vm1, %v880_v59 }
 0x324   : > { %v2661_v60 = vpop.f32.mrf.mxu2 }
 0x32c   : > { %v759_v61 = vpop.f32.mrf.mxu2  ;;  %v2663_v62 = vpop.f32.mrf.mxu3 }
 0x334   : > { %v783_v63 = vpop.f32.mrf.mxu3  ;;  %v852_v0 = vpop.f32.mrf.mxu2 }
 0x335   : > { %v925_v1 = vsel %vm596_vm1, %v852_v0, -inf }
 0x336   : > { %926 = vmax.xlane.f32.xlu0 %v925_v1 }
 0x33b   : > { %v921_v2 = vpop.f32.mrf.mxu1 }
 0x33c   : > { %v854_v3 = vpop.f32.mrf.mxu2  ;;  %v875_v4 = vpop.f32.mrf.mxu3  ;;  %v934_v5 = vsel %vm596_vm1, %v921_v2, -inf }
 0x33d   : > { %935 = vmax.xlane.f32.xlu1 %v934_v5  ;;  %v928_v6 = vsel %vm596_vm1, %v875_v4, -inf }
 0x33e   : > { %929 = vmax.xlane.f32.xlu2 %v928_v6 }
 0x343   : > { %v923_v7 = vpop.f32.mrf.mxu1 }
 0x344   : > { %v877_v8 = vpop.f32.mrf.mxu3 }
 0x34a   : > { %973 = vrot.lane.b32.xlu0 %v2603_v50, %s2437_s26 }
 0x352   : > { %1082 = vrot.lane.b32.xlu0 %v2563_v13, %s2438_s27 }
 0x356   : > { %994 = vrot.lane.b32.xlu2 %v2609_v52, %s2437_s26 }
 0x35a   : > { %1080 = vrot.lane.b32.xlu0 %v2563_v13, %s2439_s29 }
 0x35c   : > { %v2674_v9 = vpop.f32.mrf.mxu0 }
 0x35e   : > { %1057 = vrot.lane.b32.xlu2 %v2570_v18, %s2439_s29 }
 0x362   : > { %1015 = vrot.lane.b32.xlu0 %v2629_v16, %s2437_s26 }
 0x364   : > { %v807_v10 = vpop.f32.mrf.mxu0 }
 0x36a   : > { %1036 = vrot.lane.b32.xlu0 %v2633_v17, %s2437_s26 }
 0x372   : > { %1105 = vrot.lane.b32.xlu0 %v2572_v19, %s2438_s27 }
 0x37a   : > { %1128 = vrot.lane.b32.xlu0 %v2583_v24, %s2438_s27 }
 0x37f   : > { %v2684_v11 = vpop.f32.mrf.mxu0 }
 0x382   : > { %1103 = vrot.lane.b32.xlu0 %v2572_v19, %s2439_s29 }
 0x387   : > { %v831_v12 = vpop.f32.mrf.mxu0 }
 0x38f   : > { %v898_v15 = vpop.f32.mrf.mxu0 }
 0x390   : > { %v931_v14 = vsel %vm596_vm1, %v898_v15, -inf }
 0x391   : > { %932 = vmax.xlane.f32.xlu1 %v931_v14 }
 0x397   : > { %v900_v21 = vpop.f32.mrf.mxu0 }
 0x3a9   : > { %v927_v22 = vpop.xlane.xlu0 %926 }
 0x3aa   : > { %v937_v20 = vsub.f32 %v852_v0, %v927_v22 }
 0x3ac   : > { %v941_v23 = vmul.f32 1.442695, %v937_v20 }
 0x3ae   : > { %2347 = vpow2.f32 %v941_v23 }
 0x3b0   : > { %v936_v25 = vpop.xlane.xlu1 %935 }
 0x3b1   : > { %v940_v26 = vsub.f32 %v921_v2, %v936_v25  ;;  %v930_v27 = vpop.xlane.xlu2 %929 }
 0x3b2   : > { %v938_v28 = vsub.f32 %v875_v4, %v930_v27 }
 0x3b3   : > { %v947_v29 = vmul.f32 1.442695, %v940_v26 }
 0x3b4   : > { %v2348_v30 = vpop.eup %2347  ;;  %v943_v31 = vmul.f32 1.442695, %v938_v28 }
 0x3b5   : > { %2349 = vpow2.f32 %v947_v29  ;;  %v949_v32 = vsel %vm596_vm1, %v2348_v30, 0.0 }
 0x3b6   : > { %2351 = vpow2.f32 %v943_v31  ;;  %950 = vadd.xlane.f32.xlu1 %v949_v32 }
 0x3b9   : > { %v995_v33 = vpop.permute.xlu2 %994 }
 0x3ba   : > { %v1000_v34 = vsel %vm744_vm2, %v995_v33, 0 }
 0x3bb   : > { %v2350_v35 = vpop.eup %2349  ;;  %1009 = vmatpush.bf16.msrb.mxu3 %v1000_v34 }
 0x3bc   : > { %v2352_v36 = vpop.eup %2351  ;;  %v974_v37 = vpop.permute.xlu0 %973  ;;  %v958_v38 = vsel %vm596_vm1, %v2350_v35, 0.0 }
 0x3bd   : > { %v979_v39 = vsel %vm744_vm2, %v974_v37, 0  ;;  %959 = vadd.xlane.f32.xlu2 %v958_v38  ;;  %v952_v40 = vsel %vm596_vm1, %v2352_v36, 0.0 }
 0x3be   : > { %988 = vmatpush.bf16.msrb.mxu2 %v979_v39  ;;  %953 = vadd.xlane.f32.xlu1 %v952_v40 }
 0x3c1   : > { %v1058_v59 = vpop.permute.xlu2 %1057 }
 0x3c4   : > { %v1083_v41 = vpop.permute.xlu0 %1082 }
 0x3c5   : > { %v1088_v42 = vsel %vm596_vm1, %v1083_v41, 0 }
 0x3c6   : > { %1097 = vmatpush.bf16.xpose.msra.mxu3 %v1088_v42 }
 0x3cc   : > { %v1081_v43 = vpop.permute.xlu0 %1080 }
 0x3d4   : > { %v1016_v44 = vpop.permute.xlu0 %1015 }
 0x3d5   : > { %v1021_v45 = vsel %vm744_vm2, %v1016_v44, 0 }
 0x3d6   : > { %1030 = vmatpush.bf16.msrb.mxu0 %v1021_v45 }
 0x3d7   : > { %1059 = vrot.lane.b32.xlu1 %v2570_v18, %s2438_s27 }
 0x3dc   : > { %v1037_v46 = vpop.permute.xlu0 %1036 }
 0x3dd   : > { %v1042_v47 = vsel %vm744_vm2, %v1037_v46, 0 }
 0x3de   : > { %1051 = vmatpush.bf16.msra.mxu1 %v1042_v47 }
 0x3e4   : > { %v1106_v48 = vpop.permute.xlu0 %1105 }
 0x3e5   : > { %v1111_v49 = vsel %vm596_vm1, %v1106_v48, 0 }
 0x3e6   : > { %1120 = vmatpush.bf16.xpose.msra.mxu0 %v1111_v49 }
 0x3ec   : > { %v1129_v51 = vpop.permute.xlu0 %1128 }
 0x3ed   : > { %v1134_v53 = vsel %vm596_vm1, %v1129_v51, 0 }
 0x3ee   : > { %1143 = vmatpush.bf16.xpose.msrb.mxu1 %v1134_v53 }
 0x3f4   : > { %v1104_v25 = vpop.permute.xlu0 %1103 }
 0x404   : > { %v933_v54 = vpop.xlane.xlu1 %932 }
 0x405   : > { %v939_v55 = vsub.f32 %v898_v15, %v933_v54 }
 0x407   : > { %v945_v56 = vmul.f32 1.442695, %v939_v55 }
 0x409   : > { %2353 = vpow2.f32 %v945_v56 }
 0x40f   : > { %v2354_v57 = vpop.eup %2353 }
 0x410   : > { %v955_v58 = vsel %vm596_vm1, %v2354_v57, 0.0 }
 0x411   : > { %956 = vadd.xlane.f32.xlu1 %v955_v58 }
 0x429   : > { %v951_v61 = vpop.xlane.xlu1 %950 }
 0x42a   : > { %2355 = vrcp.f32 %v951_v61  ;;  %1126 = vrot.lane.b32.xlu1 %v2583_v24, %s2439_s29 }
 0x430   : > { %v2356_v63 = vpop.eup %2355  ;;  %v960_v0 = vpop.xlane.xlu2 %959 }
 0x431   : > { %v965_v1 = vmul.f32 %v2356_v63, %v2348_v30  ;;  %2357 = vrcp.f32 %v960_v0  ;;  %v954_v2 = vpop.xlane.xlu1 %953 }
 0x432   : > { %2359 = vrcp.f32 %v954_v2 }
 0x433   : > { %v969_v3 = vpack.c.bf16 %v965_v1, %v965_v1 }
 0x435   : > { %2181 = vmatmul.msk.bf16.vlgmr.msrb.gmra.mxu2 %vm596_vm1, %v969_v3 }
 0x437   : > { %v2358_v4 = vpop.eup %2357 }
 0x438   : > { %v2360_v5 = vpop.eup %2359  ;;  %v968_v6 = vmul.f32 %v2358_v4, %v2350_v35 }
 0x439   : > { %v966_v7 = vmul.f32 %v2360_v5, %v2352_v36 }
 0x43a   : > { %v972_v8 = vpack.c.bf16 %v968_v6, %v968_v6 }
 0x43b   : > { %v970_v10 = vpack.c.bf16 %v966_v7, %v966_v7 }
 0x43c   : > { %2184 = vmatmul.msk.bf16.vlgmr.msra.gmra.mxu1 %vm596_vm1, %v972_v8 }
 0x43d   : > { %2182 = vmatmul.msk.bf16.vlgmr.msrb.gmra.mxu3 %vm596_vm1, %v970_v10 }
 0x449   : > { %v1060_v12 = vpop.permute.xlu1 %1059 }
 0x44a   : > { %v1065_v15 = vsel %vm596_vm1, %v1060_v12, 0 }
 0x44b   : > { %1074 = vmatpush.bf16.xpose.msra.mxu2 %v1065_v15 }
 0x44d   : > { %2186 = vmatmul.msk.bf16.vlgmr.msra.gmra.mxu3 %vm596_vm1, %v1081_v43 }
 0x452   : > { %2185 = vmatmul.msk.bf16.vlgmr.msra.gmra.mxu2 %vm596_vm1, %v1058_v59 }
 0x484   : > { %v957_v14 = vpop.xlane.xlu1 %956 }
 0x485   : > { %2361 = vrcp.f32 %v957_v14 }
 0x48b   : > { %v2362_v21 = vpop.eup %2361 }
 0x48c   : > { %v967_v22 = vmul.f32 %v2362_v21, %v2354_v57 }
 0x48e   : > { %v971_v20 = vpack.c.bf16 %v967_v22, %v967_v22 }
 0x490   : > { %2183 = vmatmul.msk.bf16.vlgmr.msrb.gmra.mxu0 %vm596_vm1, %v971_v20 }
 0x49c   : > { %v1127_v23 = vpop.permute.xlu1 %1126 }
 0x49d   : > { %2188 = vmatmul.msk.bf16.vlgmr.msrb.gmra.mxu1 %vm596_vm1, %v1127_v23 }
 0x4a0   : > { %2187 = vmatmul.msk.bf16.vlgmr.msra.gmra.mxu0 %vm596_vm1, %v1104_v25 }
 0x4b8   : > { %v2713_v26 = vpop.f32.mrf.mxu2 }
 0x4b9   : > { %v2715_v27 = vpop.f32.mrf.mxu1 }
 0x4c0   : > { %v992_v28 = vpop.f32.mrf.mxu2  ;;  %v2717_v29 = vpop.f32.mrf.mxu3 }
 0x4c1   : > { %v2292_v30 = vpack.i.bf16 %v2717_v29, %v2713_v26  ;;  %v1055_v31 = vpop.f32.mrf.mxu1 }
 0x4c8   : > { %v1013_v32 = vpop.f32.mrf.mxu3 }
 0x4d0   : > { %v1099_v33 = vpop.f32.mrf.mxu3 }
 0x4d1   : > { %v1152_v34 = vsel %vm596_vm1, %v1099_v33, -inf }
 0x4d2   : > { %1153 = vmax.xlane.f32.xlu0 %v1152_v34 }
 0x4d5   : > { %v1076_v35 = vpop.f32.mrf.mxu2 }
 0x4d6   : > { %v1149_v36 = vsel %vm596_vm1, %v1076_v35, -inf }
 0x4d7   : > { %1150 = vmax.xlane.f32.xlu2 %v1149_v36 }
 0x4d8   : > { %v1101_v37 = vpop.f32.mrf.mxu3 }
 0x4dd   : > { %v1078_v38 = vpop.f32.mrf.mxu2 }
 0x4e6   : > { %1218 = vrot.lane.b32.xlu0 %v2609_v52, %s2440_s30 }
 0x4ee   : > { %1306 = vrot.lane.b32.xlu0 %v2563_v13, %s2441_s0 }
 0x4f6   : > { %1281 = vrot.lane.b32.xlu0 %v2570_v18, %s2442_s18 }
 0x4fe   : > { %1239 = vrot.lane.b32.xlu0 %v2629_v16, %s2440_s30 }
 0x506   : > { %1260 = vrot.lane.b32.xlu0 %v2633_v17, %s2440_s30 }
 0x50d   : > { %v2730_v39 = vpop.f32.mrf.mxu0 }
 0x50e   : > { %1329 = vrot.lane.b32.xlu0 %v2572_v19, %s2441_s0 }
 0x515   : > { %v1034_v40 = vpop.f32.mrf.mxu0 }
 0x516   : > { %1327 = vrot.lane.b32.xlu0 %v2572_v19, %s2442_s18 }
 0x51a   : > { %v1145_v41 = vpop.f32.mrf.mxu1 }
 0x51b   : > { %v1158_v42 = vsel %vm596_vm1, %v1145_v41, -inf }
 0x51c   : > { %1159 = vmax.xlane.f32.xlu2 %v1158_v42 }
 0x51d   : > { %v1122_v43 = vpop.f32.mrf.mxu0 }
 0x51e   : > { %v1155_v57 = vsel %vm596_vm1, %v1122_v43, -inf }
 0x522   : > { %v1147_v44 = vpop.f32.mrf.mxu1 }
 0x525   : > { %v1124_v45 = vpop.f32.mrf.mxu0 }
 0x534   : > { %1197 = vrot.lane.b32.xlu2 %v2603_v50, %s2440_s30 }
 0x545   : > { %v1154_v49 = vpop.xlane.xlu0 %1153 }
 0x546   : > { %v1162_v51 = vsub.f32 %v1099_v33, %v1154_v49 }
 0x548   : > { %v1167_v55 = vmul.f32 1.442695, %v1162_v51 }
 0x54a   : > { %v1151_v46 = vpop.xlane.xlu2 %1150 }
 0x54b   : > { %v1161_v47 = vsub.f32 %v1076_v35, %v1151_v46 }
 0x54d   : > { %v1165_v48 = vmul.f32 1.442695, %v1161_v47 }
 0x54f   : > { %2363 = vpow2.f32 %v1165_v48 }
 0x550   : > { %2365 = vpow2.f32 %v1167_v55 }
 0x555   : > { %v2364_v53 = vpop.eup %2363 }
 0x556   : > { %v1173_v54 = vsel %vm596_vm1, %v2364_v53, 0.0  ;;  %v2366_v59 = vpop.eup %2365 }
 0x557   : > { %1174 = vadd.xlane.f32.xlu1 %v1173_v54  ;;  %v1176_v63 = vsel %vm596_vm1, %v2366_v59, 0.0 }
 0x558   : > { %v1219_v19 = vpop.permute.xlu0 %1218 }
 0x559   : > { %v1224_v56 = vsel %vm744_vm2, %v1219_v19, 0 }
 0x55a   : > { %1233 = vmatpush.bf16.msrb.mxu3 %v1224_v56 }
 0x55d   : > { %1156 = vmax.xlane.f32.xlu2 %v1155_v57 }
 0x560   : > { %v1307_v58 = vpop.permute.xlu0 %1306 }
 0x561   : > { %v1312_v61 = vsel %vm596_vm1, %v1307_v58, 0 }
 0x562   : > { %1321 = vmatpush.bf16.xpose.msra.mxu3 %v1312_v61 }
 0x565   : > { %1177 = vadd.xlane.f32.xlu2 %v1176_v63 }
 0x568   : > { %v1282_v0 = vpop.permute.xlu0 %1281 }
 0x570   : > { %v1240_v1 = vpop.permute.xlu0 %1239 }
 0x571   : > { %v1245_v2 = vsel %vm744_vm2, %v1240_v1, 0 }
 0x572   : > { %1254 = vmatpush.bf16.msrb.mxu0 %v1245_v2 }
 0x578   : > { %v1261_v3 = vpop.permute.xlu0 %1260 }
 0x579   : > { %v1266_v4 = vsel %vm744_vm2, %v1261_v3, 0 }
 0x57a   : > { %1275 = vmatpush.bf16.msra.mxu1 %v1266_v4 }
 0x57d   : > { %1283 = vrot.lane.b32.xlu2 %v2570_v18, %s2441_s0 }
 0x580   : > { %v1330_v5 = vpop.permute.xlu0 %1329 }
 0x581   : > { %v1335_v6 = vsel %vm596_vm1, %v1330_v5, 0 }
 0x582   : > { %1344 = vmatpush.bf16.xpose.msra.mxu0 %v1335_v6 }
 0x588   : > { %v1328_v56 = vpop.permute.xlu0 %1327 }
 0x58f   : > { %v1160_v7 = vpop.xlane.xlu2 %1159 }
 0x590   : > { %v1164_v8 = vsub.f32 %v1145_v41, %v1160_v7 }
 0x592   : > { %v1171_v10 = vmul.f32 1.442695, %v1164_v8 }
 0x594   : > { %2367 = vpow2.f32 %v1171_v10 }
 0x597   : > { %v1198_v12 = vpop.permute.xlu2 %1197 }
 0x598   : > { %v1203_v15 = vsel %vm744_vm2, %v1198_v12, 0 }
 0x599   : > { %1212 = vmatpush.bf16.msrb.mxu2 %v1203_v15 }
 0x59a   : > { %v2368_v14 = vpop.eup %2367 }
 0x59b   : > { %v1182_v21 = vsel %vm596_vm1, %v2368_v14, 0.0 }
 0x59c   : > { %1183 = vadd.xlane.f32.xlu1 %v1182_v21 }
 0x5b5   : > { %1304 = vrot.lane.b32.xlu1 %v2563_v13, %s2442_s18 }
 0x5bd   : > { %1352 = vrot.lane.b32.xlu1 %v2583_v24, %s2441_s0 }
 0x5ca   : > { %v1175_v18 = vpop.xlane.xlu1 %1174 }
 0x5cb   : > { %2369 = vrcp.f32 %v1175_v18 }
 0x5d0   : > { %v1157_v22 = vpop.xlane.xlu2 %1156 }
 0x5d1   : > { %v2370_v20 = vpop.eup %2369  ;;  %v1163_v23 = vsub.f32 %v1122_v43, %v1157_v22 }
 0x5d2   : > { %v1189_v25 = vmul.f32 %v2370_v20, %v2364_v53 }
 0x5d3   : > { %v1169_v28 = vmul.f32 1.442695, %v1163_v23  ;;  %v2307_v23 = vpack.i.bf16 %v2715_v27, %v2730_v39 }
 0x5d4   : > { %v1193_v31 = vpack.c.bf16 %v1189_v25, %v1189_v25 }
 0x5d5   : > { %2371 = vpow2.f32 %v1169_v28 }
 0x5d6   : > { %2189 = vmatmul.msk.bf16.vlgmr.msrb.gmra.mxu2 %vm596_vm1, %v1193_v31 }
 0x5d8   : > { %v1178_v32 = vpop.xlane.xlu2 %1177 }
 0x5d9   : > { %2373 = vrcp.f32 %v1178_v32 }
 0x5db   : > { %v2372_v33 = vpop.eup %2371 }
 0x5dc   : > { %v1179_v34 = vsel %vm596_vm1, %v2372_v33, 0.0 }
 0x5dd   : > { %1180 = vadd.xlane.f32.xlu2 %v1179_v34 }
 0x5df   : > { %v2374_v13 = vpop.eup %2373 }
 0x5e0   : > { %v1190_v35 = vmul.f32 %v2374_v13, %v2366_v59  ;;  %v1284_v36 = vpop.permute.xlu2 %1283 }
 0x5e1   : > { %v1289_v37 = vsel %vm596_vm1, %v1284_v36, 0 }
 0x5e2   : > { %v1194_v38 = vpack.c.bf16 %v1190_v35, %v1190_v35  ;;  %1298 = vmatpush.bf16.xpose.msra.mxu2 %v1289_v37 }
 0x5e4   : > { %2190 = vmatmul.msk.bf16.vlgmr.msrb.gmra.mxu3 %vm596_vm1, %v1194_v38 }
 0x5e9   : > { %2193 = vmatmul.msk.bf16.vlgmr.msra.gmra.mxu2 %vm596_vm1, %v1282_v0 }
 0x5f5   : > { %1350 = vrot.lane.b32.xlu2 %v2583_v24, %s2442_s18 }
 0x60f   : > { %v1184_v40 = vpop.xlane.xlu1 %1183 }
 0x610   : > { %2375 = vrcp.f32 %v1184_v40 }
 0x616   : > { %v2376_v41 = vpop.eup %2375 }
 0x617   : > { %v1192_v42 = vmul.f32 %v2376_v41, %v2368_v14 }
 0x619   : > { %v1196_v43 = vpack.c.bf16 %v1192_v42, %v1192_v42 }
 0x61b   : > { %2192 = vmatmul.msk.bf16.vlgmr.msra.gmra.mxu1 %vm596_vm1, %v1196_v43 }
 0x627   : > { %v1305_v44 = vpop.permute.xlu1 %1304 }
 0x628   : > { %2194 = vmatmul.msk.bf16.vlgmr.msra.gmra.mxu3 %vm596_vm1, %v1305_v44 }
 0x62f   : > { %v1353_v45 = vpop.permute.xlu1 %1352 }
 0x630   : > { %v1358_v46 = vsel %vm596_vm1, %v1353_v45, 0 }
 0x631   : > { %1367 = vmatpush.bf16.xpose.msrb.mxu1 %v1358_v46 }
 0x650   : > { %v1181_v47 = vpop.xlane.xlu2 %1180 }
 0x651   : > { %2377 = vrcp.f32 %v1181_v47 }
 0x657   : > { %v2378_v48 = vpop.eup %2377 }
 0x658   : > { %v1191_v49 = vmul.f32 %v2378_v48, %v2372_v33  ;;  %v1351_v51 = vpop.permute.xlu2 %1350 }
 0x659   : > { %v1214_v24 = vpop.f32.mrf.mxu2  ;;  %2196 = vmatmul.msk.bf16.vlgmr.msrb.gmra.mxu1 %vm596_vm1, %v1351_v51 }
 0x65a   : > { %v1195_v53 = vpack.c.bf16 %v1191_v49, %v1191_v49 }
 0x65c   : > { %2191 = vmatmul.msk.bf16.vlgmr.msrb.gmra.mxu0 %vm596_vm1, %v1195_v53 }
 0x661   : > { %v1216_v54 = vpop.f32.mrf.mxu2 }
 0x667   : > { %v1235_v55 = vpop.f32.mrf.mxu3 }
 0x668   : > { %v2297_v19 = vpack.i.bf16 %v1235_v55, %v1214_v24 }
 0x66c   : > { %v1300_v57 = vpop.f32.mrf.mxu2  ;;  %2195 = vmatmul.msk.bf16.vlgmr.msra.gmra.mxu0 %vm596_vm1, %v1328_v56 }
 0x66d   : > { %v1373_v58 = vsel %vm596_vm1, %v1300_v57, -inf }
 0x66e   : > { %1374 = vmax.xlane.f32.xlu1 %v1373_v58 }
 0x66f   : > { %v1237_v59 = vpop.f32.mrf.mxu3 }
 0x674   : > { %v1302_v61 = vpop.f32.mrf.mxu2 }
 0x698   : > { %v2768_v63 = vpop.f32.mrf.mxu1 }
 0x6a0   : > { %v1279_v0 = vpop.f32.mrf.mxu1 }
 0x6ab   : > { %v1323_v1 = vpop.f32.mrf.mxu3 }
 0x6ac   : > { %v1376_v2 = vsel %vm596_vm1, %v1323_v1, -inf }
 0x6ad   : > { %1377 = vmax.xlane.f32.xlu0 %v1376_v2 }
 0x6b3   : > { %v1325_v3 = vpop.f32.mrf.mxu3 }
 0x6c1   : > { %1421 = vrot.lane.b32.xlu0 %v2603_v50, %s2443_s19 }
 0x6d6   : > { %v1369_v4 = vpop.f32.mrf.mxu1 }
 0x6d7   : > { %v1382_v5 = vsel %vm596_vm1, %v1369_v4, -inf }
 0x6d8   : > { %1383 = vmax.xlane.f32.xlu1 %v1382_v5 }
 0x6d9   : > { %v2774_v6 = vpop.f32.mrf.mxu0 }
 0x6da   : > { %v2312_v7 = vpack.i.bf16 %v2768_v63, %v2774_v6 }
 0x6de   : > { %v1371_v8 = vpop.f32.mrf.mxu1 }
 0x6e1   : > { %v1258_v10 = vpop.f32.mrf.mxu0  ;;  %v1375_v12 = vpop.xlane.xlu1 %1374 }
 0x6e2   : > { %v1385_v15 = vsub.f32 %v1300_v57, %v1375_v12 }
 0x6e4   : > { %v1389_v14 = vmul.f32 1.442695, %v1385_v15 }
 0x6e6   : > { %2379 = vpow2.f32 %v1389_v14  ;;  %v2257_v14 = vld [vmem:[%s3023_s4] sm:$0xff] }
 0x6e9   : > { %v1346_v21 = vpop.f32.mrf.mxu0 }
 0x6ea   : > { %v1379_v18 = vsel %vm596_vm1, %v1346_v21, -inf }
 0x6eb   : > { %1380 = vmax.xlane.f32.xlu2 %v1379_v18 }
 0x6ec   : > { %v2380_v50 = vpop.eup %2379 }
 0x6ed   : > { %v1397_v22 = vsel %vm596_vm1, %v2380_v50, 0.0 }
 0x6ee   : > { %1398 = vadd.xlane.f32.xlu0 %v1397_v22 }
 0x6f1   : > { %v1348_v20 = vpop.f32.mrf.mxu0 }
 0x702   : > { %1463 = vrot.lane.b32.xlu0 %v2629_v16, %s2443_s19 }
 0x70a   : > { %2298 = vrot.lane.b32.xlu0 %v2297_v19, %s2444_s20 }
 0x712   : > { %2308 = vrot.lane.b32.xlu0 %v2307_v23, %s2445_s22 }
 0x720   : > { %v1378_v25 = vpop.xlane.xlu0 %1377 }
 0x721   : > { %v1386_v28 = vsub.f32 %v1323_v1, %v1378_v25 }
 0x723   : > { %v1391_v31 = vmul.f32 1.442695, %v1386_v28 }
 0x725   : > { %2381 = vpow2.f32 %v1391_v31 }
 0x72b   : > { %v2382_v32 = vpop.eup %2381 }
 0x72c   : > { %v1400_v33 = vsel %vm596_vm1, %v2382_v32, 0.0 }
 0x72d   : > { %1401 = vadd.xlane.f32.xlu1 %v1400_v33 }
 0x733   : > { %v1422_v34 = vpop.permute.xlu0 %1421 }
 0x734   : > { %v1427_v13 = vsel %vm744_vm2, %v1422_v34, 0 }
 0x735   : > { %1436 = vmatpush.bf16.msrb.mxu2 %v1427_v13 }
 0x746   : > { %1442 = vrot.lane.b32.xlu1 %v2609_v52, %s2443_s19 }
 0x74b   : > { %v1384_v16 = vpop.xlane.xlu1 %1383 }
 0x74c   : > { %v1388_v35 = vsub.f32 %v1369_v4, %v1384_v16  ;;  %v2258_v4 = vld [vmem:[%s3023_s4 + $0x8] sm:$0xff] }
 0x74d   : > { %1601 = vmatpush.bf16.msra.mxu2 %v2258_v4 }
 0x74e   : > { %v1395_v27 = vmul.f32 1.442695, %v1388_v35  ;;  %2293 = vrot.lane.b32.xlu1 %v2292_v30, %s2445_s22  ;;  %s3002_s22 = scalar_lea.vmem %s3035_s16, %s2156_s28 }
 0x750   : > { %2383 = vpow2.f32 %v1395_v27 }
 0x751   : > { %1602 = vmatpush.bf16.msra.mxu2 %v2257_v14 }
 0x756   : > { %v2384_v39 = vpop.eup %2383 }
 0x757   : > { %v1406_v36 = vsel %vm596_vm1, %v2384_v39, 0.0 }
 0x758   : > { %1407 = vadd.xlane.f32.xlu2 %v1406_v36 }
 0x75e   : > { %v1381_v37 = vpop.xlane.xlu2 %1380 }
 0x75f   : > { %v1387_v38 = vsub.f32 %v1346_v21, %v1381_v37 }
 0x761   : > { %v1393_v40 = vmul.f32 1.442695, %v1387_v38  ;;  %v1399_v41 = vpop.xlane.xlu0 %1398 }
 0x762   : > { %2385 = vrcp.f32 %v1399_v41 }
 0x763   : > { %2387 = vpow2.f32 %v1393_v40 }
 0x768   : > { %v2386_v42 = vpop.eup %2385 }
 0x769   : > { %v2388_v52 = vpop.eup %2387  ;;  %v1413_v43 = vmul.f32 %v2386_v42, %v2380_v50 }
 0x76a   : > { %v1403_v44 = vsel %vm596_vm1, %v2388_v52, 0.0 }
 0x76b   : > { %v1417_v45 = vpack.c.bf16 %v1413_v43, %v1413_v43  ;;  %1404 = vadd.xlane.f32.xlu2 %v1403_v44 }
 0x76d   : > { %2197 = vmatmul.msk.bf16.vlgmr.msrb.gmra.mxu2 %vm596_vm1, %v1417_v45 }
 0x774   : > { %v1464_v26 = vpop.permute.xlu0 %1463 }
 0x775   : > { %v1469_v29 = vsel %vm744_vm2, %v1464_v26, 0  ;;  %v2838_v26 = vld [vmem:[%s2555_s17] sm:$0xff] }
 0x776   : > { %1478 = vmatpush.bf16.msrb.mxu0 %v1469_v29 }
 0x77c   : > { %v2299_v6 = vpop.permute.xlu0 %2298 }
 0x77d   : > { %v2301_v22 = vunpack.i.h.bf16 %v2299_v6  ;;  %v2300_v20 = vunpack.i.l.bf16 %v2299_v6 }
 0x783   : > { %1484 = vrot.lane.b32.xlu2 %v2633_v17, %s2443_s19 }
 0x7a0   : > { %v1402_v30 = vpop.xlane.xlu1 %1401 }
 0x7a1   : > { %2389 = vrcp.f32 %v1402_v30 }
 0x7a7   : > { %v2390_v46 = vpop.eup %2389 }
 0x7a8   : > { %v1414_v47 = vmul.f32 %v2390_v46, %v2382_v32 }
 0x7aa   : > { %v1418_v51 = vpack.c.bf16 %v1414_v47, %v1414_v47 }
 0x7b8   : > { %v1443_v48 = vpop.permute.xlu1 %1442 }
 0x7b9   : > { %v1448_v49 = vsel %vm744_vm2, %v1443_v48, 0 }
 0x7ba   : > { %1457 = vmatpush.bf16.msrb.mxu3 %v1448_v49  ;;  %v2843_v49 = vld [vmem:[%s2555_s17 + $0x8] sm:$0xff] }
 0x7bd   : > { %2198 = vmatmul.msk.bf16.vlgmr.msrb.gmra.mxu3 %vm596_vm1, %v1418_v51 }
 0x7c0   : > { %v2294_v21 = vpop.permute.xlu1 %2293 }
 0x7c1   : > { %v2296_v18 = vunpack.i.h.bf16 %v2294_v21  ;;  %v2295_v63 = vunpack.i.l.bf16 %v2294_v21 }
 0x7c3   : > { %v1553_v50 = vsel %vm596_vm1, %v2661_v60, %v2295_v63 }
 0x7c4   : > { %v1558_v31 = vsel %vm1557_vm3, %v1553_v50, %v2300_v20 }
 0x7cb   : > { %v1408_v24 = vpop.xlane.xlu2 %1407 }
 0x7cc   : > { %2391 = vrcp.f32 %v1408_v24 }
 0x7d2   : > { %v2392_v54 = vpop.eup %2391 }
 0x7d3   : > { %v1416_v19 = vmul.f32 %v2392_v54, %v2384_v39 }
 0x7d5   : > { %v1420_v59 = vpack.c.bf16 %v1416_v19, %v1416_v19  ;;  %v2848_v19 = vld [vmem:[%s2555_s17 + $0x10] sm:$0xff] }
 0x7de   : > { %v1405_v53 = vpop.xlane.xlu2 %1404 }
 0x7df   : > { %2393 = vrcp.f32 %v1405_v53 }
 0x7e5   : > { %v2394_v55 = vpop.eup %2393 }
 0x7e6   : > { %v1415_v56 = vmul.f32 %v2394_v55, %v2388_v52  ;;  %v1485_v17 = vpop.permute.xlu2 %1484 }
 0x7e7   : > { %v1490_v57 = vsel %vm744_vm2, %v1485_v17, 0 }
 0x7e8   : > { %v1419_v58 = vpack.c.bf16 %v1415_v56, %v1415_v56  ;;  %1499 = vmatpush.bf16.msra.mxu1 %v1490_v57 }
 0x7ea   : > { %2199 = vmatmul.msk.bf16.vlgmr.msrb.gmra.mxu0 %vm596_vm1, %v1419_v58 }
 0x7eb   : > { %2200 = vmatmul.msk.bf16.vlgmr.msra.gmra.mxu1 %vm596_vm1, %v1420_v59 }
 0x7f0   : > { %v1438_v61 = vpop.f32.mrf.mxu2 }
 0x7f8   : > { %v1440_v0 = vpop.f32.mrf.mxu2 }
 0x840   : > { %v1459_v1 = vpop.f32.mrf.mxu3 }
 0x841   : > { %v2302_v2 = vpack.i.bf16 %v1459_v1, %v1438_v61  ;;  %v2853_v61 = vld [vmem:[%s2555_s17 + $0x18] sm:$0xff] }
 0x843   : > { %2303 = vrot.lane.b32.xlu1 %v2302_v2, %s2446_s23 }
 0x848   : > { %v1461_v3 = vpop.f32.mrf.mxu3 }
 0x84b   : > { %2313 = vrot.lane.b32.xlu1 %v2312_v7, %s2444_s20  ;;  %v1554_v7 = vsel %vm596_vm1, %v2663_v62, %v2296_v18  ;;  %v2309_v62 = vpop.permute.xlu0 %2308 }
 0x84c   : > { %v1559_v32 = vsel %vm1557_vm3, %v1554_v7, %v2301_v22  ;;  %v2311_v16 = vunpack.i.h.bf16 %v2309_v62  ;;  %v2310_v35 = vunpack.i.l.bf16 %v2309_v62 }
 0x84e   : > { %v1556_v37 = vsel %vm596_vm1, %v2684_v11, %v2311_v16  ;;  %v1555_v38 = vsel %vm596_vm1, %v2674_v9, %v2310_v35  ;;  %v1614_v11 = vld [vmem:[%s3020_s1] sm:$0xff] }
 0x84f   : > { %v2322_v9 = vld [vmem:[%s3024_s5] ss:$0 sm:$0xff]  ;;  %v1615_v29 = vadd.f32 %v2838_v26, %v1614_v11  ;;  %v1616_v51 = vadd.f32 %v2843_v49, %v1614_v11  ;;  %v1617_v56 = vadd.f32 %v2848_v19, %v1614_v11  ;;  %v1618_v0 = vadd.f32 %v2853_v61, %v1614_v11 }
 0x867   : > { %v1480_v5 = vpop.f32.mrf.mxu0 }
 0x868   : > { %v1501_v8 = vpop.f32.mrf.mxu1 }
 0x869   : > { %v2317_v10 = vpack.i.bf16 %v1501_v8, %v1480_v5  ;;  %v2447_v5 = vmov 32.0  }
 0x86a   : > { %2395 = vrcp.f32 %v2447_v5 }
 0x86b   : > { %2318 = vrot.lane.b32.xlu0 %v2317_v10, %s2446_s23 }
 0x86f   : > { %v1482_v12 = vpop.f32.mrf.mxu0 }
 0x870   : > { %v1503_v15 = vpop.f32.mrf.mxu1  ;;  %v2396_v8 = vpop.eup %2395 }
 0x871   : > { %v1638_v10 = vmul.f32 32.0, %v2396_v8  ;;  %vm1642_vm5 = vweird.f32 %v2396_v8 }
 0x873   : > { %v1639_v12 = vsub.f32 1.0, %v1638_v10 }
 0x875   : > { %v1640_v15 = vmul.f32 %v2396_v8, %v1639_v12 }
 0x877   : > { %v1641_v14 = vadd.f32 %v2396_v8, %v1640_v15  ;;  %v2267_v15 = vld [vmem:[%s3031_s12 + $0x30] sm:$0xff] }
 0x879   : > { %v2857_v21 = vsel %vm1642_vm5, %v2396_v8, %v1641_v14  ;;  %v2268_v8 = vld [vmem:[%s3031_s12 + $0x38] sm:$0xff] }
 0x87a   : > { %1855 = vmatpush.bf16.msra.mxu0 %v2268_v8 }
 0x87e   : > { %1856 = vmatpush.bf16.msra.mxu0 %v2267_v15 }
 0x8b5   : > { %v2304_v23 = vpop.permute.xlu1 %2303 }
 0x8b6   : > { %v2306_v25 = vunpack.i.h.bf16 %v2304_v23  ;;  %v2305_v28 = vunpack.i.l.bf16 %v2304_v23 }
 0x8b8   : > { %v1563_v33 = vsel %vm1562_vm4, %v1558_v31, %v2305_v28  ;;  %v1564_v34 = vsel %vm1562_vm4, %v1559_v32, %v2306_v25 }
 0x8b9   : > { %v1567_v13 = vpack.c.bf16 %v1564_v34, %v1563_v33 }
 0x8bb   : > { %2209 = vmatmul.msk.bf16.vlgmr.msra.gmra.mxu2 %vm548_vm0, %v1567_v13 }
 0x8bd   : > { %v2314_v60 = vpop.permute.xlu1 %2313 }
 0x8be   : > { %v2316_v27 = vunpack.i.h.bf16 %v2314_v60  ;;  %v2315_v39 = vunpack.i.l.bf16 %v2314_v60 }
 0x8c0   : > { %v1561_v42 = vsel %vm1557_vm3, %v1556_v37, %v2316_v27  ;;  %v1560_v52 = vsel %vm1557_vm3, %v1555_v38, %v2315_v39  ;;  %v2260_v39 = vld [vmem:[%s3029_s10 + $0x8] sm:$0xff] }
 0x8c1   : > { %1768 = vmatpush.bf16.msra.mxu3 %v2260_v39 }
 0x8dd   : > { %v2319_v36 = vpop.permute.xlu0 %2318 }
 0x8de   : > { %v2321_v40 = vunpack.i.h.bf16 %v2319_v36  ;;  %v2320_v41 = vunpack.i.l.bf16 %v2319_v36 }
 0x8e0   : > { %v1565_v43 = vsel %vm1562_vm4, %v1560_v52, %v2320_v41  ;;  %v1566_v44 = vsel %vm1562_vm4, %v1561_v42, %v2321_v40  ;;  %v2259_v40 = vld [vmem:[%s3029_s10] sm:$0xff] }
 0x8e1   : > { %v1568_v45 = vpack.c.bf16 %v1566_v44, %v1565_v43  ;;  %1769 = vmatpush.bf16.msra.mxu3 %v2259_v40 }
 0x8e3   : > { %2210 = vmatmul.msk.bf16.gmra.mxu2 %vm548_vm0, %v1568_v45 }
 0x93e   : > { %v1604_v30 = vpop.f32.mrf.mxu2 }
 0x93f   : > { %v1605_v46 = vadd.f32 %v2322_v9, %v1604_v30 }
 0x941   : > { %v1619_v47 = vadd.f32 %v1615_v29, %v1605_v46 }
 0x943   : > { %v1625_v48 = vsel %vm548_vm0, %v1619_v47, 0.0 }
 0x944   : > { %1626 = vadd.xlane.f32.xlu2 %v1625_v48 }
 0x946   : > { %v1606_v24 = vpop.f32.mrf.mxu2 }
 0x947   : > { %v1607_v53 = vadd.f32 %v2322_v9, %v1606_v24 }
 0x949   : > { %v1620_v54 = vadd.f32 %v1616_v51, %v1607_v53  ;;  %v2323_v53 = vld [vmem:[%s3025_s6] ss:$0 sm:$0xff] }
 0x94b   : > { %v1628_v55 = vsel %vm548_vm0, %v1620_v54, 0.0 }
 0x94c   : > { %1629 = vadd.xlane.f32.xlu1 %v1628_v55 }
 0x966   : > { %v1609_v17 = vpop.f32.mrf.mxu2 }
 0x967   : > { %v1610_v57 = vadd.f32 %v2322_v9, %v1609_v17  ;;  %v2324_v17 = vld [vmem:[%s3026_s7] ss:$0 sm:$0xff] }
 0x969   : > { %v1621_v58 = vadd.f32 %v1617_v56, %v1610_v57 }
 0x96b   : > { %v1631_v59 = vsel %vm548_vm0, %v1621_v58, 0.0 }
 0x96c   : > { %1632 = vadd.xlane.f32.xlu0 %v1631_v59 }
 0x96e   : > { %v1611_v1 = vpop.f32.mrf.mxu2 }
 0x96f   : > { %v1612_v2 = vadd.f32 %v2322_v9, %v1611_v1 }
 0x971   : > { %v1622_v3 = vadd.f32 %v1618_v0, %v1612_v2 }
 0x973   : > { %v1634_v4 = vsel %vm548_vm0, %v1622_v3, 0.0 }
 0x974   : > { %1635 = vadd.xlane.f32.xlu2 %v1634_v4 }
 0x9b7   : > { %v1627_v18 = vpop.xlane.xlu2 %1626 }
 0x9b8   : > { %v1644_v63 = vmul.f32 %v2857_v21, %v1627_v18 }
 0x9ba   : > { %v1648_v6 = vsub.f32 %v1619_v47, %v1644_v63 }
 0x9bc   : > { %v1652_v7 = vmul.f32 %v1648_v6, %v1648_v6 }
 0x9be   : > { %v1656_v50 = vsel %vm548_vm0, %v1652_v7, 0.0 }
 0x9bf   : > { %v1630_v22 = vpop.xlane.xlu1 %1629  ;;  %1657 = vadd.xlane.f32.xlu1 %v1656_v50 }
 0x9c0   : > { %v1645_v20 = vmul.f32 %v2857_v21, %v1630_v22  ;;  %v2265_v22 = vld [vmem:[%s3031_s12 + $0x20] sm:$0xff] }
 0x9c2   : > { %v1649_v23 = vsub.f32 %v1620_v54, %v1645_v20 }
 0x9c4   : > { %v1653_v25 = vmul.f32 %v1649_v23, %v1649_v23 }
 0x9c6   : > { %v1659_v28 = vsel %vm548_vm0, %v1653_v25, 0.0 }
 0x9c7   : > { %1660 = vadd.xlane.f32.xlu0 %v1659_v28 }
 0x9df   : > { %v1633_v31 = vpop.xlane.xlu0 %1632 }
 0x9e0   : > { %v1646_v32 = vmul.f32 %v2857_v21, %v1633_v31 }
 0x9e2   : > { %v2864_v33 = vsub.f32 %v1621_v58, %v1646_v32 }
 0x9e4   : > { %v1654_v34 = vmul.f32 %v2864_v33, %v2864_v33 }
 0x9e6   : > { %v1662_v13 = vsel %vm548_vm0, %v1654_v34, 0.0 }
 0x9e7   : > { %1663 = vadd.xlane.f32.xlu2 %v1662_v13  ;;  %v1636_v62 = vpop.xlane.xlu2 %1635 }
 0x9e8   : > { %v1647_v60 = vmul.f32 %v2857_v21, %v1636_v62 }
 0x9ea   : > { %v2870_v16 = vsub.f32 %v1622_v3, %v1647_v60 }
 0x9ec   : > { %v1655_v35 = vmul.f32 %v2870_v16, %v2870_v16 }
 0x9ee   : > { %v1665_v27 = vsel %vm548_vm0, %v1655_v35, 0.0 }
 0x9ef   : > { %1666 = vadd.xlane.f32.xlu1 %v1665_v27 }
 0xa32   : > { %v1658_v36 = vpop.xlane.xlu1 %1657 }
 0xa33   : > { %v1668_v37 = vmul.f32 %v1658_v36, %v2857_v21 }
 0xa35   : > { %v1672_v38 = vadd.f32 1e-05, %v1668_v37 }
 0xa37   : > { %2397 = vrsqrt.f32 %v1672_v38  ;;  %vm1682_vm7 = vweird.f32 %v1672_v38 }
 0xa3a   : > { %v1661_v41 = vpop.xlane.xlu0 %1660 }
 0xa3b   : > { %v1669_v42 = vmul.f32 %v1661_v41, %v2857_v21  ;;  %v2264_v41 = vld [vmem:[%s3031_s12 + $0x18] sm:$0xff] }
 0xa3d   : > { %v2398_v52 = vpop.eup %2397  ;;  %v1673_v43 = vadd.f32 1e-05, %v1669_v42  ;;  %v2261_v42 = vld [vmem:[%s3031_s12] sm:$0xff] }
 0xa3e   : > { %v1677_v44 = vmul.f32 %v2398_v52, %v1672_v38  ;;  %vm1683_vm6 = vweird.f32 %v2398_v52 }
 0xa3f   : > { %2399 = vrsqrt.f32 %v1673_v43  ;;  %vm1684_vm8 = vmor %vm1682_vm7, %vm1683_vm6  ;;  %vm1692_vm10 = vweird.f32 %v1673_v43 }
 0xa40   : > { %v1678_v45 = vmul.f32 %v2398_v52, %v1677_v44 }
 0xa42   : > { %v1679_v11 = vmul.f32 0.5, %v1678_v45 }
 0xa44   : > { %v1680_v9 = vsub.f32 1.5, %v1679_v11 }
 0xa45   : > { %v2400_v29 = vpop.eup %2399 }
 0xa46   : > { %v1681_v30 = vmul.f32 %v2398_v52, %v1680_v9  ;;  %v1687_v46 = vmul.f32 %v2400_v29, %v1673_v43  ;;  %vm1693_vm9 = vweird.f32 %v2400_v29  ;;  %v2325_v43 = vld [vmem:[%s3030_s11] ss:$0 sm:$0xff] }
 0xa47   : > { %vm1694_vm11 = vmor %vm1692_vm10, %vm1693_vm9 }
 0xa48   : > { %v1688_v47 = vmul.f32 %v2400_v29, %v1687_v46  ;;  %v1685_v48 = vsel %vm1684_vm8, %v2398_v52, %v1681_v30 }
 0xa49   : > { %v1716_v54 = vmul.f32 %v1685_v48, %v1648_v6  ;;  %v2266_v6 = vld [vmem:[%s3031_s12 + $0x28] sm:$0xff] }
 0xa4a   : > { %v1689_v51 = vmul.f32 0.5, %v1688_v47  ;;  %1857 = vmatpush.bf16.msra.mxu0 %v2266_v6 }
 0xa4b   : > { %v1723_v57 = vmul.f32 %v2323_v53, %v1716_v54 }
 0xa4c   : > { %v1690_v24 = vsub.f32 1.5, %v1689_v51 }
 0xa4d   : > { %v2889_v0 = vadd.f32 %v2324_v17, %v1723_v57 }
 0xa4e   : > { %v1691_v55 = vmul.f32 %v2400_v29, %v1690_v24  ;;  %1858 = vmatpush.bf16.msra.mxu0 %v2265_v22 }
 0xa50   : > { %v1695_v56 = vsel %vm1694_vm11, %v2400_v29, %v1691_v55  ;;  %v2326_v55 = vld [vmem:[%s3032_s13] ss:$0 sm:$0xff] }
 0xa51   : > { %v1717_v58 = vmul.f32 %v1695_v56, %v1649_v23 }
 0xa52   : > { %1859 = vmatpush.bf16.msra.mxu0 %v2264_v41 }
 0xa53   : > { %v1724_v59 = vmul.f32 %v2323_v53, %v1717_v58 }
 0xa55   : > { %v2891_v1 = vadd.f32 %v2324_v17, %v1724_v59 }
 0xa57   : > { %v1734_v2 = vpack.c.bf16 %v2891_v1, %v2889_v0 }
 0xa59   : > { %2219 = vmatmul.msk.bf16.vlgmr.msra.gmra.mxu3 %vm548_vm0, %v1734_v2 }
 0xa5a   : > { %v1664_v3 = vpop.xlane.xlu2 %1663 }
 0xa5b   : > { %v1670_v4 = vmul.f32 %v1664_v3, %v2857_v21 }
 0xa5d   : > { %v1674_v5 = vadd.f32 1e-05, %v1670_v4 }
 0xa5f   : > { %2401 = vrsqrt.f32 %v1674_v5  ;;  %vm1702_vm13 = vweird.f32 %v1674_v5 }
 0xa62   : > { %v1667_v10 = vpop.xlane.xlu1 %1666 }
 0xa63   : > { %v1671_v12 = vmul.f32 %v1667_v10, %v2857_v21 }
 0xa65   : > { %v2402_v14 = vpop.eup %2401  ;;  %v1675_v18 = vadd.f32 1e-05, %v1671_v12 }
 0xa66   : > { %v1697_v63 = vmul.f32 %v2402_v14, %v1674_v5  ;;  %vm1703_vm12 = vweird.f32 %v2402_v14 }
 0xa67   : > { %2403 = vrsqrt.f32 %v1675_v18  ;;  %vm1704_vm14 = vmor %vm1702_vm13, %vm1703_vm12  ;;  %vm1712_vm1 = vweird.f32 %v1675_v18 }
 0xa68   : > { %v1698_v7 = vmul.f32 %v2402_v14, %v1697_v63 }
 0xa6a   : > { %v1699_v50 = vmul.f32 0.5, %v1698_v7 }
 0xa6c   : > { %v1700_v20 = vsub.f32 1.5, %v1699_v50 }
 0xa6d   : > { %v2404_v23 = vpop.eup %2403 }
 0xa6e   : > { %v1701_v25 = vmul.f32 %v2402_v14, %v1700_v20  ;;  %v1707_v28 = vmul.f32 %v2404_v23, %v1675_v18  ;;  %vm1713_vm15 = vweird.f32 %v2404_v23 }
 0xa6f   : > { %vm1714_vm2 = vmor %vm1712_vm1, %vm1713_vm15 }
 0xa70   : > { %v1708_v31 = vmul.f32 %v2404_v23, %v1707_v28  ;;  %v1705_v32 = vsel %vm1704_vm14, %v2402_v14, %v1701_v25 }
 0xa71   : > { %v1718_v62 = vmul.f32 %v1705_v32, %v2864_v33  ;;  %v2263_v33 = vld [vmem:[%s3031_s12 + $0x10] sm:$0xff] }
 0xa72   : > { %v1709_v34 = vmul.f32 0.5, %v1708_v31  ;;  %1860 = vmatpush.bf16.msra.mxu0 %v2263_v33 }
 0xa73   : > { %v1725_v39 = vmul.f32 %v2323_v53, %v1718_v62 }
 0xa74   : > { %v1710_v13 = vsub.f32 1.5, %v1709_v34 }
 0xa75   : > { %v1732_v37 = vadd.f32 %v2324_v17, %v1725_v39 }
 0xa76   : > { %v1711_v60 = vmul.f32 %v2404_v23, %v1710_v13 }
 0xa78   : > { %v1715_v35 = vsel %vm1714_vm2, %v2404_v23, %v1711_v60 }
 0xa79   : > { %v1719_v27 = vmul.f32 %v1715_v35, %v2870_v16  ;;  %v2262_v16 = vld [vmem:[%s3031_s12 + $0x8] sm:$0xff] }
 0xa7a   : > { %1861 = vmatpush.bf16.msra.mxu0 %v2262_v16 }
 0xa7b   : > { %v1726_v36 = vmul.f32 %v2323_v53, %v1719_v27 }
 0xa7d   : > { %v1733_v38 = vadd.f32 %v2324_v17, %v1726_v36 }
 0xa7e   : > { %1862 = vmatpush.bf16.msra.mxu0 %v2261_v42 }
 0xa7f   : > { %v1735_v40 = vpack.c.bf16 %v1733_v38, %v1732_v37 }
 0xa81   : > { %2220 = vmatmul.msk.bf16.gmra.mxu3 %vm548_vm0, %v1735_v40 }
 0xadc   : > { %v1771_v52 = vpop.f32.mrf.mxu3 }
 0xadd   : > { %v1772_v44 = vadd.f32 %v2325_v43, %v1771_v52 }
 0xadf   : > { %v1781_v9 = vmax.f32 %v1772_v44, 0.0 }
 0xae4   : > { %v1773_v45 = vpop.f32.mrf.mxu3 }
 0xae5   : > { %v1774_v11 = vadd.f32 %v2325_v43, %v1773_v45 }
 0xae7   : > { %v1782_v29 = vmax.f32 %v1774_v11, 0.0 }
 0xae9   : > { %v1785_v30 = vpack.c.bf16 %v1782_v29, %v1781_v9 }
 0xaeb   : > { %1863 = vmatmul.bf16.vlgmr.msra.gmra.mxu0 %v1785_v30  ;;  %v2327_v30 = vld [vmem:[%s3027_s8] ss:$0 sm:$0xff] }
 0xb04   : > { %v1776_v46 = vpop.f32.mrf.mxu3 }
 0xb05   : > { %v1777_v47 = vadd.f32 %v2325_v43, %v1776_v46 }
 0xb07   : > { %v1783_v24 = vmax.f32 %v1777_v47, 0.0 }
 0xb0c   : > { %v1778_v48 = vpop.f32.mrf.mxu3 }
 0xb0d   : > { %v1779_v51 = vadd.f32 %v2325_v43, %v1778_v48 }
 0xb0f   : > { %v1784_v53 = vmax.f32 %v1779_v51, 0.0  ;;  %v2328_v51 = vld [vmem:[%s3028_s9] ss:$0 sm:$0xff] }
 0xb11   : > { %v1786_v54 = vpack.c.bf16 %v1784_v53, %v1783_v24 }
 0xb13   : > { %1868 = vmatmul.bf16.gmra.mxu0 %v1786_v54 }
 0xb68   : > { %v1864_v56 = vpop.f32.mrf.mxu0 }
 0xb69   : > { %v1865_v17 = vadd.f32 %v2326_v55, %v1864_v56 }
 0xb6b   : > { %v1874_v57 = vadd.f32 %v1865_v17, %v2889_v0 }
 0xb6d   : > { %v1880_v58 = vsel %vm548_vm0, %v1874_v57, 0.0 }
 0xb6e   : > { %1881 = vadd.xlane.f32.xlu0 %v1880_v58 }
 0xb70   : > { %v1866_v59 = vpop.f32.mrf.mxu0 }
 0xb71   : > { %v1867_v2 = vadd.f32 %v2326_v55, %v1866_v59 }
 0xb73   : > { %v1875_v3 = vadd.f32 %v1867_v2, %v2891_v1 }
 0xb75   : > { %v1883_v4 = vsel %vm548_vm0, %v1875_v3, 0.0 }
 0xb76   : > { %1884 = vadd.xlane.f32.xlu2 %v1883_v4 }
 0xb90   : > { %v1869_v5 = vpop.f32.mrf.mxu0 }
 0xb91   : > { %v1870_v8 = vadd.f32 %v2326_v55, %v1869_v5 }
 0xb93   : > { %v1876_v10 = vadd.f32 %v1870_v8, %v1732_v37 }
 0xb95   : > { %v1886_v12 = vsel %vm548_vm0, %v1876_v10, 0.0 }
 0xb96   : > { %1887 = vadd.xlane.f32.xlu1 %v1886_v12 }
 0xb98   : > { %v1871_v15 = vpop.f32.mrf.mxu0 }
 0xb99   : > { %v1872_v14 = vadd.f32 %v2326_v55, %v1871_v15 }
 0xb9b   : > { %v1877_v18 = vadd.f32 %v1872_v14, %v1733_v38 }
 0xb9d   : > { %v1889_v0 = vsel %vm548_vm0, %v1877_v18, 0.0 }
 0xb9e   : > { %1890 = vadd.xlane.f32.xlu0 %v1889_v0 }
 0xbe1   : > { %v1882_v63 = vpop.xlane.xlu0 %1881 }
 0xbe2   : > { %v1892_v6 = vmul.f32 %v1882_v63, %v2857_v21 }
 0xbe4   : > { %v1896_v7 = vsub.f32 %v1874_v57, %v1892_v6 }
 0xbe6   : > { %v1900_v1 = vmul.f32 %v1896_v7, %v1896_v7 }
 0xbe8   : > { %v1904_v50 = vsel %vm548_vm0, %v1900_v1, 0.0 }
 0xbe9   : > { %1905 = vadd.xlane.f32.xlu2 %v1904_v50  ;;  %v1885_v22 = vpop.xlane.xlu2 %1884 }
 0xbea   : > { %v1893_v20 = vmul.f32 %v1885_v22, %v2857_v21 }
 0xbec   : > { %v1897_v23 = vsub.f32 %v1875_v3, %v1893_v20 }
 0xbee   : > { %v1901_v25 = vmul.f32 %v1897_v23, %v1897_v23 }
 0xbf0   : > { %v1907_v28 = vsel %vm548_vm0, %v1901_v25, 0.0 }
 0xbf1   : > { %1908 = vadd.xlane.f32.xlu1 %v1907_v28 }
 0xc09   : > { %v1888_v31 = vpop.xlane.xlu1 %1887 }
 0xc0a   : > { %v1894_v32 = vmul.f32 %v1888_v31, %v2857_v21 }
 0xc0c   : > { %v2942_v34 = vsub.f32 %v1876_v10, %v1894_v32 }
 0xc0e   : > { %v1902_v13 = vmul.f32 %v2942_v34, %v2942_v34 }
 0xc10   : > { %v1910_v62 = vsel %vm548_vm0, %v1902_v13, 0.0 }
 0xc11   : > { %v1891_v60 = vpop.xlane.xlu0 %1890  ;;  %1911 = vadd.xlane.f32.xlu0 %v1910_v62 }
 0xc12   : > { %v1895_v35 = vmul.f32 %v1891_v60, %v2857_v21 }
 0xc14   : > { %v2948_v27 = vsub.f32 %v1877_v18, %v1895_v35 }
 0xc16   : > { %v1903_v39 = vmul.f32 %v2948_v27, %v2948_v27 }
 0xc18   : > { %v1913_v36 = vsel %vm548_vm0, %v1903_v39, 0.0 }
 0xc19   : > { %1914 = vadd.xlane.f32.xlu2 %v1913_v36 }
 0xc5c   : > { %v1906_v37 = vpop.xlane.xlu2 %1905 }
 0xc5d   : > { %v1916_v38 = vmul.f32 %v1906_v37, %v2857_v21 }
 0xc5f   : > { %v1920_v40 = vadd.f32 1e-05, %v1916_v38 }
 0xc61   : > { %2405 = vrsqrt.f32 %v1920_v40  ;;  %vm1930_vm4 = vweird.f32 %v1920_v40 }
 0xc64   : > { %v1909_v41 = vpop.xlane.xlu1 %1908 }
 0xc65   : > { %v1917_v33 = vmul.f32 %v1909_v41, %v2857_v21 }
 0xc67   : > { %v2406_v16 = vpop.eup %2405  ;;  %v1921_v42 = vadd.f32 1e-05, %v1917_v33 }
 0xc68   : > { %v1925_v52 = vmul.f32 %v2406_v16, %v1920_v40  ;;  %vm1931_vm3 = vweird.f32 %v2406_v16 }
 0xc69   : > { %2407 = vrsqrt.f32 %v1921_v42  ;;  %vm1932_vm5 = vmor %vm1930_vm4, %vm1931_vm3  ;;  %vm1940_vm7 = vweird.f32 %v1921_v42 }
 0xc6a   : > { %v1926_v43 = vmul.f32 %v2406_v16, %v1925_v52 }
 0xc6c   : > { %v1927_v44 = vmul.f32 0.5, %v1926_v43 }
 0xc6e   : > { %v1928_v45 = vsub.f32 1.5, %v1927_v44 }
 0xc6f   : > { %v2408_v11 = vpop.eup %2407 }
 0xc70   : > { %v1929_v9 = vmul.f32 %v2406_v16, %v1928_v45  ;;  %v1935_v29 = vmul.f32 %v2408_v11, %v1921_v42  ;;  %vm1941_vm6 = vweird.f32 %v2408_v11 }
 0xc71   : > { %vm1942_vm8 = vmor %vm1940_vm7, %vm1941_vm6 }
 0xc72   : > { %v1933_v46 = vsel %vm1932_vm5, %v2406_v16, %v1929_v9  ;;  %v1936_v47 = vmul.f32 %v2408_v11, %v1935_v29 }
 0xc73   : > { %v1964_v48 = vmul.f32 %v1933_v46, %v1896_v7 }
 0xc74   : > { %v1937_v24 = vmul.f32 0.5, %v1936_v47 }
 0xc75   : > { %v1971_v53 = vmul.f32 %v2327_v30, %v1964_v48 }
 0xc76   : > { %v1938_v54 = vsub.f32 1.5, %v1937_v24 }
 0xc77   : > { %v1978_v55 = vadd.f32 %v2328_v51, %v1971_v53 }
 0xc78   : > { %v1939_v56 = vmul.f32 %v2408_v11, %v1938_v54 }
 0xc79   : > { %v1982_v17 = vadd.f32 %v2838_v26, %v1978_v55 }
 0xc7a   : > { %v1943_v57 = vsel %vm1942_vm8, %v2408_v11, %v1939_v56 }
 0xc7b   : > { %v1988_v58 = vsel %vm548_vm0, %v1982_v17, 0.0  ;;  %v1965_v59 = vmul.f32 %v1943_v57, %v1897_v23 }
 0xc7c   : > { %1989 = vadd.xlane.f32.xlu1 %v1988_v58 }
 0xc7d   : > { %v1972_v2 = vmul.f32 %v2327_v30, %v1965_v59 }
 0xc7f   : > { %v1979_v3 = vadd.f32 %v2328_v51, %v1972_v2 }
 0xc81   : > { %v1983_v4 = vadd.f32 %v2843_v49, %v1979_v3 }
 0xc83   : > { %v1991_v5 = vsel %vm548_vm0, %v1983_v4, 0.0 }
 0xc84   : > { %v1912_v8 = vpop.xlane.xlu0 %1911  ;;  %1992 = vadd.xlane.f32.xlu0 %v1991_v5 }
 0xc85   : > { %v1918_v10 = vmul.f32 %v1912_v8, %v2857_v21 }
 0xc87   : > { %v1922_v12 = vadd.f32 1e-05, %v1918_v10  ;;  %v2329_v10 = vld [vmem:[%s3033_s14] ss:$0 sm:$0xff] }
 0xc89   : > { %2409 = vrsqrt.f32 %v1922_v12  ;;  %vm1950_vm10 = vweird.f32 %v1922_v12 }
 0xc8c   : > { %v1915_v15 = vpop.xlane.xlu2 %1914 }
 0xc8d   : > { %v1919_v26 = vmul.f32 %v1915_v15, %v2857_v21 }
 0xc8f   : > { %v2410_v14 = vpop.eup %2409  ;;  %v1923_v18 = vadd.f32 1e-05, %v1919_v26  ;;  %v2330_v26 = vld [vmem:[%s3034_s15] ss:$0 sm:$0xff] }
 0xc90   : > { %v1945_v0 = vmul.f32 %v2410_v14, %v1922_v12  ;;  %vm1951_vm9 = vweird.f32 %v2410_v14 }
 0xc91   : > { %2411 = vrsqrt.f32 %v1923_v18  ;;  %vm1952_vm11 = vmor %vm1950_vm10, %vm1951_vm9  ;;  %vm1960_vm13 = vweird.f32 %v1923_v18 }
 0xc92   : > { %v1946_v63 = vmul.f32 %v2410_v14, %v1945_v0 }
 0xc94   : > { %v1947_v6 = vmul.f32 0.5, %v1946_v63 }
 0xc96   : > { %v1948_v7 = vsub.f32 1.5, %v1947_v6 }
 0xc97   : > { %v2412_v49 = vpop.eup %2411 }
 0xc98   : > { %v1949_v1 = vmul.f32 %v2410_v14, %v1948_v7  ;;  %v1955_v50 = vmul.f32 %v2412_v49, %v1923_v18  ;;  %vm1961_vm12 = vweird.f32 %v2412_v49 }
 0xc99   : > { %vm1962_vm14 = vmor %vm1960_vm13, %vm1961_vm12 }
 0xc9a   : > { %v1953_v22 = vsel %vm1952_vm11, %v2410_v14, %v1949_v1  ;;  %v1956_v20 = vmul.f32 %v2412_v49, %v1955_v50 }
 0xc9b   : > { %v1966_v23 = vmul.f32 %v1953_v22, %v2942_v34 }
 0xc9c   : > { %v1957_v25 = vmul.f32 0.5, %v1956_v20 }
 0xc9d   : > { %v1973_v28 = vmul.f32 %v2327_v30, %v1966_v23 }
 0xc9e   : > { %v1958_v31 = vsub.f32 1.5, %v1957_v25 }
 0xc9f   : > { %v1980_v32 = vadd.f32 %v2328_v51, %v1973_v28 }
 0xca0   : > { %v1959_v13 = vmul.f32 %v2412_v49, %v1958_v31 }
 0xca1   : > { %v1984_v62 = vadd.f32 %v2848_v19, %v1980_v32 }
 0xca2   : > { %v1963_v60 = vsel %vm1962_vm14, %v2412_v49, %v1959_v13 }
 0xca3   : > { %v1994_v35 = vsel %vm548_vm0, %v1984_v62, 0.0  ;;  %v1967_v39 = vmul.f32 %v1963_v60, %v2948_v27 }
 0xca4   : > { %1995 = vadd.xlane.f32.xlu2 %v1994_v35 }
 0xca5   : > { %v1974_v36 = vmul.f32 %v2327_v30, %v1967_v39 }
 0xca7   : > { %v1981_v37 = vadd.f32 %v2328_v51, %v1974_v36 }
 0xca9   : > { %v1985_v34 = vadd.f32 %v2853_v61, %v1981_v37 }
 0xcab   : > { %v1997_v38 = vsel %vm548_vm0, %v1985_v34, 0.0 }
 0xcac   : > { %1998 = vadd.xlane.f32.xlu1 %v1997_v38 }
 0xcef   : > { %v1990_v40 = vpop.xlane.xlu1 %1989 }
 0xcf0   : > { %v2000_v41 = vmul.f32 %v1990_v40, %v2857_v21 }
 0xcf2   : > { %v2004_v33 = vsub.f32 %v1982_v17, %v2000_v41 }
 0xcf4   : > { %v2008_v16 = vmul.f32 %v2004_v33, %v2004_v33 }
 0xcf6   : > { %v2012_v19 = vsel %vm548_vm0, %v2008_v16, 0.0 }
 0xcf7   : > { %v1993_v42 = vpop.xlane.xlu0 %1992  ;;  %2013 = vadd.xlane.f32.xlu0 %v2012_v19 }
 0xcf8   : > { %v2001_v52 = vmul.f32 %v1993_v42, %v2857_v21 }
 0xcfa   : > { %v2005_v27 = vsub.f32 %v1983_v4, %v2001_v52 }
 0xcfc   : > { %v2009_v43 = vmul.f32 %v2005_v27, %v2005_v27 }
 0xcfe   : > { %v2015_v44 = vsel %vm548_vm0, %v2009_v43, 0.0 }
 0xcff   : > { %2016 = vadd.xlane.f32.xlu2 %v2015_v44 }
 0xd17   : > { %v1996_v61 = vpop.xlane.xlu2 %1995 }
 0xd18   : > { %v2002_v45 = vmul.f32 %v1996_v61, %v2857_v21 }
 0xd1a   : > { %v2978_v11 = vsub.f32 %v1984_v62, %v2002_v45 }
 0xd1c   : > { %v2010_v9 = vmul.f32 %v2978_v11, %v2978_v11 }
 0xd1e   : > { %v2018_v29 = vsel %vm548_vm0, %v2010_v9, 0.0 }
 0xd1f   : > { %v1999_v30 = vpop.xlane.xlu1 %1998  ;;  %2019 = vadd.xlane.f32.xlu1 %v2018_v29 }
 0xd20   : > { %v2003_v46 = vmul.f32 %v1999_v30, %v2857_v21 }
 0xd22   : > { %v2984_v47 = vsub.f32 %v1985_v34, %v2003_v46 }
 0xd24   : > { %v2011_v48 = vmul.f32 %v2984_v47, %v2984_v47 }
 0xd26   : > { %v2021_v51 = vsel %vm548_vm0, %v2011_v48, 0.0 }
 0xd27   : > { %2022 = vadd.xlane.f32.xlu0 %v2021_v51 }
 0xd6a   : > { %v2014_v24 = vpop.xlane.xlu0 %2013 }
 0xd6b   : > { %v2024_v53 = vmul.f32 %v2014_v24, %v2857_v21 }
 0xd6d   : > { %v2028_v54 = vadd.f32 1e-05, %v2024_v53 }
 0xd6f   : > { %2413 = vrsqrt.f32 %v2028_v54  ;;  %vm2038_vm1 = vweird.f32 %v2028_v54 }
 0xd72   : > { %v2017_v55 = vpop.xlane.xlu2 %2016 }
 0xd73   : > { %v2025_v56 = vmul.f32 %v2017_v55, %v2857_v21 }
 0xd75   : > { %v2414_v17 = vpop.eup %2413  ;;  %v2029_v57 = vadd.f32 1e-05, %v2025_v56 }
 0xd76   : > { %v2033_v58 = vmul.f32 %v2414_v17, %v2028_v54  ;;  %vm2039_vm15 = vweird.f32 %v2414_v17 }
 0xd77   : > { %2415 = vrsqrt.f32 %v2029_v57  ;;  %vm2040_vm2 = vmor %vm2038_vm1, %vm2039_vm15  ;;  %vm2048_vm4 = vweird.f32 %v2029_v57 }
 0xd78   : > { %v2034_v59 = vmul.f32 %v2414_v17, %v2033_v58 }
 0xd7a   : > { %v2035_v2 = vmul.f32 0.5, %v2034_v59 }
 0xd7c   : > { %v2036_v3 = vsub.f32 1.5, %v2035_v2 }
 0xd7d   : > { %v2416_v4 = vpop.eup %2415 }
 0xd7e   : > { %v2037_v5 = vmul.f32 %v2414_v17, %v2036_v3  ;;  %v2043_v8 = vmul.f32 %v2416_v4, %v2029_v57  ;;  %vm2049_vm3 = vweird.f32 %v2416_v4 }
 0xd7f   : > { %vm2050_vm5 = vmor %vm2048_vm4, %vm2049_vm3 }
 0xd80   : > { %v2041_v12 = vsel %vm2040_vm2, %v2414_v17, %v2037_v5  ;;  %v2044_v15 = vmul.f32 %v2416_v4, %v2043_v8 }
 0xd81   : > { %v2072_v14 = vmul.f32 %v2041_v12, %v2004_v33 }
 0xd82   : > { %v2045_v18 = vmul.f32 0.5, %v2044_v15 }
 0xd83   : > { %v2079_v0 = vmul.f32 %v2329_v10, %v2072_v14 }
 0xd84   : > { %v2046_v63 = vsub.f32 1.5, %v2045_v18 }
 0xd85   : > { %v2086_v6 = vadd.f32 %v2330_v26, %v2079_v0 }
 0xd86   : > { %v2047_v7 = vmul.f32 %v2416_v4, %v2046_v63 }
 0xd87   : > { %2090 = vst.msk [vmem:[%s3002_s22] sm:$0xff] %vm548_vm0, %v2086_v6 }
 0xd88   : > { %v2051_v49 = vsel %vm2050_vm5, %v2416_v4, %v2047_v7 }
 0xd89   : > { %v2073_v1 = vmul.f32 %v2051_v49, %v2005_v27 }
 0xd8b   : > { %v2080_v50 = vmul.f32 %v2329_v10, %v2073_v1 }
 0xd8d   : > { %v2087_v22 = vadd.f32 %v2330_v26, %v2080_v50 }
 0xd8f   : > { %2091 = vst.msk [vmem:[%s3002_s22 + $0x8] sm:$0xff] %vm548_vm0, %v2087_v22 }
 0xd92   : > { %v2020_v20 = vpop.xlane.xlu1 %2019 }
 0xd93   : > { %v2026_v23 = vmul.f32 %v2020_v20, %v2857_v21 }
 0xd95   : > { %v2030_v25 = vadd.f32 1e-05, %v2026_v23 }
 0xd97   : > { %2417 = vrsqrt.f32 %v2030_v25  ;;  %vm2058_vm7 = vweird.f32 %v2030_v25 }
 0xd9a   : > { %v2023_v28 = vpop.xlane.xlu0 %2022 }
 0xd9b   : > { %v2027_v31 = vmul.f32 %v2023_v28, %v2857_v21 }
 0xd9d   : > { %v2418_v32 = vpop.eup %2417  ;;  %v2031_v13 = vadd.f32 1e-05, %v2027_v31 }
 0xd9e   : > { %v2053_v62 = vmul.f32 %v2418_v32, %v2030_v25  ;;  %vm2059_vm6 = vweird.f32 %v2418_v32 }
 0xd9f   : > { %2419 = vrsqrt.f32 %v2031_v13  ;;  %vm2060_vm8 = vmor %vm2058_vm7, %vm2059_vm6  ;;  %vm2068_vm10 = vweird.f32 %v2031_v13 }
 0xda0   : > { %v2054_v60 = vmul.f32 %v2418_v32, %v2053_v62 }
 0xda2   : > { %v2055_v35 = vmul.f32 0.5, %v2054_v60 }
 0xda4   : > { %v2056_v39 = vsub.f32 1.5, %v2055_v35 }
 0xda5   : > { %v2420_v36 = vpop.eup %2419 }
 0xda6   : > { %v2057_v37 = vmul.f32 %v2418_v32, %v2056_v39  ;;  %v2063_v34 = vmul.f32 %v2420_v36, %v2031_v13  ;;  %vm2069_vm9 = vweird.f32 %v2420_v36 }
 0xda7   : > { %vm2070_vm11 = vmor %vm2068_vm10, %vm2069_vm9 }
 0xda8   : > { %v2061_v38 = vsel %vm2060_vm8, %v2418_v32, %v2057_v37  ;;  %v2064_v40 = vmul.f32 %v2420_v36, %v2063_v34 }
 0xda9   : > { %v2074_v41 = vmul.f32 %v2061_v38, %v2978_v11 }
 0xdaa   : > { %v2065_v21 = vmul.f32 0.5, %v2064_v40 }
 0xdab   : > { %v2081_v33 = vmul.f32 %v2329_v10, %v2074_v41 }
 0xdac   : > { %v2066_v16 = vsub.f32 1.5, %v2065_v21 }
 0xdad   : > { %v2088_v19 = vadd.f32 %v2330_v26, %v2081_v33 }
 0xdae   : > { %v2067_v42 = vmul.f32 %v2420_v36, %v2066_v16 }
 0xdaf   : > { %2092 = vst.msk [vmem:[%s3002_s22 + $0x10] sm:$0xff] %vm548_vm0, %v2088_v19 }
 0xdb0   : > { %v2071_v52 = vsel %vm2070_vm11, %v2420_v36, %v2067_v42 }
 0xdb1   : > { %v2075_v27 = vmul.f32 %v2071_v52, %v2984_v47 }
 0xdb3   : > { %v2082_v43 = vmul.f32 %v2329_v10, %v2075_v27 }
 0xdb5   : > { %v2089_v44 = vadd.f32 %v2330_v26, %v2082_v43 }
 0xdb7   : > { %2093 = vst.msk [vmem:[%s3002_s22 + $0x18] sm:$0xff] %vm548_vm0, %v2089_v44 }
 0xdb8 PF: > { %s26_s21 = sadd.s32 1, %s2431_s21  }
 0xdb9   : > { %p23_p4 = scmp.ge.s32.totalorder %s26_s21, 4  }
 0xdbb   :  { %25 = sbr.rel (!%p23_p4) target bundleno = 2 (0x2), region = 114 }

// kernel: tpu_custom_call.1
= control target key start
LH: loop header
LB: loop body
LE: loop exit
PB: predicated region body
PF: predicated region fallthrough
CT: control target
= control target key end

     0   :  { %s2533_s21 = smov 0   ;;  %s3019_s0 = inlined_call_operand.vmem [shape: f32[64,32], index: 0, kind: input, shape index: {}]   ;;  %s3020_s1 = inlined_call_operand.vmem [shape: f32[8,32], index: 1, kind: input, shape index: {}]   ;;  %s3021_s2 = inlined_call_operand.vmem [shape: f32[8,32], index: 2, kind: input, shape index: {}]   ;;  %s3022_s3 = inlined_call_operand.vmem [shape: bf16[32,96], index: 3, kind: input, shape index: {}]   ;;  %s3023_s4 = inlined_call_operand.vmem [shape: bf16[32,32], index: 4, kind: input, shape index: {}]   ;;  %s3024_s5 = inlined_call_operand.vmem [shape: f32[1,32], index: 5, kind: input, shape index: {}]   ;;  %s3025_s6 = inlined_call_operand.vmem [shape: f32[1,32], index: 6, kind: input, shape index: {}]   ;;  %s3026_s7 = inlined_call_operand.vmem [shape: f32[1,32], index: 7, kind: input, shape index: {}]   ;;  %s3027_s8 = inlined_call_operand.vmem [shape: f32[1,32], index: 8, kind: input, shape index: {}]   ;;  %s3028_s9 = inlined_call_operand.vmem [shape: f32[1,32], index: 9, kind: input, shape index: {}]   ;;  %s3029_s10 = inlined_call_operand.vmem [shape: bf16[32,128], index: 10, kind: input, shape index: {}]   ;;  %s3030_s11 = inlined_call_operand.vmem [shape: f32[1,128], index: 11, kind: input, shape index: {}]   ;;  %s3031_s12 = inlined_call_operand.vmem [shape: bf16[128,32], index: 12, kind: input, shape index: {}]   ;;  %s3032_s13 = inlined_call_operand.vmem [shape: f32[1,32], index: 13, kind: input, shape index: {}]   ;;  %s3033_s14 = inlined_call_operand.vmem [shape: f32[1,32], index: 14, kind: input, shape index: {}]   ;;  %s3034_s15 = inlined_call_operand.vmem [shape: f32[1,32], index: 15, kind: input, shape index: {}]   ;;  %s3035_s16 = inlined_call_operand.vmem [shape: f32[64,32], index: 16, kind: output, shape index: {}]  }
   0x1   :  { %3036 = sst [smem:[#allocation2_spill]] %s3019_s0 }
   0x2 LB: > { %s2150_s22 = sadd.s32 4294967295, %s2431_s21   ;;  %p2154_p0 = scmp.ge.s32.totalorder %s2431_s21, 1  ;;  %s2431_s21 = sphi %s2533_s21, %s26_s21  }
   0x3   : > { %p463_p1 = scmp.lt.s32.totalorder %s2431_s21, 3 }
   0x5   : > { %p464_p2 = pnand %p2154_p0, %p463_p1 }
   0x6   : > { %s2155_s25 = sshll.u32 (!%p464_p2), %s2150_s22, 2  ;;  %s3037_s0 = sld [smem:[#allocation2_spill]] (!%p464_p2) }
   0x7   : > { %467 = sbr.rel (%p464_p2) target bundleno = 3512 (0xdb8), region = 84  ;;  %p514_p3 = scmp.lt.s32.totalorder (!%p464_p2), %s2155_s25, 7 }
   0x8   : > { %s2433_s18 = smov (!%p464_p2), 96   ;;  %s2434_s22 = smov (!%p464_p2), 64  }
   0x9   : > { %s2435_s23 = smov (!%p464_p2), 88   ;;  %s2436_s24 = smov (!%p464_p2), 120  }
   0xa   : > { %s2437_s26 = smov (!%p464_p2), 56   ;;  %s2438_s27 = smov (!%p464_p2), 80  }
   0xb   : > { %s2439_s29 = smov (!%p464_p2), 112   ;;  %s2440_s30 = smov (!%p464_p2), 48  }
   0xc   : > { %v2256_v0 = vld [vmem:[%s3022_s3 + $0x8] sm:$0xff]  ;;  %v2255_v1 = vld [vmem:[%s3022_s3] sm:$0xff]  ;;  %s3039_s25 = smov (!%p514_p3, %s2155_s25), 7  ;;  %vm548_vm0 = vcmask 261120   ;;  %vm596_vm1 = vcmask 64512   ;;  %vm744_vm2 = vcmask 1043456  }
   0xd   : > { %561 = vmatpush.bf16.msra.mxu1 %v2256_v0  ;;  %s2156_s28 = sshll.u32 %s3039_s25, 3  ;;  %v578_v23 = vld [vmem:[%s3021_s2] sm:$0xff]  ;;  %s2443_s19 = smov 40   ;;  %vm1557_vm3 = vcmask 130048   ;;  %vm1562_vm4 = vcmask 195584  }
   0xe   : > { %s2555_s17 = scalar_lea.vmem %s3037_s0, %s2156_s28  ;;  %s2441_s0 = smov 72  }
   0xf   : > { %v526_v2 = vld [vmem:[%s2555_s17] sm:$0xff]  ;;  %v527_v3 = vld [vmem:[%s2555_s17 + $0x8] sm:$0xff]  ;;  %v528_v5 = vld [vmem:[%s2555_s17 + $0x10] sm:$0xff]  ;;  %s2444_s20 = smov 16  }
  0x10   : > { %v530_v4 = vpack.c.bf16 %v527_v3, %v526_v2  ;;  %v529_v6 = vld [vmem:[%s2555_s17 + $0x18] sm:$0xff] }
  0x11   : > { %562 = vmatpush.bf16.msra.mxu1 %v2255_v1  ;;  %v531_v7 = vpack.c.bf16 %v529_v6, %v528_v5 }
  0x14   : > { %2167 = vmatmul.msk.bf16.vlgmr.msra.gmra.mxu1 %vm548_vm0, %v530_v4 }
  0x24   : > { %2168 = vmatmul.msk.bf16.gmra.mxu1 %vm548_vm0, %v531_v7 }
  0x91   : > { %v564_v8 = vpop.f32.mrf.mxu1 }
  0x92   : > { %v574_v12 = vpack.c.bf16 %v564_v8, %v564_v8 }
  0x94   : > { %v592_v15 = vunpack.c.l.b16 %v574_v12 }
  0x96   : > { %v2570_v18 = vpack.c.b16 %v592_v15, %v592_v15 }
  0x99   : > { %v566_v9 = vpop.f32.mrf.mxu1 }
  0x9a   : > { %v575_v10 = vpack.c.bf16 %v566_v9, %v566_v9 }
  0x9c   : > { %v617_v11 = vunpack.c.l.b16 %v575_v10 }
  0x9e   : > { %v2563_v13 = vpack.c.b16 %v617_v11, %v617_v11 }
  0xa0   : > { %619 = vrot.lane.b32.xlu0 %v2563_v13, %s2433_s18 }
  0xa1   : > { %v2566_v14 = vpop.f32.mrf.mxu1 }
  0xa2   : > { %v576_v16 = vpack.c.bf16 %v2566_v14, %v2566_v14 }
  0xa4   : > { %v641_v17 = vunpack.c.l.b16 %v576_v16 }
  0xa6   : > { %v2572_v19 = vpack.c.b16 %v641_v17, %v641_v17 }
  0xa8   : > { %594 = vrot.lane.b32.xlu0 %v2570_v18, %s2433_s18  ;;  %643 = vrot.lane.b32.xlu1 %v2572_v19, %s2433_s18 }
  0xa9   : > { %v2576_v20 = vpop.f32.mrf.mxu1 }
  0xaa   : > { %v577_v21 = vpack.c.bf16 %v2576_v20, %v2576_v20 }
  0xac   : > { %v665_v22 = vunpack.c.l.b16 %v577_v21 }
  0xae   : > { %v2583_v24 = vpack.c.b16 %v665_v22, %v665_v22 }
  0xb0   : > { %580 = vrot.lane.b32.xlu0 %v578_v23, %s2434_s22  ;;  %667 = vrot.lane.b32.xlu1 %v2583_v24, %s2433_s18  ;;  %s2442_s18 = smov 104  }
 0x112   : > { %v620_v25 = vpop.permute.xlu0 %619 }
 0x113   : > { %v625_v26 = vsel %vm596_vm1, %v620_v25, 0 }
 0x114   : > { %634 = vmatpush.bf16.xpose.msra.mxu2 %v625_v26 }
 0x11a   : > { %v595_v27 = vpop.permute.xlu0 %594  ;;  %v644_v28 = vpop.permute.xlu1 %643 }
 0x11b   : > { %2170 = vmatmul.msk.bf16.vlgmr.msra.gmra.mxu2 %vm596_vm1, %v575_v10  ;;  %v601_v29 = vsel %vm596_vm1, %v595_v27, 0  ;;  %v649_v30 = vsel %vm596_vm1, %v644_v28, 0 }
 0x11c   : > { %610 = vmatpush.bf16.xpose.msrb.mxu1 %v601_v29  ;;  %658 = vmatpush.bf16.xpose.msra.mxu3 %v649_v30 }
 0x122   : > { %v668_v31 = vpop.permute.xlu1 %667  ;;  %v581_v43 = vpop.permute.xlu0 %580 }
 0x123   : > { %2169 = vmatmul.msk.bf16.vlgmr.msrb.gmra.mxu1 %vm596_vm1, %v574_v12  ;;  %2171 = vmatmul.msk.bf16.vlgmr.msra.gmra.mxu3 %vm596_vm1, %v576_v16  ;;  %v673_v32 = vsel %vm596_vm1, %v668_v31, 0  ;;  %v583_v44 = vadd.f32 %v581_v43, %v564_v8  ;;  %v584_v47 = vadd.f32 %v581_v43, %v566_v9  ;;  %v585_v5 = vadd.f32 %v581_v43, %v2566_v14 }
 0x124   : > { %682 = vmatpush.bf16.xpose.msra.mxu1 %v673_v32  ;;  %v586_v11 = vadd.f32 %v581_v43, %v2576_v20 }
 0x125   : > { %v587_v45 = vpack.c.bf16 %v583_v44, %v583_v44  ;;  %v588_v49 = vpack.c.bf16 %v584_v47, %v584_v47  ;;  %v589_v10 = vpack.c.bf16 %v585_v5, %v585_v5 }
 0x126   : > { %v590_v15 = vpack.c.bf16 %v586_v11, %v586_v11 }
 0x127   : > { %v737_v48 = vunpack.c.l.b16 %v587_v45  ;;  %v762_v51 = vunpack.c.l.b16 %v588_v49  ;;  %v786_v12 = vunpack.c.l.b16 %v589_v10 }
 0x128   : > { %v810_v14 = vunpack.c.l.b16 %v590_v15 }
 0x129   : > { %v2603_v50 = vpack.c.b16 %v737_v48, %v737_v48  ;;  %v2609_v52 = vpack.c.b16 %v762_v51, %v762_v51  ;;  %v2629_v16 = vpack.c.b16 %v786_v12, %v786_v12 }
 0x12a   : > { %v2633_v17 = vpack.c.b16 %v810_v14, %v810_v14 }
 0x133   : > { %2172 = vmatmul.msk.bf16.vlgmr.msra.gmra.mxu1 %vm596_vm1, %v577_v21 }
 0x19e   : > { %v636_v33 = vpop.f32.mrf.mxu2 }
 0x19f   : > { %v691_v40 = vsel %vm596_vm1, %v636_v33, -inf }
 0x1a0   : > { %v612_v34 = vpop.f32.mrf.mxu1 }
 0x1a1   : > { %v688_v35 = vsel %vm596_vm1, %v612_v34, -inf }
 0x1a2   : > { %689 = vmax.xlane.f32.xlu2 %v688_v35 }
 0x1a6   : > { %v638_v36 = vpop.f32.mrf.mxu2  ;;  %v2596_v37 = vpop.f32.mrf.mxu3 }
 0x1a7   : > { %v694_v39 = vsel %vm596_vm1, %v2596_v37, -inf }
 0x1a8   : > { %v614_v38 = vpop.f32.mrf.mxu1  ;;  %695 = vmax.xlane.f32.xlu1 %v694_v39 }
 0x1aa   : > { %692 = vmax.xlane.f32.xlu2 %v691_v40 }
 0x1ae   : > { %v662_v41 = vpop.f32.mrf.mxu3 }
 0x1b0   : > { %v2601_v42 = vpop.f32.mrf.mxu1 }
 0x1b1   : > { %v697_v53 = vsel %vm596_vm1, %v2601_v42, -inf }
 0x1b8   : > { %v686_v46 = vpop.f32.mrf.mxu1 }
 0x1c1   : > { %835 = vrot.lane.b32.xlu1 %v2570_v18, %s2435_s23 }
 0x1c2   : > { %739 = vrot.lane.b32.xlu2 %v2603_v50, %s2434_s22 }
 0x1ca   : > { %764 = vrot.lane.b32.xlu2 %v2609_v52, %s2434_s22 }
 0x1d2   : > { %858 = vrot.lane.b32.xlu2 %v2563_v13, %s2435_s23 }
 0x1da   : > { %833 = vrot.lane.b32.xlu2 %v2570_v18, %s2436_s24 }
 0x203   : > { %698 = vmax.xlane.f32.xlu2 %v697_v53 }
 0x215   : > { %v690_v54 = vpop.xlane.xlu2 %689 }
 0x216   : > { %v700_v55 = vsub.f32 %v612_v34, %v690_v54 }
 0x218   : > { %v704_v56 = vmul.f32 1.442695, %v700_v55 }
 0x21a   : > { %2331 = vpow2.f32 %v704_v56 }
 0x21b   : > { %v696_v2 = vpop.xlane.xlu1 %695 }
 0x21c   : > { %v702_v21 = vsub.f32 %v2596_v37, %v696_v2 }
 0x21d   : > { %v693_v57 = vpop.xlane.xlu2 %692 }
 0x21e   : > { %v701_v58 = vsub.f32 %v636_v33, %v693_v57  ;;  %v708_v22 = vmul.f32 1.442695, %v702_v21 }
 0x220   : > { %v2332_v59 = vpop.eup %2331  ;;  %v706_v60 = vmul.f32 1.442695, %v701_v58 }
 0x221   : > { %v712_v61 = vsel %vm596_vm1, %v2332_v59, 0.0 }
 0x222   : > { %2333 = vpow2.f32 %v706_v60  ;;  %713 = vadd.xlane.f32.xlu0 %v712_v61 }
 0x223   : > { %2335 = vpow2.f32 %v708_v22 }
 0x225   : > { %v740_v62 = vpop.permute.xlu2 %739 }
 0x226   : > { %v746_v63 = vsel %vm744_vm2, %v740_v62, 0 }
 0x227   : > { %755 = vmatpush.bf16.msrb.mxu2 %v746_v63 }
 0x228   : > { %v2334_v0 = vpop.eup %2333 }
 0x229   : > { %v715_v1 = vsel %vm596_vm1, %v2334_v0, 0.0  ;;  %v2336_v20 = vpop.eup %2335 }
 0x22a   : > { %716 = vadd.xlane.f32.xlu2 %v715_v1  ;;  %v718_v23 = vsel %vm596_vm1, %v2336_v20, 0.0 }
 0x22d   : > { %v765_v3 = vpop.permute.xlu2 %764 }
 0x22e   : > { %v770_v4 = vsel %vm744_vm2, %v765_v3, 0 }
 0x22f   : > { %779 = vmatpush.bf16.msrb.mxu3 %v770_v4 }
 0x233   : > { %v836_v6 = vpop.permute.xlu1 %835 }
 0x234   : > { %v841_v7 = vsel %vm596_vm1, %v836_v6, 0 }
 0x235   : > { %v859_v8 = vpop.permute.xlu2 %858  ;;  %850 = vmatpush.bf16.xpose.msra.mxu2 %v841_v7 }
 0x236   : > { %v864_v9 = vsel %vm596_vm1, %v859_v8, 0  ;;  %856 = vrot.lane.b32.xlu0 %v2563_v13, %s2436_s24 }
 0x237   : > { %873 = vmatpush.bf16.xpose.msra.mxu3 %v864_v9 }
 0x23d   : > { %v834_v25 = vpop.permute.xlu2 %833 }
 0x242   : > { %788 = vrot.lane.b32.xlu2 %v2629_v16, %s2434_s22 }
 0x24a   : > { %812 = vrot.lane.b32.xlu2 %v2633_v17, %s2434_s22  ;;  %s2445_s22 = smov 8  }
 0x252   : > { %904 = vrot.lane.b32.xlu2 %v2583_v24, %s2435_s23 }
 0x25a   : > { %902 = vrot.lane.b32.xlu2 %v2583_v24, %s2436_s24 }
 0x260   : > { %719 = vadd.xlane.f32.xlu0 %v718_v23 }
 0x274   : > { %881 = vrot.lane.b32.xlu0 %v2572_v19, %s2435_s23  ;;  %s2446_s23 = smov 24  }
 0x276   : > { %v699_v26 = vpop.xlane.xlu2 %698 }
 0x277   : > { %v703_v27 = vsub.f32 %v2601_v42, %v699_v26 }
 0x279   : > { %v710_v28 = vmul.f32 1.442695, %v703_v27 }
 0x27b   : > { %2337 = vpow2.f32 %v710_v28 }
 0x27c   : > { %879 = vrot.lane.b32.xlu0 %v2572_v19, %s2436_s24 }
 0x281   : > { %v2338_v29 = vpop.eup %2337 }
 0x282   : > { %v721_v30 = vsel %vm596_vm1, %v2338_v29, 0.0 }
 0x283   : > { %722 = vadd.xlane.f32.xlu1 %v721_v30 }
 0x295   : > { %v714_v31 = vpop.xlane.xlu0 %713 }
 0x296   : > { %2339 = vrcp.f32 %v714_v31 }
 0x29c   : > { %v2340_v32 = vpop.eup %2339 }
 0x29d   : > { %v728_v33 = vmul.f32 %v2340_v32, %v2332_v59  ;;  %v717_v34 = vpop.xlane.xlu2 %716 }
 0x29e   : > { %2341 = vrcp.f32 %v717_v34 }
 0x29f   : > { %v732_v35 = vpack.c.bf16 %v728_v33, %v728_v33 }
 0x2a1   : > { %2173 = vmatmul.msk.bf16.vlgmr.msrb.gmra.mxu2 %vm596_vm1, %v732_v35 }
 0x2a4   : > { %v2342_v36 = vpop.eup %2341 }
 0x2a5   : > { %v729_v37 = vmul.f32 %v2342_v36, %v2334_v0  ;;  %v789_v38 = vpop.permute.xlu2 %788 }
 0x2a6   : > { %v794_v39 = vsel %vm744_vm2, %v789_v38, 0 }
 0x2a7   : > { %803 = vmatpush.bf16.msra.mxu0 %v794_v39  ;;  %v733_v40 = vpack.c.bf16 %v729_v37, %v729_v37 }
 0x2a8   : > { %v857_v45 = vpop.permute.xlu0 %856 }
 0x2a9   : > { %2174 = vmatmul.msk.bf16.vlgmr.msrb.gmra.mxu3 %vm596_vm1, %v733_v40 }
 0x2ad   : > { %v813_v41 = vpop.permute.xlu2 %812 }
 0x2ae   : > { %v818_v42 = vsel %vm744_vm2, %v813_v41, 0 }
 0x2af   : > { %827 = vmatpush.bf16.msrb.mxu0 %v818_v42 }
 0x2b1   : > { %2177 = vmatmul.msk.bf16.vlgmr.msra.gmra.mxu2 %vm596_vm1, %v834_v25 }
 0x2b5   : > { %v905_v43 = vpop.permute.xlu2 %904 }
 0x2b6   : > { %v910_v44 = vsel %vm596_vm1, %v905_v43, 0 }
 0x2b7   : > { %919 = vmatpush.bf16.xpose.msrb.mxu1 %v910_v44 }
 0x2b9   : > { %2178 = vmatmul.msk.bf16.vlgmr.msra.gmra.mxu3 %vm596_vm1, %v857_v45 }
 0x2bd   : > { %v903_v46 = vpop.permute.xlu2 %902 }
 0x2be   : > { %2180 = vmatmul.msk.bf16.vlgmr.msrb.gmra.mxu1 %vm596_vm1, %v903_v46 }
 0x2d3   : > { %v720_v47 = vpop.xlane.xlu0 %719 }
 0x2d4   : > { %2343 = vrcp.f32 %v720_v47 }
 0x2da   : > { %v2344_v48 = vpop.eup %2343 }
 0x2db   : > { %v730_v49 = vmul.f32 %v2344_v48, %v2336_v20 }
 0x2dd   : > { %v734_v51 = vpack.c.bf16 %v730_v49, %v730_v49 }
 0x2df   : > { %2175 = vmatmul.msk.bf16.vlgmr.msra.gmra.mxu0 %vm596_vm1, %v734_v51 }
 0x2e6   : > { %v882_v53 = vpop.permute.xlu0 %881 }
 0x2e7   : > { %v887_v54 = vsel %vm596_vm1, %v882_v53, 0 }
 0x2e8   : > { %896 = vmatpush.bf16.xpose.msra.mxu0 %v887_v54 }
 0x2ee   : > { %v880_v59 = vpop.permute.xlu0 %879 }
 0x2f6   : > { %v723_v55 = vpop.xlane.xlu1 %722 }
 0x2f7   : > { %2345 = vrcp.f32 %v723_v55 }
 0x2fd   : > { %v2346_v56 = vpop.eup %2345 }
 0x2fe   : > { %v731_v57 = vmul.f32 %v2346_v56, %v2338_v29 }
 0x300   : > { %v735_v58 = vpack.c.bf16 %v731_v57, %v731_v57 }
 0x302   : > { %2176 = vmatmul.msk.bf16.vlgmr.msrb.gmra.mxu0 %vm596_vm1, %v735_v58 }
 0x312   : > { %2179 = vmatmul.msk.bf16.vlgmr.msra.gmra.mxu0 %vm596_vm1, %v880_v59 }
 0x324   : > { %v2661_v60 = vpop.f32.mrf.mxu2 }
 0x32c   : > { %v759_v61 = vpop.f32.mrf.mxu2  ;;  %v2663_v62 = vpop.f32.mrf.mxu3 }
 0x334   : > { %v783_v63 = vpop.f32.mrf.mxu3  ;;  %v852_v0 = vpop.f32.mrf.mxu2 }
 0x335   : > { %v925_v1 = vsel %vm596_vm1, %v852_v0, -inf }
 0x336   : > { %926 = vmax.xlane.f32.xlu0 %v925_v1 }
 0x33b   : > { %v921_v2 = vpop.f32.mrf.mxu1 }
 0x33c   : > { %v854_v3 = vpop.f32.mrf.mxu2  ;;  %v875_v4 = vpop.f32.mrf.mxu3  ;;  %v934_v5 = vsel %vm596_vm1, %v921_v2, -inf }
 0x33d   : > { %935 = vmax.xlane.f32.xlu1 %v934_v5  ;;  %v928_v6 = vsel %vm596_vm1, %v875_v4, -inf }
 0x33e   : > { %929 = vmax.xlane.f32.xlu2 %v928_v6 }
 0x343   : > { %v923_v7 = vpop.f32.mrf.mxu1 }
 0x344   : > { %v877_v8 = vpop.f32.mrf.mxu3 }
 0x34a   : > { %973 = vrot.lane.b32.xlu0 %v2603_v50, %s2437_s26 }
 0x352   : > { %1082 = vrot.lane.b32.xlu0 %v2563_v13, %s2438_s27 }
 0x356   : > { %994 = vrot.lane.b32.xlu2 %v2609_v52, %s2437_s26 }
 0x35a   : > { %1080 = vrot.lane.b32.xlu0 %v2563_v13, %s2439_s29 }
 0x35c   : > { %v2674_v9 = vpop.f32.mrf.mxu0 }
 0x35e   : > { %1057 = vrot.lane.b32.xlu2 %v2570_v18, %s2439_s29 }
 0x362   : > { %1015 = vrot.lane.b32.xlu0 %v2629_v16, %s2437_s26 }
 0x364   : > { %v807_v10 = vpop.f32.mrf.mxu0 }
 0x36a   : > { %1036 = vrot.lane.b32.xlu0 %v2633_v17, %s2437_s26 }
 0x372   : > { %1105 = vrot.lane.b32.xlu0 %v2572_v19, %s2438_s27 }
 0x37a   : > { %1128 = vrot.lane.b32.xlu0 %v2583_v24, %s2438_s27 }
 0x37f   : > { %v2684_v11 = vpop.f32.mrf.mxu0 }
 0x382   : > { %1103 = vrot.lane.b32.xlu0 %v2572_v19, %s2439_s29 }
 0x387   : > { %v831_v12 = vpop.f32.mrf.mxu0 }
 0x38f   : > { %v898_v15 = vpop.f32.mrf.mxu0 }
 0x390   : > { %v931_v14 = vsel %vm596_vm1, %v898_v15, -inf }
 0x391   : > { %932 = vmax.xlane.f32.xlu1 %v931_v14 }
 0x397   : > { %v900_v21 = vpop.f32.mrf.mxu0 }
 0x3a9   : > { %v927_v22 = vpop.xlane.xlu0 %926 }
 0x3aa   : > { %v937_v20 = vsub.f32 %v852_v0, %v927_v22 }
 0x3ac   : > { %v941_v23 = vmul.f32 1.442695, %v937_v20 }
 0x3ae   : > { %2347 = vpow2.f32 %v941_v23 }
 0x3b0   : > { %v936_v25 = vpop.xlane.xlu1 %935 }
 0x3b1   : > { %v940_v26 = vsub.f32 %v921_v2, %v936_v25  ;;  %v930_v27 = vpop.xlane.xlu2 %929 }
 0x3b2   : > { %v938_v28 = vsub.f32 %v875_v4, %v930_v27 }
 0x3b3   : > { %v947_v29 = vmul.f32 1.442695, %v940_v26 }
 0x3b4   : > { %v2348_v30 = vpop.eup %2347  ;;  %v943_v31 = vmul.f32 1.442695, %v938_v28 }
 0x3b5   : > { %2349 = vpow2.f32 %v947_v29  ;;  %v949_v32 = vsel %vm596_vm1, %v2348_v30, 0.0 }
 0x3b6   : > { %2351 = vpow2.f32 %v943_v31  ;;  %950 = vadd.xlane.f32.xlu1 %v949_v32 }
 0x3b9   : > { %v995_v33 = vpop.permute.xlu2 %994 }
 0x3ba   : > { %v1000_v34 = vsel %vm744_vm2, %v995_v33, 0 }
 0x3bb   : > { %v2350_v35 = vpop.eup %2349  ;;  %1009 = vmatpush.bf16.msrb.mxu3 %v1000_v34 }
 0x3bc   : > { %v2352_v36 = vpop.eup %2351  ;;  %v974_v37 = vpop.permute.xlu0 %973  ;;  %v958_v38 = vsel %vm596_vm1, %v2350_v35, 0.0 }
 0x3bd   : > { %v979_v39 = vsel %vm744_vm2, %v974_v37, 0  ;;  %959 = vadd.xlane.f32.xlu2 %v958_v38  ;;  %v952_v40 = vsel %vm596_vm1, %v2352_v36, 0.0 }
 0x3be   : > { %988 = vmatpush.bf16.msrb.mxu2 %v979_v39  ;;  %953 = vadd.xlane.f32.xlu1 %v952_v40 }
 0x3c1   : > { %v1058_v59 = vpop.permute.xlu2 %1057 }
 0x3c4   : > { %v1083_v41 = vpop.permute.xlu0 %1082 }
 0x3c5   : > { %v1088_v42 = vsel %vm596_vm1, %v1083_v41, 0 }
 0x3c6   : > { %1097 = vmatpush.bf16.xpose.msra.mxu3 %v1088_v42 }
 0x3cc   : > { %v1081_v43 = vpop.permute.xlu0 %1080 }
 0x3d4   : > { %v1016_v44 = vpop.permute.xlu0 %1015 }
 0x3d5   : > { %v1021_v45 = vsel %vm744_vm2, %v1016_v44, 0 }
 0x3d6   : > { %1030 = vmatpush.bf16.msrb.mxu0 %v1021_v45 }
 0x3d7   : > { %1059 = vrot.lane.b32.xlu1 %v2570_v18, %s2438_s27 }
 0x3dc   : > { %v1037_v46 = vpop.permute.xlu0 %1036 }
 0x3dd   : > { %v1042_v47 = vsel %vm744_vm2, %v1037_v46, 0 }
 0x3de   : > { %1051 = vmatpush.bf16.msra.mxu1 %v1042_v47 }
 0x3e4   : > { %v1106_v48 = vpop.permute.xlu0 %1105 }
 0x3e5   : > { %v1111_v49 = vsel %vm596_vm1, %v1106_v48, 0 }
 0x3e6   : > { %1120 = vmatpush.bf16.xpose.msra.mxu0 %v1111_v49 }
 0x3ec   : > { %v1129_v51 = vpop.permute.xlu0 %1128 }
 0x3ed   : > { %v1134_v53 = vsel %vm596_vm1, %v1129_v51, 0 }
 0x3ee   : > { %1143 = vmatpush.bf16.xpose.msrb.mxu1 %v1134_v53 }
 0x3f4   : > { %v1104_v25 = vpop.permute.xlu0 %1103 }
 0x404   : > { %v933_v54 = vpop.xlane.xlu1 %932 }
 0x405   : > { %v939_v55 = vsub.f32 %v898_v15, %v933_v54 }
 0x407   : > { %v945_v56 = vmul.f32 1.442695, %v939_v55 }
 0x409   : > { %2353 = vpow2.f32 %v945_v56 }
 0x40f   : > { %v2354_v57 = vpop.eup %2353 }
 0x410   : > { %v955_v58 = vsel %vm596_vm1, %v2354_v57, 0.0 }
 0x411   : > { %956 = vadd.xlane.f32.xlu1 %v955_v58 }
 0x429   : > { %v951_v61 = vpop.xlane.xlu1 %950 }
 0x42a   : > { %2355 = vrcp.f32 %v951_v61  ;;  %1126 = vrot.lane.b32.xlu1 %v2583_v24, %s2439_s29 }
 0x430   : > { %v2356_v63 = vpop.eup %2355  ;;  %v960_v0 = vpop.xlane.xlu2 %959 }
 0x431   : > { %v965_v1 = vmul.f32 %v2356_v63, %v2348_v30  ;;  %2357 = vrcp.f32 %v960_v0  ;;  %v954_v2 = vpop.xlane.xlu1 %953 }
 0x432   : > { %2359 = vrcp.f32 %v954_v2 }
 0x433   : > { %v969_v3 = vpack.c.bf16 %v965_v1, %v965_v1 }
 0x435   : > { %2181 = vmatmul.msk.bf16.vlgmr.msrb.gmra.mxu2 %vm596_vm1, %v969_v3 }
 0x437   : > { %v2358_v4 = vpop.eup %2357 }
 0x438   : > { %v2360_v5 = vpop.eup %2359  ;;  %v968_v6 = vmul.f32 %v2358_v4, %v2350_v35 }
 0x439   : > { %v966_v7 = vmul.f32 %v2360_v5, %v2352_v36 }
 0x43a   : > { %v972_v8 = vpack.c.bf16 %v968_v6, %v968_v6 }
 0x43b   : > { %v970_v10 = vpack.c.bf16 %v966_v7, %v966_v7 }
 0x43c   : > { %2184 = vmatmul.msk.bf16.vlgmr.msra.gmra.mxu1 %vm596_vm1, %v972_v8 }
 0x43d   : > { %2182 = vmatmul.msk.bf16.vlgmr.msrb.gmra.mxu3 %vm596_vm1, %v970_v10 }
 0x449   : > { %v1060_v12 = vpop.permute.xlu1 %1059 }
 0x44a   : > { %v1065_v15 = vsel %vm596_vm1, %v1060_v12, 0 }
 0x44b   : > { %1074 = vmatpush.bf16.xpose.msra.mxu2 %v1065_v15 }
 0x44d   : > { %2186 = vmatmul.msk.bf16.vlgmr.msra.gmra.mxu3 %vm596_vm1, %v1081_v43 }
 0x452   : > { %2185 = vmatmul.msk.bf16.vlgmr.msra.gmra.mxu2 %vm596_vm1, %v1058_v59 }
 0x484   : > { %v957_v14 = vpop.xlane.xlu1 %956 }
 0x485   : > { %2361 = vrcp.f32 %v957_v14 }
 0x48b   : > { %v2362_v21 = vpop.eup %2361 }
 0x48c   : > { %v967_v22 = vmul.f32 %v2362_v21, %v2354_v57 }
 0x48e   : > { %v971_v20 = vpack.c.bf16 %v967_v22, %v967_v22 }
 0x490   : > { %2183 = vmatmul.msk.bf16.vlgmr.msrb.gmra.mxu0 %vm596_vm1, %v971_v20 }
 0x49c   : > { %v1127_v23 = vpop.permute.xlu1 %1126 }
 0x49d   : > { %2188 = vmatmul.msk.bf16.vlgmr.msrb.gmra.mxu1 %vm596_vm1, %v1127_v23 }
 0x4a0   : > { %2187 = vmatmul.msk.bf16.vlgmr.msra.gmra.mxu0 %vm596_vm1, %v1104_v25 }
 0x4b8   : > { %v2713_v26 = vpop.f32.mrf.mxu2 }
 0x4b9   : > { %v2715_v27 = vpop.f32.mrf.mxu1 }
 0x4c0   : > { %v992_v28 = vpop.f32.mrf.mxu2  ;;  %v2717_v29 = vpop.f32.mrf.mxu3 }
 0x4c1   : > { %v2292_v30 = vpack.i.bf16 %v2717_v29, %v2713_v26  ;;  %v1055_v31 = vpop.f32.mrf.mxu1 }
 0x4c8   : > { %v1013_v32 = vpop.f32.mrf.mxu3 }
 0x4d0   : > { %v1099_v33 = vpop.f32.mrf.mxu3 }
 0x4d1   : > { %v1152_v34 = vsel %vm596_vm1, %v1099_v33, -inf }
 0x4d2   : > { %1153 = vmax.xlane.f32.xlu0 %v1152_v34 }
 0x4d5   : > { %v1076_v35 = vpop.f32.mrf.mxu2 }
 0x4d6   : > { %v1149_v36 = vsel %vm596_vm1, %v1076_v35, -inf }
 0x4d7   : > { %1150 = vmax.xlane.f32.xlu2 %v1149_v36 }
 0x4d8   : > { %v1101_v37 = vpop.f32.mrf.mxu3 }
 0x4dd   : > { %v1078_v38 = vpop.f32.mrf.mxu2 }
 0x4e6   : > { %1218 = vrot.lane.b32.xlu0 %v2609_v52, %s2440_s30 }
 0x4ee   : > { %1306 = vrot.lane.b32.xlu0 %v2563_v13, %s2441_s0 }
 0x4f6   : > { %1281 = vrot.lane.b32.xlu0 %v2570_v18, %s2442_s18 }
 0x4fe   : > { %1239 = vrot.lane.b32.xlu0 %v2629_v16, %s2440_s30 }
 0x506   : > { %1260 = vrot.lane.b32.xlu0 %v2633_v17, %s2440_s30 }
 0x50d   : > { %v2730_v39 = vpop.f32.mrf.mxu0 }
 0x50e   : > { %1329 = vrot.lane.b32.xlu0 %v2572_v19, %s2441_s0 }
 0x515   : > { %v1034_v40 = vpop.f32.mrf.mxu0 }
 0x516   : > { %1327 = vrot.lane.b32.xlu0 %v2572_v19, %s2442_s18 }
 0x51a   : > { %v1145_v41 = vpop.f32.mrf.mxu1 }
 0x51b   : > { %v1158_v42 = vsel %vm596_vm1, %v1145_v41, -inf }
 0x51c   : > { %1159 = vmax.xlane.f32.xlu2 %v1158_v42 }
 0x51d   : > { %v1122_v43 = vpop.f32.mrf.mxu0 }
 0x51e   : > { %v1155_v57 = vsel %vm596_vm1, %v1122_v43, -inf }
 0x522   : > { %v1147_v44 = vpop.f32.mrf.mxu1 }
 0x525   : > { %v1124_v45 = vpop.f32.mrf.mxu0 }
 0x534   : > { %1197 = vrot.lane.b32.xlu2 %v2603_v50, %s2440_s30 }
 0x545   : > { %v1154_v49 = vpop.xlane.xlu0 %1153 }
 0x546   : > { %v1162_v51 = vsub.f32 %v1099_v33, %v1154_v49 }
 0x548   : > { %v1167_v55 = vmul.f32 1.442695, %v1162_v51 }
 0x54a   : > { %v1151_v46 = vpop.xlane.xlu2 %1150 }
 0x54b   : > { %v1161_v47 = vsub.f32 %v1076_v35, %v1151_v46 }
 0x54d   : > { %v1165_v48 = vmul.f32 1.442695, %v1161_v47 }
 0x54f   : > { %2363 = vpow2.f32 %v1165_v48 }
 0x550   : > { %2365 = vpow2.f32 %v1167_v55 }
 0x555   : > { %v2364_v53 = vpop.eup %2363 }
 0x556   : > { %v1173_v54 = vsel %vm596_vm1, %v2364_v53, 0.0  ;;  %v2366_v59 = vpop.eup %2365 }
 0x557   : > { %1174 = vadd.xlane.f32.xlu1 %v1173_v54  ;;  %v1176_v63 = vsel %vm596_vm1, %v2366_v59, 0.0 }
 0x558   : > { %v1219_v19 = vpop.permute.xlu0 %1218 }
 0x559   : > { %v1224_v56 = vsel %vm744_vm2, %v1219_v19, 0 }
 0x55a   : > { %1233 = vmatpush.bf16.msrb.mxu3 %v1224_v56 }
 0x55d   : > { %1156 = vmax.xlane.f32.xlu2 %v1155_v57 }
 0x560   : > { %v1307_v58 = vpop.permute.xlu0 %1306 }
 0x561   : > { %v1312_v61 = vsel %vm596_vm1, %v1307_v58, 0 }
 0x562   : > { %1321 = vmatpush.bf16.xpose.msra.mxu3 %v1312_v61 }
 0x565   : > { %1177 = vadd.xlane.f32.xlu2 %v1176_v63 }
 0x568   : > { %v1282_v0 = vpop.permute.xlu0 %1281 }
 0x570   : > { %v1240_v1 = vpop.permute.xlu0 %1239 }
 0x571   : > { %v1245_v2 = vsel %vm744_vm2, %v1240_v1, 0 }
 0x572   : > { %1254 = vmatpush.bf16.msrb.mxu0 %v1245_v2 }
 0x578   : > { %v1261_v3 = vpop.permute.xlu0 %1260 }
 0x579   : > { %v1266_v4 = vsel %vm744_vm2, %v1261_v3, 0 }
 0x57a   : > { %1275 = vmatpush.bf16.msra.mxu1 %v1266_v4 }
 0x57d   : > { %1283 = vrot.lane.b32.xlu2 %v2570_v18, %s2441_s0 }
 0x580   : > { %v1330_v5 = vpop.permute.xlu0 %1329 }
 0x581   : > { %v1335_v6 = vsel %vm596_vm1, %v1330_v5, 0 }
 0x582   : > { %1344 = vmatpush.bf16.xpose.msra.mxu0 %v1335_v6 }
 0x588   : > { %v1328_v56 = vpop.permute.xlu0 %1327 }
 0x58f   : > { %v1160_v7 = vpop.xlane.xlu2 %1159 }
 0x590   : > { %v1164_v8 = vsub.f32 %v1145_v41, %v1160_v7 }
 0x592   : > { %v1171_v10 = vmul.f32 1.442695, %v1164_v8 }
 0x594   : > { %2367 = vpow2.f32 %v1171_v10 }
 0x597   : > { %v1198_v12 = vpop.permute.xlu2 %1197 }
 0x598   : > { %v1203_v15 = vsel %vm744_vm2, %v1198_v12, 0 }
 0x599   : > { %1212 = vmatpush.bf16.msrb.mxu2 %v1203_v15 }
 0x59a   : > { %v2368_v14 = vpop.eup %2367 }
 0x59b   : > { %v1182_v21 = vsel %vm596_vm1, %v2368_v14, 0.0 }
 0x59c   : > { %1183 = vadd.xlane.f32.xlu1 %v1182_v21 }
 0x5b5   : > { %1304 = vrot.lane.b32.xlu1 %v2563_v13, %s2442_s18 }
 0x5bd   : > { %1352 = vrot.lane.b32.xlu1 %v2583_v24, %s2441_s0 }
 0x5ca   : > { %v1175_v18 = vpop.xlane.xlu1 %1174 }
 0x5cb   : > { %2369 = vrcp.f32 %v1175_v18 }
 0x5d0   : > { %v1157_v22 = vpop.xlane.xlu2 %1156 }
 0x5d1   : > { %v2370_v20 = vpop.eup %2369  ;;  %v1163_v23 = vsub.f32 %v1122_v43, %v1157_v22 }
 0x5d2   : > { %v1189_v25 = vmul.f32 %v2370_v20, %v2364_v53 }
 0x5d3   : > { %v1169_v28 = vmul.f32 1.442695, %v1163_v23  ;;  %v2307_v23 = vpack.i.bf16 %v2715_v27, %v2730_v39 }
 0x5d4   : > { %v1193_v31 = vpack.c.bf16 %v1189_v25, %v1189_v25 }
 0x5d5   : > { %2371 = vpow2.f32 %v1169_v28 }
 0x5d6   : > { %2189 = vmatmul.msk.bf16.vlgmr.msrb.gmra.mxu2 %vm596_vm1, %v1193_v31 }
 0x5d8   : > { %v1178_v32 = vpop.xlane.xlu2 %1177 }
 0x5d9   : > { %2373 = vrcp.f32 %v1178_v32 }
 0x5db   : > { %v2372_v33 = vpop.eup %2371 }
 0x5dc   : > { %v1179_v34 = vsel %vm596_vm1, %v2372_v33, 0.0 }
 0x5dd   : > { %1180 = vadd.xlane.f32.xlu2 %v1179_v34 }
 0x5df   : > { %v2374_v13 = vpop.eup %2373 }
 0x5e0   : > { %v1190_v35 = vmul.f32 %v2374_v13, %v2366_v59  ;;  %v1284_v36 = vpop.permute.xlu2 %1283 }
 0x5e1   : > { %v1289_v37 = vsel %vm596_vm1, %v1284_v36, 0 }
 0x5e2   : > { %v1194_v38 = vpack.c.bf16 %v1190_v35, %v1190_v35  ;;  %1298 = vmatpush.bf16.xpose.msra.mxu2 %v1289_v37 }
 0x5e4   : > { %2190 = vmatmul.msk.bf16.vlgmr.msrb.gmra.mxu3 %vm596_vm1, %v1194_v38 }
 0x5e9   : > { %2193 = vmatmul.msk.bf16.vlgmr.msra.gmra.mxu2 %vm596_vm1, %v1282_v0 }
 0x5f5   : > { %1350 = vrot.lane.b32.xlu2 %v2583_v24, %s2442_s18 }
 0x60f   : > { %v1184_v40 = vpop.xlane.xlu1 %1183 }
 0x610   : > { %2375 = vrcp.f32 %v1184_v40 }
 0x616   : > { %v2376_v41 = vpop.eup %2375 }
 0x617   : > { %v1192_v42 = vmul.f32 %v2376_v41, %v2368_v14 }
 0x619   : > { %v1196_v43 = vpack.c.bf16 %v1192_v42, %v1192_v42 }
 0x61b   : > { %2192 = vmatmul.msk.bf16.vlgmr.msra.gmra.mxu1 %vm596_vm1, %v1196_v43 }
 0x627   : > { %v1305_v44 = vpop.permute.xlu1 %1304 }
 0x628   : > { %2194 = vmatmul.msk.bf16.vlgmr.msra.gmra.mxu3 %vm596_vm1, %v1305_v44 }
 0x62f   : > { %v1353_v45 = vpop.permute.xlu1 %1352 }
 0x630   : > { %v1358_v46 = vsel %vm596_vm1, %v1353_v45, 0 }
 0x631   : > { %1367 = vmatpush.bf16.xpose.msrb.mxu1 %v1358_v46 }
 0x650   : > { %v1181_v47 = vpop.xlane.xlu2 %1180 }
 0x651   : > { %2377 = vrcp.f32 %v1181_v47 }
 0x657   : > { %v2378_v48 = vpop.eup %2377 }
 0x658   : > { %v1191_v49 = vmul.f32 %v2378_v48, %v2372_v33  ;;  %v1351_v51 = vpop.permute.xlu2 %1350 }
 0x659   : > { %v1214_v24 = vpop.f32.mrf.mxu2  ;;  %2196 = vmatmul.msk.bf16.vlgmr.msrb.gmra.mxu1 %vm596_vm1, %v1351_v51 }
 0x65a   : > { %v1195_v53 = vpack.c.bf16 %v1191_v49, %v1191_v49 }
 0x65c   : > { %2191 = vmatmul.msk.bf16.vlgmr.msrb.gmra.mxu0 %vm596_vm1, %v1195_v53 }
 0x661   : > { %v1216_v54 = vpop.f32.mrf.mxu2 }
 0x667   : > { %v1235_v55 = vpop.f32.mrf.mxu3 }
 0x668   : > { %v2297_v19 = vpack.i.bf16 %v1235_v55, %v1214_v24 }
 0x66c   : > { %v1300_v57 = vpop.f32.mrf.mxu2  ;;  %2195 = vmatmul.msk.bf16.vlgmr.msra.gmra.mxu0 %vm596_vm1, %v1328_v56 }
 0x66d   : > { %v1373_v58 = vsel %vm596_vm1, %v1300_v57, -inf }
 0x66e   : > { %1374 = vmax.xlane.f32.xlu1 %v1373_v58 }
 0x66f   : > { %v1237_v59 = vpop.f32.mrf.mxu3 }
 0x674   : > { %v1302_v61 = vpop.f32.mrf.mxu2 }
 0x698   : > { %v2768_v63 = vpop.f32.mrf.mxu1 }
 0x6a0   : > { %v1279_v0 = vpop.f32.mrf.mxu1 }
 0x6ab   : > { %v1323_v1 = vpop.f32.mrf.mxu3 }
 0x6ac   : > { %v1376_v2 = vsel %vm596_vm1, %v1323_v1, -inf }
 0x6ad   : > { %1377 = vmax.xlane.f32.xlu0 %v1376_v2 }
 0x6b3   : > { %v1325_v3 = vpop.f32.mrf.mxu3 }
 0x6c1   : > { %1421 = vrot.lane.b32.xlu0 %v2603_v50, %s2443_s19 }
 0x6d6   : > { %v1369_v4 = vpop.f32.mrf.mxu1 }
 0x6d7   : > { %v1382_v5 = vsel %vm596_vm1, %v1369_v4, -inf }
 0x6d8   : > { %1383 = vmax.xlane.f32.xlu1 %v1382_v5 }
 0x6d9   : > { %v2774_v6 = vpop.f32.mrf.mxu0 }
 0x6da   : > { %v2312_v7 = vpack.i.bf16 %v2768_v63, %v2774_v6 }
 0x6de   : > { %v1371_v8 = vpop.f32.mrf.mxu1 }
 0x6e1   : > { %v1258_v10 = vpop.f32.mrf.mxu0  ;;  %v1375_v12 = vpop.xlane.xlu1 %1374 }
 0x6e2   : > { %v1385_v15 = vsub.f32 %v1300_v57, %v1375_v12 }
 0x6e4   : > { %v1389_v14 = vmul.f32 1.442695, %v1385_v15 }
 0x6e6   : > { %2379 = vpow2.f32 %v1389_v14  ;;  %v2257_v14 = vld [vmem:[%s3023_s4] sm:$0xff] }
 0x6e9   : > { %v1346_v21 = vpop.f32.mrf.mxu0 }
 0x6ea   : > { %v1379_v18 = vsel %vm596_vm1, %v1346_v21, -inf }
 0x6eb   : > { %1380 = vmax.xlane.f32.xlu2 %v1379_v18 }
 0x6ec   : > { %v2380_v50 = vpop.eup %2379 }
 0x6ed   : > { %v1397_v22 = vsel %vm596_vm1, %v2380_v50, 0.0 }
 0x6ee   : > { %1398 = vadd.xlane.f32.xlu0 %v1397_v22 }
 0x6f1   : > { %v1348_v20 = vpop.f32.mrf.mxu0 }
 0x702   : > { %1463 = vrot.lane.b32.xlu0 %v2629_v16, %s2443_s19 }
 0x70a   : > { %2298 = vrot.lane.b32.xlu0 %v2297_v19, %s2444_s20 }
 0x712   : > { %2308 = vrot.lane.b32.xlu0 %v2307_v23, %s2445_s22 }
 0x720   : > { %v1378_v25 = vpop.xlane.xlu0 %1377 }
 0x721   : > { %v1386_v28 = vsub.f32 %v1323_v1, %v1378_v25 }
 0x723   : > { %v1391_v31 = vmul.f32 1.442695, %v1386_v28 }
 0x725   : > { %2381 = vpow2.f32 %v1391_v31 }
 0x72b   : > { %v2382_v32 = vpop.eup %2381 }
 0x72c   : > { %v1400_v33 = vsel %vm596_vm1, %v2382_v32, 0.0 }
 0x72d   : > { %1401 = vadd.xlane.f32.xlu1 %v1400_v33 }
 0x733   : > { %v1422_v34 = vpop.permute.xlu0 %1421 }
 0x734   : > { %v1427_v13 = vsel %vm744_vm2, %v1422_v34, 0 }
 0x735   : > { %1436 = vmatpush.bf16.msrb.mxu2 %v1427_v13 }
 0x746   : > { %1442 = vrot.lane.b32.xlu1 %v2609_v52, %s2443_s19 }
 0x74b   : > { %v1384_v16 = vpop.xlane.xlu1 %1383 }
 0x74c   : > { %v1388_v35 = vsub.f32 %v1369_v4, %v1384_v16  ;;  %v2258_v4 = vld [vmem:[%s3023_s4 + $0x8] sm:$0xff] }
 0x74d   : > { %1601 = vmatpush.bf16.msra.mxu2 %v2258_v4 }
 0x74e   : > { %v1395_v27 = vmul.f32 1.442695, %v1388_v35  ;;  %2293 = vrot.lane.b32.xlu1 %v2292_v30, %s2445_s22  ;;  %s3002_s22 = scalar_lea.vmem %s3035_s16, %s2156_s28 }
 0x750   : > { %2383 = vpow2.f32 %v1395_v27 }
 0x751   : > { %1602 = vmatpush.bf16.msra.mxu2 %v2257_v14 }
 0x756   : > { %v2384_v39 = vpop.eup %2383 }
 0x757   : > { %v1406_v36 = vsel %vm596_vm1, %v2384_v39, 0.0 }
 0x758   : > { %1407 = vadd.xlane.f32.xlu2 %v1406_v36 }
 0x75e   : > { %v1381_v37 = vpop.xlane.xlu2 %1380 }
 0x75f   : > { %v1387_v38 = vsub.f32 %v1346_v21, %v1381_v37 }
 0x761   : > { %v1393_v40 = vmul.f32 1.442695, %v1387_v38  ;;  %v1399_v41 = vpop.xlane.xlu0 %1398 }
 0x762   : > { %2385 = vrcp.f32 %v1399_v41 }
 0x763   : > { %2387 = vpow2.f32 %v1393_v40 }
 0x768   : > { %v2386_v42 = vpop.eup %2385 }
 0x769   : > { %v2388_v52 = vpop.eup %2387  ;;  %v1413_v43 = vmul.f32 %v2386_v42, %v2380_v50 }
 0x76a   : > { %v1403_v44 = vsel %vm596_vm1, %v2388_v52, 0.0 }
 0x76b   : > { %v1417_v45 = vpack.c.bf16 %v1413_v43, %v1413_v43  ;;  %1404 = vadd.xlane.f32.xlu2 %v1403_v44 }
 0x76d   : > { %2197 = vmatmul.msk.bf16.vlgmr.msrb.gmra.mxu2 %vm596_vm1, %v1417_v45 }
 0x774   : > { %v1464_v26 = vpop.permute.xlu0 %1463 }
 0x775   : > { %v1469_v29 = vsel %vm744_vm2, %v1464_v26, 0  ;;  %v2838_v26 = vld [vmem:[%s2555_s17] sm:$0xff] }
 0x776   : > { %1478 = vmatpush.bf16.msrb.mxu0 %v1469_v29 }
 0x77c   : > { %v2299_v6 = vpop.permute.xlu0 %2298 }
 0x77d   : > { %v2301_v22 = vunpack.i.h.bf16 %v2299_v6  ;;  %v2300_v20 = vunpack.i.l.bf16 %v2299_v6 }
 0x783   : > { %1484 = vrot.lane.b32.xlu2 %v2633_v17, %s2443_s19 }
 0x7a0   : > { %v1402_v30 = vpop.xlane.xlu1 %1401 }
 0x7a1   : > { %2389 = vrcp.f32 %v1402_v30 }
 0x7a7   : > { %v2390_v46 = vpop.eup %2389 }
 0x7a8   : > { %v1414_v47 = vmul.f32 %v2390_v46, %v2382_v32 }
 0x7aa   : > { %v1418_v51 = vpack.c.bf16 %v1414_v47, %v1414_v47 }
 0x7b8   : > { %v1443_v48 = vpop.permute.xlu1 %1442 }
 0x7b9   : > { %v1448_v49 = vsel %vm744_vm2, %v1443_v48, 0 }
 0x7ba   : > { %1457 = vmatpush.bf16.msrb.mxu3 %v1448_v49  ;;  %v2843_v49 = vld [vmem:[%s2555_s17 + $0x8] sm:$0xff] }
 0x7bd   : > { %2198 = vmatmul.msk.bf16.vlgmr.msrb.gmra.mxu3 %vm596_vm1, %v1418_v51 }
 0x7c0   : > { %v2294_v21 = vpop.permute.xlu1 %2293 }
 0x7c1   : > { %v2296_v18 = vunpack.i.h.bf16 %v2294_v21  ;;  %v2295_v63 = vunpack.i.l.bf16 %v2294_v21 }
 0x7c3   : > { %v1553_v50 = vsel %vm596_vm1, %v2661_v60, %v2295_v63 }
 0x7c4   : > { %v1558_v31 = vsel %vm1557_vm3, %v1553_v50, %v2300_v20 }
 0x7cb   : > { %v1408_v24 = vpop.xlane.xlu2 %1407 }
 0x7cc   : > { %2391 = vrcp.f32 %v1408_v24 }
 0x7d2   : > { %v2392_v54 = vpop.eup %2391 }
 0x7d3   : > { %v1416_v19 = vmul.f32 %v2392_v54, %v2384_v39 }
 0x7d5   : > { %v1420_v59 = vpack.c.bf16 %v1416_v19, %v1416_v19  ;;  %v2848_v19 = vld [vmem:[%s2555_s17 + $0x10] sm:$0xff] }
 0x7de   : > { %v1405_v53 = vpop.xlane.xlu2 %1404 }
 0x7df   : > { %2393 = vrcp.f32 %v1405_v53 }
 0x7e5   : > { %v2394_v55 = vpop.eup %2393 }
 0x7e6   : > { %v1415_v56 = vmul.f32 %v2394_v55, %v2388_v52  ;;  %v1485_v17 = vpop.permute.xlu2 %1484 }
 0x7e7   : > { %v1490_v57 = vsel %vm744_vm2, %v1485_v17, 0 }
 0x7e8   : > { %v1419_v58 = vpack.c.bf16 %v1415_v56, %v1415_v56  ;;  %1499 = vmatpush.bf16.msra.mxu1 %v1490_v57 }
 0x7ea   : > { %2199 = vmatmul.msk.bf16.vlgmr.msrb.gmra.mxu0 %vm596_vm1, %v1419_v58 }
 0x7eb   : > { %2200 = vmatmul.msk.bf16.vlgmr.msra.gmra.mxu1 %vm596_vm1, %v1420_v59 }
 0x7f0   : > { %v1438_v61 = vpop.f32.mrf.mxu2 }
 0x7f8   : > { %v1440_v0 = vpop.f32.mrf.mxu2 }
 0x840   : > { %v1459_v1 = vpop.f32.mrf.mxu3 }
 0x841   : > { %v2302_v2 = vpack.i.bf16 %v1459_v1, %v1438_v61  ;;  %v2853_v61 = vld [vmem:[%s2555_s17 + $0x18] sm:$0xff] }
 0x843   : > { %2303 = vrot.lane.b32.xlu1 %v2302_v2, %s2446_s23 }
 0x848   : > { %v1461_v3 = vpop.f32.mrf.mxu3 }
 0x84b   : > { %2313 = vrot.lane.b32.xlu1 %v2312_v7, %s2444_s20  ;;  %v1554_v7 = vsel %vm596_vm1, %v2663_v62, %v2296_v18  ;;  %v2309_v62 = vpop.permute.xlu0 %2308 }
 0x84c   : > { %v1559_v32 = vsel %vm1557_vm3, %v1554_v7, %v2301_v22  ;;  %v2311_v16 = vunpack.i.h.bf16 %v2309_v62  ;;  %v2310_v35 = vunpack.i.l.bf16 %v2309_v62 }
 0x84e   : > { %v1556_v37 = vsel %vm596_vm1, %v2684_v11, %v2311_v16  ;;  %v1555_v38 = vsel %vm596_vm1, %v2674_v9, %v2310_v35  ;;  %v1614_v11 = vld [vmem:[%s3020_s1] sm:$0xff] }
 0x84f   : > { %v2322_v9 = vld [vmem:[%s3024_s5] ss:$0 sm:$0xff]  ;;  %v1615_v29 = vadd.f32 %v2838_v26, %v1614_v11  ;;  %v1616_v51 = vadd.f32 %v2843_v49, %v1614_v11  ;;  %v1617_v56 = vadd.f32 %v2848_v19, %v1614_v11  ;;  %v1618_v0 = vadd.f32 %v2853_v61, %v1614_v11 }
 0x867   : > { %v1480_v5 = vpop.f32.mrf.mxu0 }
 0x868   : > { %v1501_v8 = vpop.f32.mrf.mxu1 }
 0x869   : > { %v2317_v10 = vpack.i.bf16 %v1501_v8, %v1480_v5  ;;  %v2447_v5 = vmov 32.0  }
 0x86a   : > { %2395 = vrcp.f32 %v2447_v5 }
 0x86b   : > { %2318 = vrot.lane.b32.xlu0 %v2317_v10, %s2446_s23 }
 0x86f   : > { %v1482_v12 = vpop.f32.mrf.mxu0 }
 0x870   : > { %v1503_v15 = vpop.f32.mrf.mxu1  ;;  %v2396_v8 = vpop.eup %2395 }
 0x871   : > { %v1638_v10 = vmul.f32 32.0, %v2396_v8  ;;  %vm1642_vm5 = vweird.f32 %v2396_v8 }
 0x873   : > { %v1639_v12 = vsub.f32 1.0, %v1638_v10 }
 0x875   : > { %v1640_v15 = vmul.f32 %v2396_v8, %v1639_v12 }
 0x877   : > { %v1641_v14 = vadd.f32 %v2396_v8, %v1640_v15  ;;  %v2267_v15 = vld [vmem:[%s3031_s12 + $0x30] sm:$0xff] }
 0x879   : > { %v2857_v21 = vsel %vm1642_vm5, %v2396_v8, %v1641_v14  ;;  %v2268_v8 = vld [vmem:[%s3031_s12 + $0x38] sm:$0xff] }
 0x87a   : > { %1855 = vmatpush.bf16.msra.mxu0 %v2268_v8 }
 0x87e   : > { %1856 = vmatpush.bf16.msra.mxu0 %v2267_v15 }
 0x8b5   : > { %v2304_v23 = vpop.permute.xlu1 %2303 }
 0x8b6   : > { %v2306_v25 = vunpack.i.h.bf16 %v2304_v23  ;;  %v2305_v28 = vunpack.i.l.bf16 %v2304_v23 }
 0x8b8   : > { %v1563_v33 = vsel %vm1562_vm4, %v1558_v31, %v2305_v28  ;;  %v1564_v34 = vsel %vm1562_vm4, %v1559_v32, %v2306_v25 }
 0x8b9   : > { %v1567_v13 = vpack.c.bf16 %v1564_v34, %v1563_v33 }
 0x8bb   : > { %2209 = vmatmul.msk.bf16.vlgmr.msra.gmra.mxu2 %vm548_vm0, %v1567_v13 }
 0x8bd   : > { %v2314_v60 = vpop.permute.xlu1 %2313 }
 0x8be   : > { %v2316_v27 = vunpack.i.h.bf16 %v2314_v60  ;;  %v2315_v39 = vunpack.i.l.bf16 %v2314_v60 }
 0x8c0   : > { %v1561_v42 = vsel %vm1557_vm3, %v1556_v37, %v2316_v27  ;;  %v1560_v52 = vsel %vm1557_vm3, %v1555_v38, %v2315_v39  ;;  %v2260_v39 = vld [vmem:[%s3029_s10 + $0x8] sm:$0xff] }
 0x8c1   : > { %1768 = vmatpush.bf16.msra.mxu3 %v2260_v39 }
 0x8dd   : > { %v2319_v36 = vpop.permute.xlu0 %2318 }
 0x8de   : > { %v2321_v40 = vunpack.i.h.bf16 %v2319_v36  ;;  %v2320_v41 = vunpack.i.l.bf16 %v2319_v36 }
 0x8e0   : > { %v1565_v43 = vsel %vm1562_vm4, %v1560_v52, %v2320_v41  ;;  %v1566_v44 = vsel %vm1562_vm4, %v1561_v42, %v2321_v40  ;;  %v2259_v40 = vld [vmem:[%s3029_s10] sm:$0xff] }
 0x8e1   : > { %v1568_v45 = vpack.c.bf16 %v1566_v44, %v1565_v43  ;;  %1769 = vmatpush.bf16.msra.mxu3 %v2259_v40 }
 0x8e3   : > { %2210 = vmatmul.msk.bf16.gmra.mxu2 %vm548_vm0, %v1568_v45 }
 0x93e   : > { %v1604_v30 = vpop.f32.mrf.mxu2 }
 0x93f   : > { %v1605_v46 = vadd.f32 %v2322_v9, %v1604_v30 }
 0x941   : > { %v1619_v47 = vadd.f32 %v1615_v29, %v1605_v46 }
 0x943   : > { %v1625_v48 = vsel %vm548_vm0, %v1619_v47, 0.0 }
 0x944   : > { %1626 = vadd.xlane.f32.xlu2 %v1625_v48 }
 0x946   : > { %v1606_v24 = vpop.f32.mrf.mxu2 }
 0x947   : > { %v1607_v53 = vadd.f32 %v2322_v9, %v1606_v24 }
 0x949   : > { %v1620_v54 = vadd.f32 %v1616_v51, %v1607_v53  ;;  %v2323_v53 = vld [vmem:[%s3025_s6] ss:$0 sm:$0xff] }
 0x94b   : > { %v1628_v55 = vsel %vm548_vm0, %v1620_v54, 0.0 }
 0x94c   : > { %1629 = vadd.xlane.f32.xlu1 %v1628_v55 }
 0x966   : > { %v1609_v17 = vpop.f32.mrf.mxu2 }
 0x967   : > { %v1610_v57 = vadd.f32 %v2322_v9, %v1609_v17  ;;  %v2324_v17 = vld [vmem:[%s3026_s7] ss:$0 sm:$0xff] }
 0x969   : > { %v1621_v58 = vadd.f32 %v1617_v56, %v1610_v57 }
 0x96b   : > { %v1631_v59 = vsel %vm548_vm0, %v1621_v58, 0.0 }
 0x96c   : > { %1632 = vadd.xlane.f32.xlu0 %v1631_v59 }
 0x96e   : > { %v1611_v1 = vpop.f32.mrf.mxu2 }
 0x96f   : > { %v1612_v2 = vadd.f32 %v2322_v9, %v1611_v1 }
 0x971   : > { %v1622_v3 = vadd.f32 %v1618_v0, %v1612_v2 }
 0x973   : > { %v1634_v4 = vsel %vm548_vm0, %v1622_v3, 0.0 }
 0x974   : > { %1635 = vadd.xlane.f32.xlu2 %v1634_v4 }
 0x9b7   : > { %v1627_v18 = vpop.xlane.xlu2 %1626 }
 0x9b8   : > { %v1644_v63 = vmul.f32 %v2857_v21, %v1627_v18 }
 0x9ba   : > { %v1648_v6 = vsub.f32 %v1619_v47, %v1644_v63 }
 0x9bc   : > { %v1652_v7 = vmul.f32 %v1648_v6, %v1648_v6 }
 0x9be   : > { %v1656_v50 = vsel %vm548_vm0, %v1652_v7, 0.0 }
 0x9bf   : > { %v1630_v22 = vpop.xlane.xlu1 %1629  ;;  %1657 = vadd.xlane.f32.xlu1 %v1656_v50 }
 0x9c0   : > { %v1645_v20 = vmul.f32 %v2857_v21, %v1630_v22  ;;  %v2265_v22 = vld [vmem:[%s3031_s12 + $0x20] sm:$0xff] }
 0x9c2   : > { %v1649_v23 = vsub.f32 %v1620_v54, %v1645_v20 }
 0x9c4   : > { %v1653_v25 = vmul.f32 %v1649_v23, %v1649_v23 }
 0x9c6   : > { %v1659_v28 = vsel %vm548_vm0, %v1653_v25, 0.0 }
 0x9c7   : > { %1660 = vadd.xlane.f32.xlu0 %v1659_v28 }
 0x9df   : > { %v1633_v31 = vpop.xlane.xlu0 %1632 }
 0x9e0   : > { %v1646_v32 = vmul.f32 %v2857_v21, %v1633_v31 }
 0x9e2   : > { %v2864_v33 = vsub.f32 %v1621_v58, %v1646_v32 }
 0x9e4   : > { %v1654_v34 = vmul.f32 %v2864_v33, %v2864_v33 }
 0x9e6   : > { %v1662_v13 = vsel %vm548_vm0, %v1654_v34, 0.0 }
 0x9e7   : > { %1663 = vadd.xlane.f32.xlu2 %v1662_v13  ;;  %v1636_v62 = vpop.xlane.xlu2 %1635 }
 0x9e8   : > { %v1647_v60 = vmul.f32 %v2857_v21, %v1636_v62 }
 0x9ea   : > { %v2870_v16 = vsub.f32 %v1622_v3, %v1647_v60 }
 0x9ec   : > { %v1655_v35 = vmul.f32 %v2870_v16, %v2870_v16 }
 0x9ee   : > { %v1665_v27 = vsel %vm548_vm0, %v1655_v35, 0.0 }
 0x9ef   : > { %1666 = vadd.xlane.f32.xlu1 %v1665_v27 }
 0xa32   : > { %v1658_v36 = vpop.xlane.xlu1 %1657 }
 0xa33   : > { %v1668_v37 = vmul.f32 %v1658_v36, %v2857_v21 }
 0xa35   : > { %v1672_v38 = vadd.f32 1e-05, %v1668_v37 }
 0xa37   : > { %2397 = vrsqrt.f32 %v1672_v38  ;;  %vm1682_vm7 = vweird.f32 %v1672_v38 }
 0xa3a   : > { %v1661_v41 = vpop.xlane.xlu0 %1660 }
 0xa3b   : > { %v1669_v42 = vmul.f32 %v1661_v41, %v2857_v21  ;;  %v2264_v41 = vld [vmem:[%s3031_s12 + $0x18] sm:$0xff] }
 0xa3d   : > { %v2398_v52 = vpop.eup %2397  ;;  %v1673_v43 = vadd.f32 1e-05, %v1669_v42  ;;  %v2261_v42 = vld [vmem:[%s3031_s12] sm:$0xff] }
 0xa3e   : > { %v1677_v44 = vmul.f32 %v2398_v52, %v1672_v38  ;;  %vm1683_vm6 = vweird.f32 %v2398_v52 }
 0xa3f   : > { %2399 = vrsqrt.f32 %v1673_v43  ;;  %vm1684_vm8 = vmor %vm1682_vm7, %vm1683_vm6  ;;  %vm1692_vm10 = vweird.f32 %v1673_v43 }
 0xa40   : > { %v1678_v45 = vmul.f32 %v2398_v52, %v1677_v44 }
 0xa42   : > { %v1679_v11 = vmul.f32 0.5, %v1678_v45 }
 0xa44   : > { %v1680_v9 = vsub.f32 1.5, %v1679_v11 }
 0xa45   : > { %v2400_v29 = vpop.eup %2399 }
 0xa46   : > { %v1681_v30 = vmul.f32 %v2398_v52, %v1680_v9  ;;  %v1687_v46 = vmul.f32 %v2400_v29, %v1673_v43  ;;  %vm1693_vm9 = vweird.f32 %v2400_v29  ;;  %v2325_v43 = vld [vmem:[%s3030_s11] ss:$0 sm:$0xff] }
 0xa47   : > { %vm1694_vm11 = vmor %vm1692_vm10, %vm1693_vm9 }
 0xa48   : > { %v1688_v47 = vmul.f32 %v2400_v29, %v1687_v46  ;;  %v1685_v48 = vsel %vm1684_vm8, %v2398_v52, %v1681_v30 }
 0xa49   : > { %v1716_v54 = vmul.f32 %v1685_v48, %v1648_v6  ;;  %v2266_v6 = vld [vmem:[%s3031_s12 + $0x28] sm:$0xff] }
 0xa4a   : > { %v1689_v51 = vmul.f32 0.5, %v1688_v47  ;;  %1857 = vmatpush.bf16.msra.mxu0 %v2266_v6 }
 0xa4b   : > { %v1723_v57 = vmul.f32 %v2323_v53, %v1716_v54 }
 0xa4c   : > { %v1690_v24 = vsub.f32 1.5, %v1689_v51 }
 0xa4d   : > { %v2889_v0 = vadd.f32 %v2324_v17, %v1723_v57 }
 0xa4e   : > { %v1691_v55 = vmul.f32 %v2400_v29, %v1690_v24  ;;  %1858 = vmatpush.bf16.msra.mxu0 %v2265_v22 }
 0xa50   : > { %v1695_v56 = vsel %vm1694_vm11, %v2400_v29, %v1691_v55  ;;  %v2326_v55 = vld [vmem:[%s3032_s13] ss:$0 sm:$0xff] }
 0xa51   : > { %v1717_v58 = vmul.f32 %v1695_v56, %v1649_v23 }
 0xa52   : > { %1859 = vmatpush.bf16.msra.mxu0 %v2264_v41 }
 0xa53   : > { %v1724_v59 = vmul.f32 %v2323_v53, %v1717_v58 }
 0xa55   : > { %v2891_v1 = vadd.f32 %v2324_v17, %v1724_v59 }
 0xa57   : > { %v1734_v2 = vpack.c.bf16 %v2891_v1, %v2889_v0 }
 0xa59   : > { %2219 = vmatmul.msk.bf16.vlgmr.msra.gmra.mxu3 %vm548_vm0, %v1734_v2 }
 0xa5a   : > { %v1664_v3 = vpop.xlane.xlu2 %1663 }
 0xa5b   : > { %v1670_v4 = vmul.f32 %v1664_v3, %v2857_v21 }
 0xa5d   : > { %v1674_v5 = vadd.f32 1e-05, %v1670_v4 }
 0xa5f   : > { %2401 = vrsqrt.f32 %v1674_v5  ;;  %vm1702_vm13 = vweird.f32 %v1674_v5 }
 0xa62   : > { %v1667_v10 = vpop.xlane.xlu1 %1666 }
 0xa63   : > { %v1671_v12 = vmul.f32 %v1667_v10, %v2857_v21 }
 0xa65   : > { %v2402_v14 = vpop.eup %2401  ;;  %v1675_v18 = vadd.f32 1e-05, %v1671_v12 }
 0xa66   : > { %v1697_v63 = vmul.f32 %v2402_v14, %v1674_v5  ;;  %vm1703_vm12 = vweird.f32 %v2402_v14 }
 0xa67   : > { %2403 = vrsqrt.f32 %v1675_v18  ;;  %vm1704_vm14 = vmor %vm1702_vm13, %vm1703_vm12  ;;  %vm1712_vm1 = vweird.f32 %v1675_v18 }
 0xa68   : > { %v1698_v7 = vmul.f32 %v2402_v14, %v1697_v63 }
 0xa6a   : > { %v1699_v50 = vmul.f32 0.5, %v1698_v7 }
 0xa6c   : > { %v1700_v20 = vsub.f32 1.5, %v1699_v50 }
 0xa6d   : > { %v2404_v23 = vpop.eup %2403 }
 0xa6e   : > { %v1701_v25 = vmul.f32 %v2402_v14, %v1700_v20  ;;  %v1707_v28 = vmul.f32 %v2404_v23, %v1675_v18  ;;  %vm1713_vm15 = vweird.f32 %v2404_v23 }
 0xa6f   : > { %vm1714_vm2 = vmor %vm1712_vm1, %vm1713_vm15 }
 0xa70   : > { %v1708_v31 = vmul.f32 %v2404_v23, %v1707_v28  ;;  %v1705_v32 = vsel %vm1704_vm14, %v2402_v14, %v1701_v25 }
 0xa71   : > { %v1718_v62 = vmul.f32 %v1705_v32, %v2864_v33  ;;  %v2263_v33 = vld [vmem:[%s3031_s12 + $0x10] sm:$0xff] }
 0xa72   : > { %v1709_v34 = vmul.f32 0.5, %v1708_v31  ;;  %1860 = vmatpush.bf16.msra.mxu0 %v2263_v33 }
 0xa73   : > { %v1725_v39 = vmul.f32 %v2323_v53, %v1718_v62 }
 0xa74   : > { %v1710_v13 = vsub.f32 1.5, %v1709_v34 }
 0xa75   : > { %v1732_v37 = vadd.f32 %v2324_v17, %v1725_v39 }
 0xa76   : > { %v1711_v60 = vmul.f32 %v2404_v23, %v1710_v13 }
 0xa78   : > { %v1715_v35 = vsel %vm1714_vm2, %v2404_v23, %v1711_v60 }
 0xa79   : > { %v1719_v27 = vmul.f32 %v1715_v35, %v2870_v16  ;;  %v2262_v16 = vld [vmem:[%s3031_s12 + $0x8] sm:$0xff] }
 0xa7a   : > { %1861 = vmatpush.bf16.msra.mxu0 %v2262_v16 }
 0xa7b   : > { %v1726_v36 = vmul.f32 %v2323_v53, %v1719_v27 }
 0xa7d   : > { %v1733_v38 = vadd.f32 %v2324_v17, %v1726_v36 }
 0xa7e   : > { %1862 = vmatpush.bf16.msra.mxu0 %v2261_v42 }
 0xa7f   : > { %v1735_v40 = vpack.c.bf16 %v1733_v38, %v1732_v37 }
 0xa81   : > { %2220 = vmatmul.msk.bf16.gmra.mxu3 %vm548_vm0, %v1735_v40 }
 0xadc   : > { %v1771_v52 = vpop.f32.mrf.mxu3 }
 0xadd   : > { %v1772_v44 = vadd.f32 %v2325_v43, %v1771_v52 }
 0xadf   : > { %v1781_v9 = vmax.f32 %v1772_v44, 0.0 }
 0xae4   : > { %v1773_v45 = vpop.f32.mrf.mxu3 }
 0xae5   : > { %v1774_v11 = vadd.f32 %v2325_v43, %v1773_v45 }
 0xae7   : > { %v1782_v29 = vmax.f32 %v1774_v11, 0.0 }
 0xae9   : > { %v1785_v30 = vpack.c.bf16 %v1782_v29, %v1781_v9 }
 0xaeb   : > { %1863 = vmatmul.bf16.vlgmr.msra.gmra.mxu0 %v1785_v30  ;;  %v2327_v30 = vld [vmem:[%s3027_s8] ss:$0 sm:$0xff] }
 0xb04   : > { %v1776_v46 = vpop.f32.mrf.mxu3 }
 0xb05   : > { %v1777_v47 = vadd.f32 %v2325_v43, %v1776_v46 }
 0xb07   : > { %v1783_v24 = vmax.f32 %v1777_v47, 0.0 }
 0xb0c   : > { %v1778_v48 = vpop.f32.mrf.mxu3 }
 0xb0d   : > { %v1779_v51 = vadd.f32 %v2325_v43, %v1778_v48 }
 0xb0f   : > { %v1784_v53 = vmax.f32 %v1779_v51, 0.0  ;;  %v2328_v51 = vld [vmem:[%s3028_s9] ss:$0 sm:$0xff] }
 0xb11   : > { %v1786_v54 = vpack.c.bf16 %v1784_v53, %v1783_v24 }
 0xb13   : > { %1868 = vmatmul.bf16.gmra.mxu0 %v1786_v54 }
 0xb68   : > { %v1864_v56 = vpop.f32.mrf.mxu0 }
 0xb69   : > { %v1865_v17 = vadd.f32 %v2326_v55, %v1864_v56 }
 0xb6b   : > { %v1874_v57 = vadd.f32 %v1865_v17, %v2889_v0 }
 0xb6d   : > { %v1880_v58 = vsel %vm548_vm0, %v1874_v57, 0.0 }
 0xb6e   : > { %1881 = vadd.xlane.f32.xlu0 %v1880_v58 }
 0xb70   : > { %v1866_v59 = vpop.f32.mrf.mxu0 }
 0xb71   : > { %v1867_v2 = vadd.f32 %v2326_v55, %v1866_v59 }
 0xb73   : > { %v1875_v3 = vadd.f32 %v1867_v2, %v2891_v1 }
 0xb75   : > { %v1883_v4 = vsel %vm548_vm0, %v1875_v3, 0.0 }
 0xb76   : > { %1884 = vadd.xlane.f32.xlu2 %v1883_v4 }
 0xb90   : > { %v1869_v5 = vpop.f32.mrf.mxu0 }
 0xb91   : > { %v1870_v8 = vadd.f32 %v2326_v55, %v1869_v5 }
 0xb93   : > { %v1876_v10 = vadd.f32 %v1870_v8, %v1732_v37 }
 0xb95   : > { %v1886_v12 = vsel %vm548_vm0, %v1876_v10, 0.0 }
 0xb96   : > { %1887 = vadd.xlane.f32.xlu1 %v1886_v12 }
 0xb98   : > { %v1871_v15 = vpop.f32.mrf.mxu0 }
 0xb99   : > { %v1872_v14 = vadd.f32 %v2326_v55, %v1871_v15 }
 0xb9b   : > { %v1877_v18 = vadd.f32 %v1872_v14, %v1733_v38 }
 0xb9d   : > { %v1889_v0 = vsel %vm548_vm0, %v1877_v18, 0.0 }
 0xb9e   : > { %1890 = vadd.xlane.f32.xlu0 %v1889_v0 }
 0xbe1   : > { %v1882_v63 = vpop.xlane.xlu0 %1881 }
 0xbe2   : > { %v1892_v6 = vmul.f32 %v1882_v63, %v2857_v21 }
 0xbe4   : > { %v1896_v7 = vsub.f32 %v1874_v57, %v1892_v6 }
 0xbe6   : > { %v1900_v1 = vmul.f32 %v1896_v7, %v1896_v7 }
 0xbe8   : > { %v1904_v50 = vsel %vm548_vm0, %v1900_v1, 0.0 }
 0xbe9   : > { %1905 = vadd.xlane.f32.xlu2 %v1904_v50  ;;  %v1885_v22 = vpop.xlane.xlu2 %1884 }
 0xbea   : > { %v1893_v20 = vmul.f32 %v1885_v22, %v2857_v21 }
 0xbec   : > { %v1897_v23 = vsub.f32 %v1875_v3, %v1893_v20 }
 0xbee   : > { %v1901_v25 = vmul.f32 %v1897_v23, %v1897_v23 }
 0xbf0   : > { %v1907_v28 = vsel %vm548_vm0, %v1901_v25, 0.0 }
 0xbf1   : > { %1908 = vadd.xlane.f32.xlu1 %v1907_v28 }
 0xc09   : > { %v1888_v31 = vpop.xlane.xlu1 %1887 }
 0xc0a   : > { %v1894_v32 = vmul.f32 %v1888_v31, %v2857_v21 }
 0xc0c   : > { %v2942_v34 = vsub.f32 %v1876_v10, %v1894_v32 }
 0xc0e   : > { %v1902_v13 = vmul.f32 %v2942_v34, %v2942_v34 }
 0xc10   : > { %v1910_v62 = vsel %vm548_vm0, %v1902_v13, 0.0 }
 0xc11   : > { %v1891_v60 = vpop.xlane.xlu0 %1890  ;;  %1911 = vadd.xlane.f32.xlu0 %v1910_v62 }
 0xc12   : > { %v1895_v35 = vmul.f32 %v1891_v60, %v2857_v21 }
 0xc14   : > { %v2948_v27 = vsub.f32 %v1877_v18, %v1895_v35 }
 0xc16   : > { %v1903_v39 = vmul.f32 %v2948_v27, %v2948_v27 }
 0xc18   : > { %v1913_v36 = vsel %vm548_vm0, %v1903_v39, 0.0 }
 0xc19   : > { %1914 = vadd.xlane.f32.xlu2 %v1913_v36 }
 0xc5c   : > { %v1906_v37 = vpop.xlane.xlu2 %1905 }
 0xc5d   : > { %v1916_v38 = vmul.f32 %v1906_v37, %v2857_v21 }
 0xc5f   : > { %v1920_v40 = vadd.f32 1e-05, %v1916_v38 }
 0xc61   : > { %2405 = vrsqrt.f32 %v1920_v40  ;;  %vm1930_vm4 = vweird.f32 %v1920_v40 }
 0xc64   : > { %v1909_v41 = vpop.xlane.xlu1 %1908 }
 0xc65   : > { %v1917_v33 = vmul.f32 %v1909_v41, %v2857_v21 }
 0xc67   : > { %v2406_v16 = vpop.eup %2405  ;;  %v1921_v42 = vadd.f32 1e-05, %v1917_v33 }
 0xc68   : > { %v1925_v52 = vmul.f32 %v2406_v16, %v1920_v40  ;;  %vm1931_vm3 = vweird.f32 %v2406_v16 }
 0xc69   : > { %2407 = vrsqrt.f32 %v1921_v42  ;;  %vm1932_vm5 = vmor %vm1930_vm4, %vm1931_vm3  ;;  %vm1940_vm7 = vweird.f32 %v1921_v42 }
 0xc6a   : > { %v1926_v43 = vmul.f32 %v2406_v16, %v1925_v52 }
 0xc6c   : > { %v1927_v44 = vmul.f32 0.5, %v1926_v43 }
 0xc6e   : > { %v1928_v45 = vsub.f32 1.5, %v1927_v44 }
 0xc6f   : > { %v2408_v11 = vpop.eup %2407 }
 0xc70   : > { %v1929_v9 = vmul.f32 %v2406_v16, %v1928_v45  ;;  %v1935_v29 = vmul.f32 %v2408_v11, %v1921_v42  ;;  %vm1941_vm6 = vweird.f32 %v2408_v11 }
 0xc71   : > { %vm1942_vm8 = vmor %vm1940_vm7, %vm1941_vm6 }
 0xc72   : > { %v1933_v46 = vsel %vm1932_vm5, %v2406_v16, %v1929_v9  ;;  %v1936_v47 = vmul.f32 %v2408_v11, %v1935_v29 }
 0xc73   : > { %v1964_v48 = vmul.f32 %v1933_v46, %v1896_v7 }
 0xc74   : > { %v1937_v24 = vmul.f32 0.5, %v1936_v47 }
 0xc75   : > { %v1971_v53 = vmul.f32 %v2327_v30, %v1964_v48 }
 0xc76   : > { %v1938_v54 = vsub.f32 1.5, %v1937_v24 }
 0xc77   : > { %v1978_v55 = vadd.f32 %v2328_v51, %v1971_v53 }
 0xc78   : > { %v1939_v56 = vmul.f32 %v2408_v11, %v1938_v54 }
 0xc79   : > { %v1982_v17 = vadd.f32 %v2838_v26, %v1978_v55 }
 0xc7a   : > { %v1943_v57 = vsel %vm1942_vm8, %v2408_v11, %v1939_v56 }
 0xc7b   : > { %v1988_v58 = vsel %vm548_vm0, %v1982_v17, 0.0  ;;  %v1965_v59 = vmul.f32 %v1943_v57, %v1897_v23 }
 0xc7c   : > { %1989 = vadd.xlane.f32.xlu1 %v1988_v58 }
 0xc7d   : > { %v1972_v2 = vmul.f32 %v2327_v30, %v1965_v59 }
 0xc7f   : > { %v1979_v3 = vadd.f32 %v2328_v51, %v1972_v2 }
 0xc81   : > { %v1983_v4 = vadd.f32 %v2843_v49, %v1979_v3 }
 0xc83   : > { %v1991_v5 = vsel %vm548_vm0, %v1983_v4, 0.0 }
 0xc84   : > { %v1912_v8 = vpop.xlane.xlu0 %1911  ;;  %1992 = vadd.xlane.f32.xlu0 %v1991_v5 }
 0xc85   : > { %v1918_v10 = vmul.f32 %v1912_v8, %v2857_v21 }
 0xc87   : > { %v1922_v12 = vadd.f32 1e-05, %v1918_v10  ;;  %v2329_v10 = vld [vmem:[%s3033_s14] ss:$0 sm:$0xff] }
 0xc89   : > { %2409 = vrsqrt.f32 %v1922_v12  ;;  %vm1950_vm10 = vweird.f32 %v1922_v12 }
 0xc8c   : > { %v1915_v15 = vpop.xlane.xlu2 %1914 }
 0xc8d   : > { %v1919_v26 = vmul.f32 %v1915_v15, %v2857_v21 }
 0xc8f   : > { %v2410_v14 = vpop.eup %2409  ;;  %v1923_v18 = vadd.f32 1e-05, %v1919_v26  ;;  %v2330_v26 = vld [vmem:[%s3034_s15] ss:$0 sm:$0xff] }
 0xc90   : > { %v1945_v0 = vmul.f32 %v2410_v14, %v1922_v12  ;;  %vm1951_vm9 = vweird.f32 %v2410_v14 }
 0xc91   : > { %2411 = vrsqrt.f32 %v1923_v18  ;;  %vm1952_vm11 = vmor %vm1950_vm10, %vm1951_vm9  ;;  %vm1960_vm13 = vweird.f32 %v1923_v18 }
 0xc92   : > { %v1946_v63 = vmul.f32 %v2410_v14, %v1945_v0 }
 0xc94   : > { %v1947_v6 = vmul.f32 0.5, %v1946_v63 }
 0xc96   : > { %v1948_v7 = vsub.f32 1.5, %v1947_v6 }
 0xc97   : > { %v2412_v49 = vpop.eup %2411 }
 0xc98   : > { %v1949_v1 = vmul.f32 %v2410_v14, %v1948_v7  ;;  %v1955_v50 = vmul.f32 %v2412_v49, %v1923_v18  ;;  %vm1961_vm12 = vweird.f32 %v2412_v49 }
 0xc99   : > { %vm1962_vm14 = vmor %vm1960_vm13, %vm1961_vm12 }
 0xc9a   : > { %v1953_v22 = vsel %vm1952_vm11, %v2410_v14, %v1949_v1  ;;  %v1956_v20 = vmul.f32 %v2412_v49, %v1955_v50 }
 0xc9b   : > { %v1966_v23 = vmul.f32 %v1953_v22, %v2942_v34 }
 0xc9c   : > { %v1957_v25 = vmul.f32 0.5, %v1956_v20 }
 0xc9d   : > { %v1973_v28 = vmul.f32 %v2327_v30, %v1966_v23 }
 0xc9e   : > { %v1958_v31 = vsub.f32 1.5, %v1957_v25 }
 0xc9f   : > { %v1980_v32 = vadd.f32 %v2328_v51, %v1973_v28 }
 0xca0   : > { %v1959_v13 = vmul.f32 %v2412_v49, %v1958_v31 }
 0xca1   : > { %v1984_v62 = vadd.f32 %v2848_v19, %v1980_v32 }
 0xca2   : > { %v1963_v60 = vsel %vm1962_vm14, %v2412_v49, %v1959_v13 }
 0xca3   : > { %v1994_v35 = vsel %vm548_vm0, %v1984_v62, 0.0  ;;  %v1967_v39 = vmul.f32 %v1963_v60, %v2948_v27 }
 0xca4   : > { %1995 = vadd.xlane.f32.xlu2 %v1994_v35 }
 0xca5   : > { %v1974_v36 = vmul.f32 %v2327_v30, %v1967_v39 }
 0xca7   : > { %v1981_v37 = vadd.f32 %v2328_v51, %v1974_v36 }
 0xca9   : > { %v1985_v34 = vadd.f32 %v2853_v61, %v1981_v37 }
 0xcab   : > { %v1997_v38 = vsel %vm548_vm0, %v1985_v34, 0.0 }
 0xcac   : > { %1998 = vadd.xlane.f32.xlu1 %v1997_v38 }
 0xcef   : > { %v1990_v40 = vpop.xlane.xlu1 %1989 }
 0xcf0   : > { %v2000_v41 = vmul.f32 %v1990_v40, %v2857_v21 }
 0xcf2   : > { %v2004_v33 = vsub.f32 %v1982_v17, %v2000_v41 }
 0xcf4   : > { %v2008_v16 = vmul.f32 %v2004_v33, %v2004_v33 }
 0xcf6   : > { %v2012_v19 = vsel %vm548_vm0, %v2008_v16, 0.0 }
 0xcf7   : > { %v1993_v42 = vpop.xlane.xlu0 %1992  ;;  %2013 = vadd.xlane.f32.xlu0 %v2012_v19 }
 0xcf8   : > { %v2001_v52 = vmul.f32 %v1993_v42, %v2857_v21 }
 0xcfa   : > { %v2005_v27 = vsub.f32 %v1983_v4, %v2001_v52 }
 0xcfc   : > { %v2009_v43 = vmul.f32 %v2005_v27, %v2005_v27 }
 0xcfe   : > { %v2015_v44 = vsel %vm548_vm0, %v2009_v43, 0.0 }
 0xcff   : > { %2016 = vadd.xlane.f32.xlu2 %v2015_v44 }
 0xd17   : > { %v1996_v61 = vpop.xlane.xlu2 %1995 }
 0xd18   : > { %v2002_v45 = vmul.f32 %v1996_v61, %v2857_v21 }
 0xd1a   : > { %v2978_v11 = vsub.f32 %v1984_v62, %v2002_v45 }
 0xd1c   : > { %v2010_v9 = vmul.f32 %v2978_v11, %v2978_v11 }
 0xd1e   : > { %v2018_v29 = vsel %vm548_vm0, %v2010_v9, 0.0 }
 0xd1f   : > { %v1999_v30 = vpop.xlane.xlu1 %1998  ;;  %2019 = vadd.xlane.f32.xlu1 %v2018_v29 }
 0xd20   : > { %v2003_v46 = vmul.f32 %v1999_v30, %v2857_v21 }
 0xd22   : > { %v2984_v47 = vsub.f32 %v1985_v34, %v2003_v46 }
 0xd24   : > { %v2011_v48 = vmul.f32 %v2984_v47, %v2984_v47 }
 0xd26   : > { %v2021_v51 = vsel %vm548_vm0, %v2011_v48, 0.0 }
 0xd27   : > { %2022 = vadd.xlane.f32.xlu0 %v2021_v51 }
 0xd6a   : > { %v2014_v24 = vpop.xlane.xlu0 %2013 }
 0xd6b   : > { %v2024_v53 = vmul.f32 %v2014_v24, %v2857_v21 }
 0xd6d   : > { %v2028_v54 = vadd.f32 1e-05, %v2024_v53 }
 0xd6f   : > { %2413 = vrsqrt.f32 %v2028_v54  ;;  %vm2038_vm1 = vweird.f32 %v2028_v54 }
 0xd72   : > { %v2017_v55 = vpop.xlane.xlu2 %2016 }
 0xd73   : > { %v2025_v56 = vmul.f32 %v2017_v55, %v2857_v21 }
 0xd75   : > { %v2414_v17 = vpop.eup %2413  ;;  %v2029_v57 = vadd.f32 1e-05, %v2025_v56 }
 0xd76   : > { %v2033_v58 = vmul.f32 %v2414_v17, %v2028_v54  ;;  %vm2039_vm15 = vweird.f32 %v2414_v17 }
 0xd77   : > { %2415 = vrsqrt.f32 %v2029_v57  ;;  %vm2040_vm2 = vmor %vm2038_vm1, %vm2039_vm15  ;;  %vm2048_vm4 = vweird.f32 %v2029_v57 }
 0xd78   : > { %v2034_v59 = vmul.f32 %v2414_v17, %v2033_v58 }
 0xd7a   : > { %v2035_v2 = vmul.f32 0.5, %v2034_v59 }
 0xd7c   : > { %v2036_v3 = vsub.f32 1.5, %v2035_v2 }
 0xd7d   : > { %v2416_v4 = vpop.eup %2415 }
 0xd7e   : > { %v2037_v5 = vmul.f32 %v2414_v17, %v2036_v3  ;;  %v2043_v8 = vmul.f32 %v2416_v4, %v2029_v57  ;;  %vm2049_vm3 = vweird.f32 %v2416_v4 }
 0xd7f   : > { %vm2050_vm5 = vmor %vm2048_vm4, %vm2049_vm3 }
 0xd80   : > { %v2041_v12 = vsel %vm2040_vm2, %v2414_v17, %v2037_v5  ;;  %v2044_v15 = vmul.f32 %v2416_v4, %v2043_v8 }
 0xd81   : > { %v2072_v14 = vmul.f32 %v2041_v12, %v2004_v33 }
 0xd82   : > { %v2045_v18 = vmul.f32 0.5, %v2044_v15 }
 0xd83   : > { %v2079_v0 = vmul.f32 %v2329_v10, %v2072_v14 }
 0xd84   : > { %v2046_v63 = vsub.f32 1.5, %v2045_v18 }
 0xd85   : > { %v2086_v6 = vadd.f32 %v2330_v26, %v2079_v0 }
 0xd86   : > { %v2047_v7 = vmul.f32 %v2416_v4, %v2046_v63 }
 0xd87   : > { %2090 = vst.msk [vmem:[%s3002_s22] sm:$0xff] %vm548_vm0, %v2086_v6 }
 0xd88   : > { %v2051_v49 = vsel %vm2050_vm5, %v2416_v4, %v2047_v7 }
 0xd89   : > { %v2073_v1 = vmul.f32 %v2051_v49, %v2005_v27 }
 0xd8b   : > { %v2080_v50 = vmul.f32 %v2329_v10, %v2073_v1 }
 0xd8d   : > { %v2087_v22 = vadd.f32 %v2330_v26, %v2080_v50 }
 0xd8f   : > { %2091 = vst.msk [vmem:[%s3002_s22 + $0x8] sm:$0xff] %vm548_vm0, %v2087_v22 }
 0xd92   : > { %v2020_v20 = vpop.xlane.xlu1 %2019 }
 0xd93   : > { %v2026_v23 = vmul.f32 %v2020_v20, %v2857_v21 }
 0xd95   : > { %v2030_v25 = vadd.f32 1e-05, %v2026_v23 }
 0xd97   : > { %2417 = vrsqrt.f32 %v2030_v25  ;;  %vm2058_vm7 = vweird.f32 %v2030_v25 }
 0xd9a   : > { %v2023_v28 = vpop.xlane.xlu0 %2022 }
 0xd9b   : > { %v2027_v31 = vmul.f32 %v2023_v28, %v2857_v21 }
 0xd9d   : > { %v2418_v32 = vpop.eup %2417  ;;  %v2031_v13 = vadd.f32 1e-05, %v2027_v31 }
 0xd9e   : > { %v2053_v62 = vmul.f32 %v2418_v32, %v2030_v25  ;;  %vm2059_vm6 = vweird.f32 %v2418_v32 }
 0xd9f   : > { %2419 = vrsqrt.f32 %v2031_v13  ;;  %vm2060_vm8 = vmor %vm2058_vm7, %vm2059_vm6  ;;  %vm2068_vm10 = vweird.f32 %v2031_v13 }
 0xda0   : > { %v2054_v60 = vmul.f32 %v2418_v32, %v2053_v62 }
 0xda2   : > { %v2055_v35 = vmul.f32 0.5, %v2054_v60 }
 0xda4   : > { %v2056_v39 = vsub.f32 1.5, %v2055_v35 }
 0xda5   : > { %v2420_v36 = vpop.eup %2419 }
 0xda6   : > { %v2057_v37 = vmul.f32 %v2418_v32, %v2056_v39  ;;  %v2063_v34 = vmul.f32 %v2420_v36, %v2031_v13  ;;  %vm2069_vm9 = vweird.f32 %v2420_v36 }
 0xda7   : > { %vm2070_vm11 = vmor %vm2068_vm10, %vm2069_vm9 }
 0xda8   : > { %v2061_v38 = vsel %vm2060_vm8, %v2418_v32, %v2057_v37  ;;  %v2064_v40 = vmul.f32 %v2420_v36, %v2063_v34 }
 0xda9   : > { %v2074_v41 = vmul.f32 %v2061_v38, %v2978_v11 }
 0xdaa   : > { %v2065_v21 = vmul.f32 0.5, %v2064_v40 }
 0xdab   : > { %v2081_v33 = vmul.f32 %v2329_v10, %v2074_v41 }
 0xdac   : > { %v2066_v16 = vsub.f32 1.5, %v2065_v21 }
 0xdad   : > { %v2088_v19 = vadd.f32 %v2330_v26, %v2081_v33 }
 0xdae   : > { %v2067_v42 = vmul.f32 %v2420_v36, %v2066_v16 }
 0xdaf   : > { %2092 = vst.msk [vmem:[%s3002_s22 + $0x10] sm:$0xff] %vm548_vm0, %v2088_v19 }
 0xdb0   : > { %v2071_v52 = vsel %vm2070_vm11, %v2420_v36, %v2067_v42 }
 0xdb1   : > { %v2075_v27 = vmul.f32 %v2071_v52, %v2984_v47 }
 0xdb3   : > { %v2082_v43 = vmul.f32 %v2329_v10, %v2075_v27 }
 0xdb5   : > { %v2089_v44 = vadd.f32 %v2330_v26, %v2082_v43 }
 0xdb7   : > { %2093 = vst.msk [vmem:[%s3002_s22 + $0x18] sm:$0xff] %vm548_vm0, %v2089_v44 }
 0xdb8 PF: > { %s26_s21 = sadd.s32 1, %s2431_s21  }
 0xdb9   : > { %p23_p4 = scmp.ge.s32.totalorder %s26_s21, 4  }
 0xdbb   :  { %25 = sbr.rel (!%p23_p4) target bundleno = 2 (0x2), region = 114 }

</bundles_post_ra>
